<compile_context>
chip_gen: v7x
topology: tpu7x:2x2x1
jax: 0.10.0
libtpu: 0.0.40
codegen_flags: <defaults>
</compile_context>

<pallas_src>
import functools

import jax
import jax.numpy as jnp
from jax.experimental import pallas as pl
from jax.experimental.pallas import tpu as pltpu


def _round_up(n, m):
    return ((n + m - 1) // m) * m


# ----------------------------------------------------------------------------
# Fused kernel
# ----------------------------------------------------------------------------
def _lstm_cell(gates, c_prev, H):
    """gates: (Bp, 4H) f32 pre-activations, PyTorch gate order [i, f, g, o].
    sigmoid/tanh are applied once over the whole gate vreg (2 EUP pushes), then the
    gate sub-ranges are static lane slices. Cell math stays f32 (v5e has no bf16 VPU/EUP)."""
    sig = jax.nn.sigmoid(gates)
    tnh = jnp.tanh(gates)
    i_g = sig[:, 0 * H:1 * H]
    f_g = sig[:, 1 * H:2 * H]
    g_g = tnh[:, 2 * H:3 * H]
    o_g = sig[:, 3 * H:4 * H]
    c_new = i_g * g_g if c_prev is None else f_g * c_prev + i_g * g_g
    h_new = o_g * jnp.tanh(c_new)
    return h_new, c_new


def _bi_lstm_kernel(x_ref, wih1_ref, whh_f1_ref, whh_b1_ref, b1l_ref,
                    wih_f2_hbm, whh_f2_hbm, b_f2_ref,
                    wih_b2_hbm, b_b2_ref,
                    w1_hbm, cb1_ref, w2_hbm, cb2_ref,
                    o_ref,
                    h1_ref, wih_f2_v, whh_f2_v, wih_b2_v, w1_v, w2_v, dsem,
                    *, T, Bp, H):
    f32 = jnp.float32
    bf16 = jnp.bfloat16

    # ---- prologue: start layer-2 / classifier weight DMAs (HBM -> VMEM).
    # They are hidden behind the layer-1 recurrence and waited on just before use.
    cps = [
        pltpu.make_async_copy(wih_f2_hbm, wih_f2_v, dsem.at[0]),
        pltpu.make_async_copy(whh_f2_hbm, whh_f2_v, dsem.at[1]),
        pltpu.make_async_copy(wih_b2_hbm, wih_b2_v, dsem.at[2]),
        pltpu.make_async_copy(w1_hbm, w1_v, dsem.at[3]),
        pltpu.make_async_copy(w2_hbm, w2_v, dsem.at[4]),
    ]
    for cp in cps:
        cp.start()

    # ---------------- layer 1 ----------------
    # Hoisted, fused input projection: one bf16 matmul for both directions
    # (fwd gates in lanes [0:4H), bwd gates in lanes [4H:8H)).
    x2d = x_ref[...]                                                  # (T*Bp, D) bf16
    xw = jnp.dot(x2d, wih1_ref[...], preferred_element_type=f32) + b1l_ref[...]
    whh_f1 = whh_f1_ref[...]                                          # (H, 4H) bf16
    whh_b1 = whh_b1_ref[...]

    # Fully unrolled (T small & static); fwd/bwd chains interleaved for ILP.
    # History goes straight into VMEM scratch (no long-lived traced values).
    hf = cf = hb = cb = None
    for k in range(T):
        tf = k
        tb = T - 1 - k
        gf = xw[tf * Bp:(tf + 1) * Bp, 0:4 * H]
        gb = xw[tb * Bp:(tb + 1) * Bp, 4 * H:8 * H]
        if hf is not None:
            gf = gf + jnp.dot(hf.astype(bf16), whh_f1, preferred_element_type=f32)
            gb = gb + jnp.dot(hb.astype(bf16), whh_b1, preferred_element_type=f32)
        hf, cf = _lstm_cell(gf, cf, H)
        hb, cb = _lstm_cell(gb, cb, H)
        h1_ref[tf * Bp:(tf + 1) * Bp, 0:H] = hf
        h1_ref[tb * Bp:(tb + 1) * Bp, H:2 * H] = hb

    # Layer-2 / classifier weights must be resident from here on.
    for cp in cps:
        cp.wait()

    # ---------------- layer 2 ----------------
    # Forward direction: hoisted input projection + full recurrence (only final h used).
    h1 = h1_ref[...]                                                  # (T*Bp, 2H) f32
    h1_b = h1.astype(bf16)
    xw2 = jnp.dot(h1_b, wih_f2_v[...], preferred_element_type=f32) + b_f2_ref[...]
    whh_f2 = whh_f2_v[...]
    hf2 = cf2 = None
    for t in range(T):
        g = xw2[t * Bp:(t + 1) * Bp, :]
        if hf2 is not None:
            g = g + jnp.dot(hf2.astype(bf16), whh_f2, preferred_element_type=f32)
        hf2, cf2 = _lstm_cell(g, cf2, H)

    # Backward direction: the classifier reads its state at t = T-1 only, which is the
    # first step of the reversed recurrence (h0 = c0 = 0) -> one cell, no W_hh term.
    x_last = h1[(T - 1) * Bp:T * Bp, :].astype(bf16)                  # (Bp, 2H)
    g_b2 = jnp.dot(x_last, wih_b2_v[...], preferred_element_type=f32) + b_b2_ref[...]
    hb2, _ = _lstm_cell(g_b2, None, H)

    # ---------------- classifier (fused) ----------------
    # Linear(2H,128) -> ReLU -> Dropout(0.3)=identity (eval) -> Linear(128, out_padded)
    feat = jnp.concatenate([hf2, hb2], axis=1).astype(bf16)           # (Bp, 2H)
    hid = jnp.dot(feat, w1_v[...], preferred_element_type=f32) + cb1_ref[...]
    hid = jnp.maximum(hid, 0.0).astype(bf16)
    out = jnp.dot(hid, w2_v[...], preferred_element_type=f32) + cb2_ref[...]
    o_ref[...] = out.astype(o_ref.dtype)                              # lane-dense (Bp, 128)


def bi_lstm_forward(x, kp, *, hidden_size, output_size):
    """x: (B, T, input_size), batch_first like PyTorch. Returns (B, output_size).
    Fused kernel specialized to num_layers=2 (as in the reference module)."""
    B, T, D = x.shape
    H = hidden_size
    Bp = _round_up(B, 8)
    OP = kp["OP"]

    x_tm = jnp.transpose(x, (1, 0, 2))                       # (T, B, D) time-major
    x_tm = jnp.pad(x_tm, ((0, 0), (0, Bp - B), (0, 0)))      # (T, Bp, D)
    x2d = x_tm.reshape(T * Bp, D).astype(jnp.bfloat16)

    vmem = pl.BlockSpec(memory_space=pltpu.MemorySpace.VMEM)
    hbm = pl.BlockSpec(memory_space=pl.ANY)                  # DMA'd manually in-kernel

    args = (x2d, kp["wih1"], kp["whh_f1"], kp["whh_b1"], kp["b1l"],
            kp["wih_f2"], kp["whh_f2"], kp["b_f2"],
            kp["wih_b2"], kp["b_b2"],
            kp["cls_w1"], kp["cls_b1"], kp["cls_w2"], kp["cls_b2"])
    in_specs = [vmem, vmem, vmem, vmem, vmem,
                hbm, hbm, vmem,
                hbm, vmem,
                hbm, vmem, hbm, vmem]

    kernel = functools.partial(_bi_lstm_kernel, T=T, Bp=Bp, H=H)
    out = pl.pallas_call(
        kernel,
        out_shape=jax.ShapeDtypeStruct((Bp, OP), jnp.float32),
        in_specs=in_specs,
        out_specs=pl.BlockSpec(memory_space=pltpu.MemorySpace.VMEM),
        scratch_shapes=[
            pltpu.VMEM((T * Bp, 2 * H), jnp.float32),        # layer-1 output history
            pltpu.VMEM(kp["wih_f2"].shape, jnp.bfloat16),
            pltpu.VMEM(kp["whh_f2"].shape, jnp.bfloat16),
            pltpu.VMEM(kp["wih_b2"].shape, jnp.bfloat16),
            pltpu.VMEM(kp["cls_w1"].shape, jnp.bfloat16),
            pltpu.VMEM(kp["cls_w2"].shape, jnp.bfloat16),
            pltpu.SemaphoreType.DMA((5,)),
        ],
        compiler_params=pltpu.CompilerParams(vmem_limit_bytes=16 * 1024 * 1024),
        # TODO(synk): for large batches add a batch-tile grid axis with
        # dimension_semantics=("parallel",) so v7x's two TensorCores split Bp.
    )(*args)
    return out[:B, :output_size]


# ----------------------------------------------------------------------------
# Parameters: natural (PyTorch-like) layout + bf16 packing for the kernel
# ----------------------------------------------------------------------------
def init_params(key, input_size, hidden_size, num_layers, output_size):
    """Weights stored transposed vs. PyTorch: W_ih -> (D_in, 4H), W_hh -> (H, 4H),
    gate order [i, f, g, o]; bias = b_ih + b_hh (two independent U(-bound, bound))."""
    H = hidden_size
    params = {"lstm": []}
    for layer in range(num_layers):
        d_in = input_size if layer == 0 else 2 * H
        bound = 1.0 / (H ** 0.5)
        lp = {}
        for tag in ("f", "b"):
            key, k1, k2, k3, k4 = jax.random.split(key, 5)
            lp[f"w_ih_{tag}"] = jax.random.uniform(k1, (d_in, 4 * H), jnp.float32, -bound, bound)
            lp[f"w_hh_{tag}"] = jax.random.uniform(k2, (H, 4 * H), jnp.float32, -bound, bound)
            b_ih = jax.random.uniform(k3, (1, 4 * H), jnp.float32, -bound, bound)
            b_hh = jax.random.uniform(k4, (1, 4 * H), jnp.float32, -bound, bound)
            lp[f"b_{tag}"] = b_ih + b_hh
        params["lstm"].append(lp)

    key, k1, k2, k3, k4 = jax.random.split(key, 5)
    b1b = 1.0 / ((2 * H) ** 0.5)
    b2b = 1.0 / (128 ** 0.5)
    params["cls_w1"] = jax.random.uniform(k1, (2 * H, 128), jnp.float32, -b1b, b1b)
    params["cls_b1"] = jax.random.uniform(k2, (1, 128), jnp.float32, -b1b, b1b)
    params["cls_w2"] = jax.random.uniform(k3, (128, output_size), jnp.float32, -b2b, b2b)
    params["cls_b2"] = jax.random.uniform(k4, (1, output_size), jnp.float32, -b2b, b2b)
    return params


def pack_params_for_kernel(params, hidden_size, output_size):
    """Pack for the fused kernel: bf16 matmul operands (biases kept f32, added to the
    f32-accumulated products), layer-1 fwd/bwd W_ih fused along lanes, classifier
    output padded to 128 lane-dense columns. No per-gate padding: 4*H lanes as-is."""
    H = hidden_size
    bf16 = jnp.bfloat16
    l1, l2 = params["lstm"][0], params["lstm"][1]
    kp = {}

    # layer 1: fused fwd||bwd input projection + recurrent weights
    kp["wih1"] = jnp.concatenate([l1["w_ih_f"], l1["w_ih_b"]], axis=1).astype(bf16)   # (D, 8H)
    kp["b1l"] = jnp.concatenate([l1["b_f"], l1["b_b"]], axis=1)                        # (1, 8H) f32
    kp["whh_f1"] = l1["w_hh_f"].astype(bf16)                                           # (H, 4H)
    kp["whh_b1"] = l1["w_hh_b"].astype(bf16)

    # layer 2 (backward direction only needs W_ih/b: single-cell shortcut, no W_hh term)
    kp["wih_f2"] = l2["w_ih_f"].astype(bf16)                                           # (2H, 4H)
    kp["whh_f2"] = l2["w_hh_f"].astype(bf16)                                           # (H, 4H)
    kp["b_f2"] = l2["b_f"]
    kp["wih_b2"] = l2["w_ih_b"].astype(bf16)
    kp["b_b2"] = l2["b_b"]

    # classifier; pad output columns to a lane-dense multiple of 128
    OP = _round_up(max(output_size, 1), 128)
    kp["cls_w1"] = params["cls_w1"].astype(bf16)                                       # (2H, 128)
    kp["cls_b1"] = params["cls_b1"]                                                    # (1, 128)
    w2 = jnp.zeros((128, OP), jnp.float32).at[:, :output_size].set(params["cls_w2"])
    b2 = jnp.zeros((1, OP), jnp.float32).at[:, :output_size].set(params["cls_b2"])
    kp["cls_w2"] = w2.astype(bf16)
    kp["cls_b2"] = b2
    kp["OP"] = OP
    return kp


# ----------------------------------------------------------------------------
# Plain-JAX reference (eval-mode forward, dropout = identity), f32 everywhere
# ----------------------------------------------------------------------------
def reference_forward(x, params, hidden_size, num_layers):
    H = hidden_size
    prec = jax.lax.Precision.HIGHEST

    def cell_seq(seq, w_ih, w_hh, b, reverse):
        T_, B_, _ = seq.shape
        h = jnp.zeros((B_, H), jnp.float32)
        c = jnp.zeros((B_, H), jnp.float32)
        outs = [None] * T_
        order = range(T_ - 1, -1, -1) if reverse else range(T_)
        for t in order:
            g = (jnp.dot(seq[t], w_ih, precision=prec)
                 + jnp.dot(h, w_hh, precision=prec) + b)
            i_g = jax.nn.sigmoid(g[:, 0 * H:1 * H])
            f_g = jax.nn.sigmoid(g[:, 1 * H:2 * H])
            g_g = jnp.tanh(g[:, 2 * H:3 * H])
            o_g = jax.nn.sigmoid(g[:, 3 * H:4 * H])
            c = f_g * c + i_g * g_g
            h = o_g * jnp.tanh(c)
            outs[t] = h
        return jnp.stack(outs, axis=0)

    seq = jnp.transpose(x, (1, 0, 2)).astype(jnp.float32)
    for layer in range(num_layers):
        lp = params["lstm"][layer]
        hf = cell_seq(seq, lp["w_ih_f"], lp["w_hh_f"], lp["b_f"], False)
        hb = cell_seq(seq, lp["w_ih_b"], lp["w_hh_b"], lp["b_b"], True)
        seq = jnp.concatenate([hf, hb], axis=-1)
    last = seq[-1]
    hid = jnp.maximum(jnp.dot(last, params["cls_w1"], precision=prec) + params["cls_b1"], 0.0)
    return jnp.dot(hid, params["cls_w2"], precision=prec) + params["cls_b2"]


if __name__ == "__main__":
    # Small, module-consistent shapes (4*hidden = 128 lanes = one vreg per gate block).
    B, T = 4, 8
    input_size, hidden_size, num_layers, output_size = 64, 32, 2, 4

    key = jax.random.PRNGKey(0)
    kx, kparam = jax.random.split(key)
    x = jax.random.normal(kx, (B, T, input_size), jnp.float32)
    params = init_params(kparam, input_size, hidden_size, num_layers, output_size)
    kparams = pack_params_for_kernel(params, hidden_size, output_size)

    out = bi_lstm_forward(x, kparams, hidden_size=hidden_size, output_size=output_size)
    jax.block_until_ready(out)
    assert out.shape == (B, output_size), out.shape

    ref = reference_forward(x, params, hidden_size, num_layers)
    max_err = float(jnp.max(jnp.abs(out - ref)))
    # bf16 matmul operands (f32 accumulate) vs. f32 HIGHEST-precision reference.
    assert max_err < 1e-1, f"max abs err = {max_err}"

    print("KERNEL_OK")
</pallas_src>

<mosaic_0001>
module attributes {stable_mosaic.version = 11 : i64} {
  func.func @_bi_lstm_kernel(%arg0: memref<64x64xbf16, #tpu.memory_space<vmem>>, %arg1: memref<64x256xbf16, #tpu.memory_space<vmem>>, %arg2: memref<32x128xbf16, #tpu.memory_space<vmem>>, %arg3: memref<32x128xbf16, #tpu.memory_space<vmem>>, %arg4: memref<1x256xf32, #tpu.memory_space<vmem>>, %arg5: memref<64x128xbf16, #tpu.memory_space<any>>, %arg6: memref<32x128xbf16, #tpu.memory_space<any>>, %arg7: memref<1x128xf32, #tpu.memory_space<vmem>>, %arg8: memref<64x128xbf16, #tpu.memory_space<any>>, %arg9: memref<1x128xf32, #tpu.memory_space<vmem>>, %arg10: memref<64x128xbf16, #tpu.memory_space<any>>, %arg11: memref<1x128xf32, #tpu.memory_space<vmem>>, %arg12: memref<128x128xbf16, #tpu.memory_space<any>>, %arg13: memref<1x128xf32, #tpu.memory_space<vmem>>, %arg14: memref<8x128xf32, #tpu.memory_space<vmem>>, %arg15: memref<64x64xf32, #tpu.memory_space<vmem>>, %arg16: memref<64x128xbf16, #tpu.memory_space<vmem>>, %arg17: memref<32x128xbf16, #tpu.memory_space<vmem>>, %arg18: memref<64x128xbf16, #tpu.memory_space<vmem>>, %arg19: memref<64x128xbf16, #tpu.memory_space<vmem>>, %arg20: memref<128x128xbf16, #tpu.memory_space<vmem>>, %arg21: memref<5x!tpu.dma_semaphore, #tpu.memory_space<semaphore_mem>>) attributes {dimension_semantics = [], scalar_prefetch = 0 : i64, scratch_operands = 7 : i64, tpu.core_type = #tpu.core_type<tc>} {
    %c0_i32 = arith.constant 0 : i32
    %0 = tpu.memref_slice %arg21[%c0_i32] : memref<5x!tpu.dma_semaphore, #tpu.memory_space<semaphore_mem>> -> memref<1x!tpu.dma_semaphore, #tpu.memory_space<semaphore_mem>>
    %1 = tpu.memref_squeeze %0 : memref<1x!tpu.dma_semaphore, #tpu.memory_space<semaphore_mem>> -> memref<!tpu.dma_semaphore, #tpu.memory_space<semaphore_mem>>
    tpu.enqueue_dma source(%arg5 : memref<64x128xbf16, #tpu.memory_space<any>>) target(%arg16 : memref<64x128xbf16, #tpu.memory_space<vmem>>) target_semaphore(%1 : memref<!tpu.dma_semaphore, #tpu.memory_space<semaphore_mem>>)
    %c1_i32 = arith.constant 1 : i32
    %2 = tpu.memref_slice %arg21[%c1_i32] : memref<5x!tpu.dma_semaphore, #tpu.memory_space<semaphore_mem>> -> memref<1x!tpu.dma_semaphore, #tpu.memory_space<semaphore_mem>>
    %3 = tpu.memref_squeeze %2 : memref<1x!tpu.dma_semaphore, #tpu.memory_space<semaphore_mem>> -> memref<!tpu.dma_semaphore, #tpu.memory_space<semaphore_mem>>
    tpu.enqueue_dma source(%arg6 : memref<32x128xbf16, #tpu.memory_space<any>>) target(%arg17 : memref<32x128xbf16, #tpu.memory_space<vmem>>) target_semaphore(%3 : memref<!tpu.dma_semaphore, #tpu.memory_space<semaphore_mem>>)
    %c2_i32 = arith.constant 2 : i32
    %4 = tpu.memref_slice %arg21[%c2_i32] : memref<5x!tpu.dma_semaphore, #tpu.memory_space<semaphore_mem>> -> memref<1x!tpu.dma_semaphore, #tpu.memory_space<semaphore_mem>>
    %5 = tpu.memref_squeeze %4 : memref<1x!tpu.dma_semaphore, #tpu.memory_space<semaphore_mem>> -> memref<!tpu.dma_semaphore, #tpu.memory_space<semaphore_mem>>
    tpu.enqueue_dma source(%arg8 : memref<64x128xbf16, #tpu.memory_space<any>>) target(%arg18 : memref<64x128xbf16, #tpu.memory_space<vmem>>) target_semaphore(%5 : memref<!tpu.dma_semaphore, #tpu.memory_space<semaphore_mem>>)
    %c3_i32 = arith.constant 3 : i32
    %6 = tpu.memref_slice %arg21[%c3_i32] : memref<5x!tpu.dma_semaphore, #tpu.memory_space<semaphore_mem>> -> memref<1x!tpu.dma_semaphore, #tpu.memory_space<semaphore_mem>>
    %7 = tpu.memref_squeeze %6 : memref<1x!tpu.dma_semaphore, #tpu.memory_space<semaphore_mem>> -> memref<!tpu.dma_semaphore, #tpu.memory_space<semaphore_mem>>
    tpu.enqueue_dma source(%arg10 : memref<64x128xbf16, #tpu.memory_space<any>>) target(%arg19 : memref<64x128xbf16, #tpu.memory_space<vmem>>) target_semaphore(%7 : memref<!tpu.dma_semaphore, #tpu.memory_space<semaphore_mem>>)
    %c4_i32 = arith.constant 4 : i32
    %8 = tpu.memref_slice %arg21[%c4_i32] : memref<5x!tpu.dma_semaphore, #tpu.memory_space<semaphore_mem>> -> memref<1x!tpu.dma_semaphore, #tpu.memory_space<semaphore_mem>>
    %9 = tpu.memref_squeeze %8 : memref<1x!tpu.dma_semaphore, #tpu.memory_space<semaphore_mem>> -> memref<!tpu.dma_semaphore, #tpu.memory_space<semaphore_mem>>
    tpu.enqueue_dma source(%arg12 : memref<128x128xbf16, #tpu.memory_space<any>>) target(%arg20 : memref<128x128xbf16, #tpu.memory_space<vmem>>) target_semaphore(%9 : memref<!tpu.dma_semaphore, #tpu.memory_space<semaphore_mem>>)
    %c0 = arith.constant 0 : index
    %c0_0 = arith.constant 0 : index
    %10 = vector.load %arg0[%c0, %c0_0] : memref<64x64xbf16, #tpu.memory_space<vmem>>, vector<64x64xbf16>
    %c0_1 = arith.constant 0 : index
    %c0_2 = arith.constant 0 : index
    %11 = vector.load %arg1[%c0_1, %c0_2] : memref<64x256xbf16, #tpu.memory_space<vmem>>, vector<64x256xbf16>
    %cst = arith.constant dense<0.000000e+00> : vector<64x256xf32>
    %12 = tpu.matmul %10, %11, %cst {dimension_numbers = #tpu.dot_dimension_numbers<[1], [0], [0], [1], [0, 0, 1, 1], [], []>} : vector<64x64xbf16>, vector<64x256xbf16>, vector<64x256xf32> -> vector<64x256xf32>
    %c0_3 = arith.constant 0 : index
    %c0_4 = arith.constant 0 : index
    %13 = vector.load %arg4[%c0_3, %c0_4] : memref<1x256xf32, #tpu.memory_space<vmem>>, vector<1x256xf32>
    %14 = vector.broadcast %13 : vector<1x256xf32> to vector<64x256xf32>
    %15 = arith.addf %12, %14 : vector<64x256xf32>
    %c0_5 = arith.constant 0 : index
    %c0_6 = arith.constant 0 : index
    %16 = vector.load %arg2[%c0_5, %c0_6] : memref<32x128xbf16, #tpu.memory_space<vmem>>, vector<32x128xbf16>
    %c0_7 = arith.constant 0 : index
    %c0_8 = arith.constant 0 : index
    %17 = vector.load %arg3[%c0_7, %c0_8] : memref<32x128xbf16, #tpu.memory_space<vmem>>, vector<32x128xbf16>
    %18 = vector.extract_strided_slice %15 {offsets = [0, 0], sizes = [8, 128], strides = [1, 1]} : vector<64x256xf32> to vector<8x128xf32>
    %19 = vector.extract_strided_slice %15 {offsets = [56, 128], sizes = [8, 128], strides = [1, 1]} : vector<64x256xf32> to vector<8x128xf32>
    %20 = arith.negf %18 : vector<8x128xf32>
    %21 = math.exp %20 : vector<8x128xf32>
    %cst_9 = arith.constant 1.000000e+00 : f32
    %22 = vector.broadcast %cst_9 : f32 to vector<8x128xf32>
    %23 = arith.addf %22, %21 : vector<8x128xf32>
    %24 = arith.divf %22, %23 : vector<8x128xf32>
    %25 = math.tanh %18 : vector<8x128xf32>
    %26 = vector.extract_strided_slice %24 {offsets = [0, 0], sizes = [8, 32], strides = [1, 1]} : vector<8x128xf32> to vector<8x32xf32>
    %27 = vector.extract_strided_slice %25 {offsets = [0, 64], sizes = [8, 32], strides = [1, 1]} : vector<8x128xf32> to vector<8x32xf32>
    %28 = vector.extract_strided_slice %24 {offsets = [0, 96], sizes = [8, 32], strides = [1, 1]} : vector<8x128xf32> to vector<8x32xf32>
    %29 = arith.mulf %26, %27 : vector<8x32xf32>
    %30 = math.tanh %29 : vector<8x32xf32>
    %31 = arith.mulf %28, %30 : vector<8x32xf32>
    %32 = arith.negf %19 : vector<8x128xf32>
    %33 = math.exp %32 : vector<8x128xf32>
    %cst_10 = arith.constant 1.000000e+00 : f32
    %34 = vector.broadcast %cst_10 : f32 to vector<8x128xf32>
    %35 = arith.addf %34, %33 : vector<8x128xf32>
    %36 = arith.divf %34, %35 : vector<8x128xf32>
    %37 = math.tanh %19 : vector<8x128xf32>
    %38 = vector.extract_strided_slice %36 {offsets = [0, 0], sizes = [8, 32], strides = [1, 1]} : vector<8x128xf32> to vector<8x32xf32>
    %39 = vector.extract_strided_slice %37 {offsets = [0, 64], sizes = [8, 32], strides = [1, 1]} : vector<8x128xf32> to vector<8x32xf32>
    %40 = vector.extract_strided_slice %36 {offsets = [0, 96], sizes = [8, 32], strides = [1, 1]} : vector<8x128xf32> to vector<8x32xf32>
    %41 = arith.mulf %38, %39 : vector<8x32xf32>
    %42 = math.tanh %41 : vector<8x32xf32>
    %43 = arith.mulf %40, %42 : vector<8x32xf32>
    %c0_11 = arith.constant 0 : index
    %c0_12 = arith.constant 0 : index
    %44 = vector.load %arg15[%c0_11, %c0_12] : memref<64x64xf32, #tpu.memory_space<vmem>>, vector<8x32xf32>
    tpu.vector_store %arg15[%c0_11, %c0_12], %31 {strides = array<i32>} : memref<64x64xf32, #tpu.memory_space<vmem>>, vector<8x32xf32>,
    %c56 = arith.constant 56 : index
    %c32 = arith.constant 32 : index
    %45 = vector.load %arg15[%c56, %c32] : memref<64x64xf32, #tpu.memory_space<vmem>>, vector<8x32xf32>
    tpu.vector_store %arg15[%c56, %c32], %43 {strides = array<i32>} : memref<64x64xf32, #tpu.memory_space<vmem>>, vector<8x32xf32>,
    %46 = vector.extract_strided_slice %15 {offsets = [8, 0], sizes = [8, 128], strides = [1, 1]} : vector<64x256xf32> to vector<8x128xf32>
    %47 = vector.extract_strided_slice %15 {offsets = [48, 128], sizes = [8, 128], strides = [1, 1]} : vector<64x256xf32> to vector<8x128xf32>
    %48 = arith.truncf %31 : vector<8x32xf32> to vector<8x32xbf16>
    %cst_13 = arith.constant dense<0.000000e+00> : vector<8x128xf32>
    %49 = tpu.matmul %48, %16, %cst_13 {dimension_numbers = #tpu.dot_dimension_numbers<[1], [0], [0], [1], [0, 0, 1, 1], [], []>} : vector<8x32xbf16>, vector<32x128xbf16>, vector<8x128xf32> -> vector<8x128xf32>
    %50 = arith.addf %46, %49 : vector<8x128xf32>
    %51 = arith.truncf %43 : vector<8x32xf32> to vector<8x32xbf16>
    %cst_14 = arith.constant dense<0.000000e+00> : vector<8x128xf32>
    %52 = tpu.matmul %51, %17, %cst_14 {dimension_numbers = #tpu.dot_dimension_numbers<[1], [0], [0], [1], [0, 0, 1, 1], [], []>} : vector<8x32xbf16>, vector<32x128xbf16>, vector<8x128xf32> -> vector<8x128xf32>
    %53 = arith.addf %47, %52 : vector<8x128xf32>
    %54 = arith.negf %50 : vector<8x128xf32>
    %55 = math.exp %54 : vector<8x128xf32>
    %cst_15 = arith.constant 1.000000e+00 : f32
    %56 = vector.broadcast %cst_15 : f32 to vector<8x128xf32>
    %57 = arith.addf %56, %55 : vector<8x128xf32>
    %58 = arith.divf %56, %57 : vector<8x128xf32>
    %59 = math.tanh %50 : vector<8x128xf32>
    %60 = vector.extract_strided_slice %58 {offsets = [0, 0], sizes = [8, 32], strides = [1, 1]} : vector<8x128xf32> to vector<8x32xf32>
    %61 = vector.extract_strided_slice %58 {offsets = [0, 32], sizes = [8, 32], strides = [1, 1]} : vector<8x128xf32> to vector<8x32xf32>
    %62 = vector.extract_strided_slice %59 {offsets = [0, 64], sizes = [8, 32], strides = [1, 1]} : vector<8x128xf32> to vector<8x32xf32>
    %63 = vector.extract_strided_slice %58 {offsets = [0, 96], sizes = [8, 32], strides = [1, 1]} : vector<8x128xf32> to vector<8x32xf32>
    %64 = arith.mulf %61, %29 : vector<8x32xf32>
    %65 = arith.mulf %60, %62 : vector<8x32xf32>
    %66 = arith.addf %64, %65 : vector<8x32xf32>
    %67 = math.tanh %66 : vector<8x32xf32>
    %68 = arith.mulf %63, %67 : vector<8x32xf32>
    %69 = arith.negf %53 : vector<8x128xf32>
    %70 = math.exp %69 : vector<8x128xf32>
    %cst_16 = arith.constant 1.000000e+00 : f32
    %71 = vector.broadcast %cst_16 : f32 to vector<8x128xf32>
    %72 = arith.addf %71, %70 : vector<8x128xf32>
    %73 = arith.divf %71, %72 : vector<8x128xf32>
    %74 = math.tanh %53 : vector<8x128xf32>
    %75 = vector.extract_strided_slice %73 {offsets = [0, 0], sizes = [8, 32], strides = [1, 1]} : vector<8x128xf32> to vector<8x32xf32>
    %76 = vector.extract_strided_slice %73 {offsets = [0, 32], sizes = [8, 32], strides = [1, 1]} : vector<8x128xf32> to vector<8x32xf32>
    %77 = vector.extract_strided_slice %74 {offsets = [0, 64], sizes = [8, 32], strides = [1, 1]} : vector<8x128xf32> to vector<8x32xf32>
    %78 = vector.extract_strided_slice %73 {offsets = [0, 96], sizes = [8, 32], strides = [1, 1]} : vector<8x128xf32> to vector<8x32xf32>
    %79 = arith.mulf %76, %41 : vector<8x32xf32>
    %80 = arith.mulf %75, %77 : vector<8x32xf32>
    %81 = arith.addf %79, %80 : vector<8x32xf32>
    %82 = math.tanh %81 : vector<8x32xf32>
    %83 = arith.mulf %78, %82 : vector<8x32xf32>
    %c8 = arith.constant 8 : index
    %c0_17 = arith.constant 0 : index
    %84 = vector.load %arg15[%c8, %c0_17] : memref<64x64xf32, #tpu.memory_space<vmem>>, vector<8x32xf32>
    tpu.vector_store %arg15[%c8, %c0_17], %68 {strides = array<i32>} : memref<64x64xf32, #tpu.memory_space<vmem>>, vector<8x32xf32>,
    %c48 = arith.constant 48 : index
    %c32_18 = arith.constant 32 : index
    %85 = vector.load %arg15[%c48, %c32_18] : memref<64x64xf32, #tpu.memory_space<vmem>>, vector<8x32xf32>
    tpu.vector_store %arg15[%c48, %c32_18], %83 {strides = array<i32>} : memref<64x64xf32, #tpu.memory_space<vmem>>, vector<8x32xf32>,
    %86 = vector.extract_strided_slice %15 {offsets = [16, 0], sizes = [8, 128], strides = [1, 1]} : vector<64x256xf32> to vector<8x128xf32>
    %87 = vector.extract_strided_slice %15 {offsets = [40, 128], sizes = [8, 128], strides = [1, 1]} : vector<64x256xf32> to vector<8x128xf32>
    %88 = arith.truncf %68 : vector<8x32xf32> to vector<8x32xbf16>
    %cst_19 = arith.constant dense<0.000000e+00> : vector<8x128xf32>
    %89 = tpu.matmul %88, %16, %cst_19 {dimension_numbers = #tpu.dot_dimension_numbers<[1], [0], [0], [1], [0, 0, 1, 1], [], []>} : vector<8x32xbf16>, vector<32x128xbf16>, vector<8x128xf32> -> vector<8x128xf32>
    %90 = arith.addf %86, %89 : vector<8x128xf32>
    %91 = arith.truncf %83 : vector<8x32xf32> to vector<8x32xbf16>
    %cst_20 = arith.constant dense<0.000000e+00> : vector<8x128xf32>
    %92 = tpu.matmul %91, %17, %cst_20 {dimension_numbers = #tpu.dot_dimension_numbers<[1], [0], [0], [1], [0, 0, 1, 1], [], []>} : vector<8x32xbf16>, vector<32x128xbf16>, vector<8x128xf32> -> vector<8x128xf32>
    %93 = arith.addf %87, %92 : vector<8x128xf32>
    %94 = arith.negf %90 : vector<8x128xf32>
    %95 = math.exp %94 : vector<8x128xf32>
    %cst_21 = arith.constant 1.000000e+00 : f32
    %96 = vector.broadcast %cst_21 : f32 to vector<8x128xf32>
    %97 = arith.addf %96, %95 : vector<8x128xf32>
    %98 = arith.divf %96, %97 : vector<8x128xf32>
    %99 = math.tanh %90 : vector<8x128xf32>
    %100 = vector.extract_strided_slice %98 {offsets = [0, 0], sizes = [8, 32], strides = [1, 1]} : vector<8x128xf32> to vector<8x32xf32>
    %101 = vector.extract_strided_slice %98 {offsets = [0, 32], sizes = [8, 32], strides = [1, 1]} : vector<8x128xf32> to vector<8x32xf32>
    %102 = vector.extract_strided_slice %99 {offsets = [0, 64], sizes = [8, 32], strides = [1, 1]} : vector<8x128xf32> to vector<8x32xf32>
    %103 = vector.extract_strided_slice %98 {offsets = [0, 96], sizes = [8, 32], strides = [1, 1]} : vector<8x128xf32> to vector<8x32xf32>
    %104 = arith.mulf %101, %66 : vector<8x32xf32>
    %105 = arith.mulf %100, %102 : vector<8x32xf32>
    %106 = arith.addf %104, %105 : vector<8x32xf32>
    %107 = math.tanh %106 : vector<8x32xf32>
    %108 = arith.mulf %103, %107 : vector<8x32xf32>
    %109 = arith.negf %93 : vector<8x128xf32>
    %110 = math.exp %109 : vector<8x128xf32>
    %cst_22 = arith.constant 1.000000e+00 : f32
    %111 = vector.broadcast %cst_22 : f32 to vector<8x128xf32>
    %112 = arith.addf %111, %110 : vector<8x128xf32>
    %113 = arith.divf %111, %112 : vector<8x128xf32>
    %114 = math.tanh %93 : vector<8x128xf32>
    %115 = vector.extract_strided_slice %113 {offsets = [0, 0], sizes = [8, 32], strides = [1, 1]} : vector<8x128xf32> to vector<8x32xf32>
    %116 = vector.extract_strided_slice %113 {offsets = [0, 32], sizes = [8, 32], strides = [1, 1]} : vector<8x128xf32> to vector<8x32xf32>
    %117 = vector.extract_strided_slice %114 {offsets = [0, 64], sizes = [8, 32], strides = [1, 1]} : vector<8x128xf32> to vector<8x32xf32>
    %118 = vector.extract_strided_slice %113 {offsets = [0, 96], sizes = [8, 32], strides = [1, 1]} : vector<8x128xf32> to vector<8x32xf32>
    %119 = arith.mulf %116, %81 : vector<8x32xf32>
    %120 = arith.mulf %115, %117 : vector<8x32xf32>
    %121 = arith.addf %119, %120 : vector<8x32xf32>
    %122 = math.tanh %121 : vector<8x32xf32>
    %123 = arith.mulf %118, %122 : vector<8x32xf32>
    %c16 = arith.constant 16 : index
    %c0_23 = arith.constant 0 : index
    %124 = vector.load %arg15[%c16, %c0_23] : memref<64x64xf32, #tpu.memory_space<vmem>>, vector<8x32xf32>
    tpu.vector_store %arg15[%c16, %c0_23], %108 {strides = array<i32>} : memref<64x64xf32, #tpu.memory_space<vmem>>, vector<8x32xf32>,
    %c40 = arith.constant 40 : index
    %c32_24 = arith.constant 32 : index
    %125 = vector.load %arg15[%c40, %c32_24] : memref<64x64xf32, #tpu.memory_space<vmem>>, vector<8x32xf32>
    tpu.vector_store %arg15[%c40, %c32_24], %123 {strides = array<i32>} : memref<64x64xf32, #tpu.memory_space<vmem>>, vector<8x32xf32>,
    %126 = vector.extract_strided_slice %15 {offsets = [24, 0], sizes = [8, 128], strides = [1, 1]} : vector<64x256xf32> to vector<8x128xf32>
    %127 = vector.extract_strided_slice %15 {offsets = [32, 128], sizes = [8, 128], strides = [1, 1]} : vector<64x256xf32> to vector<8x128xf32>
    %128 = arith.truncf %108 : vector<8x32xf32> to vector<8x32xbf16>
    %cst_25 = arith.constant dense<0.000000e+00> : vector<8x128xf32>
    %129 = tpu.matmul %128, %16, %cst_25 {dimension_numbers = #tpu.dot_dimension_numbers<[1], [0], [0], [1], [0, 0, 1, 1], [], []>} : vector<8x32xbf16>, vector<32x128xbf16>, vector<8x128xf32> -> vector<8x128xf32>
    %130 = arith.addf %126, %129 : vector<8x128xf32>
    %131 = arith.truncf %123 : vector<8x32xf32> to vector<8x32xbf16>
    %cst_26 = arith.constant dense<0.000000e+00> : vector<8x128xf32>
    %132 = tpu.matmul %131, %17, %cst_26 {dimension_numbers = #tpu.dot_dimension_numbers<[1], [0], [0], [1], [0, 0, 1, 1], [], []>} : vector<8x32xbf16>, vector<32x128xbf16>, vector<8x128xf32> -> vector<8x128xf32>
    %133 = arith.addf %127, %132 : vector<8x128xf32>
    %134 = arith.negf %130 : vector<8x128xf32>
    %135 = math.exp %134 : vector<8x128xf32>
    %cst_27 = arith.constant 1.000000e+00 : f32
    %136 = vector.broadcast %cst_27 : f32 to vector<8x128xf32>
    %137 = arith.addf %136, %135 : vector<8x128xf32>
    %138 = arith.divf %136, %137 : vector<8x128xf32>
    %139 = math.tanh %130 : vector<8x128xf32>
    %140 = vector.extract_strided_slice %138 {offsets = [0, 0], sizes = [8, 32], strides = [1, 1]} : vector<8x128xf32> to vector<8x32xf32>
    %141 = vector.extract_strided_slice %138 {offsets = [0, 32], sizes = [8, 32], strides = [1, 1]} : vector<8x128xf32> to vector<8x32xf32>
    %142 = vector.extract_strided_slice %139 {offsets = [0, 64], sizes = [8, 32], strides = [1, 1]} : vector<8x128xf32> to vector<8x32xf32>
    %143 = vector.extract_strided_slice %138 {offsets = [0, 96], sizes = [8, 32], strides = [1, 1]} : vector<8x128xf32> to vector<8x32xf32>
    %144 = arith.mulf %141, %106 : vector<8x32xf32>
    %145 = arith.mulf %140, %142 : vector<8x32xf32>
    %146 = arith.addf %144, %145 : vector<8x32xf32>
    %147 = math.tanh %146 : vector<8x32xf32>
    %148 = arith.mulf %143, %147 : vector<8x32xf32>
    %149 = arith.negf %133 : vector<8x128xf32>
    %150 = math.exp %149 : vector<8x128xf32>
    %cst_28 = arith.constant 1.000000e+00 : f32
    %151 = vector.broadcast %cst_28 : f32 to vector<8x128xf32>
    %152 = arith.addf %151, %150 : vector<8x128xf32>
    %153 = arith.divf %151, %152 : vector<8x128xf32>
    %154 = math.tanh %133 : vector<8x128xf32>
    %155 = vector.extract_strided_slice %153 {offsets = [0, 0], sizes = [8, 32], strides = [1, 1]} : vector<8x128xf32> to vector<8x32xf32>
    %156 = vector.extract_strided_slice %153 {offsets = [0, 32], sizes = [8, 32], strides = [1, 1]} : vector<8x128xf32> to vector<8x32xf32>
    %157 = vector.extract_strided_slice %154 {offsets = [0, 64], sizes = [8, 32], strides = [1, 1]} : vector<8x128xf32> to vector<8x32xf32>
    %158 = vector.extract_strided_slice %153 {offsets = [0, 96], sizes = [8, 32], strides = [1, 1]} : vector<8x128xf32> to vector<8x32xf32>
    %159 = arith.mulf %156, %121 : vector<8x32xf32>
    %160 = arith.mulf %155, %157 : vector<8x32xf32>
    %161 = arith.addf %159, %160 : vector<8x32xf32>
    %162 = math.tanh %161 : vector<8x32xf32>
    %163 = arith.mulf %158, %162 : vector<8x32xf32>
    %c24 = arith.constant 24 : index
    %c0_29 = arith.constant 0 : index
    %164 = vector.load %arg15[%c24, %c0_29] : memref<64x64xf32, #tpu.memory_space<vmem>>, vector<8x32xf32>
    tpu.vector_store %arg15[%c24, %c0_29], %148 {strides = array<i32>} : memref<64x64xf32, #tpu.memory_space<vmem>>, vector<8x32xf32>,
    %c32_30 = arith.constant 32 : index
    %c32_31 = arith.constant 32 : index
    %165 = vector.load %arg15[%c32_30, %c32_31] : memref<64x64xf32, #tpu.memory_space<vmem>>, vector<8x32xf32>
    tpu.vector_store %arg15[%c32_30, %c32_31], %163 {strides = array<i32>} : memref<64x64xf32, #tpu.memory_space<vmem>>, vector<8x32xf32>,
    %166 = vector.extract_strided_slice %15 {offsets = [32, 0], sizes = [8, 128], strides = [1, 1]} : vector<64x256xf32> to vector<8x128xf32>
    %167 = vector.extract_strided_slice %15 {offsets = [24, 128], sizes = [8, 128], strides = [1, 1]} : vector<64x256xf32> to vector<8x128xf32>
    %168 = arith.truncf %148 : vector<8x32xf32> to vector<8x32xbf16>
    %cst_32 = arith.constant dense<0.000000e+00> : vector<8x128xf32>
    %169 = tpu.matmul %168, %16, %cst_32 {dimension_numbers = #tpu.dot_dimension_numbers<[1], [0], [0], [1], [0, 0, 1, 1], [], []>} : vector<8x32xbf16>, vector<32x128xbf16>, vector<8x128xf32> -> vector<8x128xf32>
    %170 = arith.addf %166, %169 : vector<8x128xf32>
    %171 = arith.truncf %163 : vector<8x32xf32> to vector<8x32xbf16>
    %cst_33 = arith.constant dense<0.000000e+00> : vector<8x128xf32>
    %172 = tpu.matmul %171, %17, %cst_33 {dimension_numbers = #tpu.dot_dimension_numbers<[1], [0], [0], [1], [0, 0, 1, 1], [], []>} : vector<8x32xbf16>, vector<32x128xbf16>, vector<8x128xf32> -> vector<8x128xf32>
    %173 = arith.addf %167, %172 : vector<8x128xf32>
    %174 = arith.negf %170 : vector<8x128xf32>
    %175 = math.exp %174 : vector<8x128xf32>
    %cst_34 = arith.constant 1.000000e+00 : f32
    %176 = vector.broadcast %cst_34 : f32 to vector<8x128xf32>
    %177 = arith.addf %176, %175 : vector<8x128xf32>
    %178 = arith.divf %176, %177 : vector<8x128xf32>
    %179 = math.tanh %170 : vector<8x128xf32>
    %180 = vector.extract_strided_slice %178 {offsets = [0, 0], sizes = [8, 32], strides = [1, 1]} : vector<8x128xf32> to vector<8x32xf32>
    %181 = vector.extract_strided_slice %178 {offsets = [0, 32], sizes = [8, 32], strides = [1, 1]} : vector<8x128xf32> to vector<8x32xf32>
    %182 = vector.extract_strided_slice %179 {offsets = [0, 64], sizes = [8, 32], strides = [1, 1]} : vector<8x128xf32> to vector<8x32xf32>
    %183 = vector.extract_strided_slice %178 {offsets = [0, 96], sizes = [8, 32], strides = [1, 1]} : vector<8x128xf32> to vector<8x32xf32>
    %184 = arith.mulf %181, %146 : vector<8x32xf32>
    %185 = arith.mulf %180, %182 : vector<8x32xf32>
    %186 = arith.addf %184, %185 : vector<8x32xf32>
    %187 = math.tanh %186 : vector<8x32xf32>
    %188 = arith.mulf %183, %187 : vector<8x32xf32>
    %189 = arith.negf %173 : vector<8x128xf32>
    %190 = math.exp %189 : vector<8x128xf32>
    %cst_35 = arith.constant 1.000000e+00 : f32
    %191 = vector.broadcast %cst_35 : f32 to vector<8x128xf32>
    %192 = arith.addf %191, %190 : vector<8x128xf32>
    %193 = arith.divf %191, %192 : vector<8x128xf32>
    %194 = math.tanh %173 : vector<8x128xf32>
    %195 = vector.extract_strided_slice %193 {offsets = [0, 0], sizes = [8, 32], strides = [1, 1]} : vector<8x128xf32> to vector<8x32xf32>
    %196 = vector.extract_strided_slice %193 {offsets = [0, 32], sizes = [8, 32], strides = [1, 1]} : vector<8x128xf32> to vector<8x32xf32>
    %197 = vector.extract_strided_slice %194 {offsets = [0, 64], sizes = [8, 32], strides = [1, 1]} : vector<8x128xf32> to vector<8x32xf32>
    %198 = vector.extract_strided_slice %193 {offsets = [0, 96], sizes = [8, 32], strides = [1, 1]} : vector<8x128xf32> to vector<8x32xf32>
    %199 = arith.mulf %196, %161 : vector<8x32xf32>
    %200 = arith.mulf %195, %197 : vector<8x32xf32>
    %201 = arith.addf %199, %200 : vector<8x32xf32>
    %202 = math.tanh %201 : vector<8x32xf32>
    %203 = arith.mulf %198, %202 : vector<8x32xf32>
    %c32_36 = arith.constant 32 : index
    %c0_37 = arith.constant 0 : index
    %204 = vector.load %arg15[%c32_36, %c0_37] : memref<64x64xf32, #tpu.memory_space<vmem>>, vector<8x32xf32>
    tpu.vector_store %arg15[%c32_36, %c0_37], %188 {strides = array<i32>} : memref<64x64xf32, #tpu.memory_space<vmem>>, vector<8x32xf32>,
    %c24_38 = arith.constant 24 : index
    %c32_39 = arith.constant 32 : index
    %205 = vector.load %arg15[%c24_38, %c32_39] : memref<64x64xf32, #tpu.memory_space<vmem>>, vector<8x32xf32>
    tpu.vector_store %arg15[%c24_38, %c32_39], %203 {strides = array<i32>} : memref<64x64xf32, #tpu.memory_space<vmem>>, vector<8x32xf32>,
    %206 = vector.extract_strided_slice %15 {offsets = [40, 0], sizes = [8, 128], strides = [1, 1]} : vector<64x256xf32> to vector<8x128xf32>
    %207 = vector.extract_strided_slice %15 {offsets = [16, 128], sizes = [8, 128], strides = [1, 1]} : vector<64x256xf32> to vector<8x128xf32>
    %208 = arith.truncf %188 : vector<8x32xf32> to vector<8x32xbf16>
    %cst_40 = arith.constant dense<0.000000e+00> : vector<8x128xf32>
    %209 = tpu.matmul %208, %16, %cst_40 {dimension_numbers = #tpu.dot_dimension_numbers<[1], [0], [0], [1], [0, 0, 1, 1], [], []>} : vector<8x32xbf16>, vector<32x128xbf16>, vector<8x128xf32> -> vector<8x128xf32>
    %210 = arith.addf %206, %209 : vector<8x128xf32>
    %211 = arith.truncf %203 : vector<8x32xf32> to vector<8x32xbf16>
    %cst_41 = arith.constant dense<0.000000e+00> : vector<8x128xf32>
    %212 = tpu.matmul %211, %17, %cst_41 {dimension_numbers = #tpu.dot_dimension_numbers<[1], [0], [0], [1], [0, 0, 1, 1], [], []>} : vector<8x32xbf16>, vector<32x128xbf16>, vector<8x128xf32> -> vector<8x128xf32>
    %213 = arith.addf %207, %212 : vector<8x128xf32>
    %214 = arith.negf %210 : vector<8x128xf32>
    %215 = math.exp %214 : vector<8x128xf32>
    %cst_42 = arith.constant 1.000000e+00 : f32
    %216 = vector.broadcast %cst_42 : f32 to vector<8x128xf32>
    %217 = arith.addf %216, %215 : vector<8x128xf32>
    %218 = arith.divf %216, %217 : vector<8x128xf32>
    %219 = math.tanh %210 : vector<8x128xf32>
    %220 = vector.extract_strided_slice %218 {offsets = [0, 0], sizes = [8, 32], strides = [1, 1]} : vector<8x128xf32> to vector<8x32xf32>
    %221 = vector.extract_strided_slice %218 {offsets = [0, 32], sizes = [8, 32], strides = [1, 1]} : vector<8x128xf32> to vector<8x32xf32>
    %222 = vector.extract_strided_slice %219 {offsets = [0, 64], sizes = [8, 32], strides = [1, 1]} : vector<8x128xf32> to vector<8x32xf32>
    %223 = vector.extract_strided_slice %218 {offsets = [0, 96], sizes = [8, 32], strides = [1, 1]} : vector<8x128xf32> to vector<8x32xf32>
    %224 = arith.mulf %221, %186 : vector<8x32xf32>
    %225 = arith.mulf %220, %222 : vector<8x32xf32>
    %226 = arith.addf %224, %225 : vector<8x32xf32>
    %227 = math.tanh %226 : vector<8x32xf32>
    %228 = arith.mulf %223, %227 : vector<8x32xf32>
    %229 = arith.negf %213 : vector<8x128xf32>
    %230 = math.exp %229 : vector<8x128xf32>
    %cst_43 = arith.constant 1.000000e+00 : f32
    %231 = vector.broadcast %cst_43 : f32 to vector<8x128xf32>
    %232 = arith.addf %231, %230 : vector<8x128xf32>
    %233 = arith.divf %231, %232 : vector<8x128xf32>
    %234 = math.tanh %213 : vector<8x128xf32>
    %235 = vector.extract_strided_slice %233 {offsets = [0, 0], sizes = [8, 32], strides = [1, 1]} : vector<8x128xf32> to vector<8x32xf32>
    %236 = vector.extract_strided_slice %233 {offsets = [0, 32], sizes = [8, 32], strides = [1, 1]} : vector<8x128xf32> to vector<8x32xf32>
    %237 = vector.extract_strided_slice %234 {offsets = [0, 64], sizes = [8, 32], strides = [1, 1]} : vector<8x128xf32> to vector<8x32xf32>
    %238 = vector.extract_strided_slice %233 {offsets = [0, 96], sizes = [8, 32], strides = [1, 1]} : vector<8x128xf32> to vector<8x32xf32>
    %239 = arith.mulf %236, %201 : vector<8x32xf32>
    %240 = arith.mulf %235, %237 : vector<8x32xf32>
    %241 = arith.addf %239, %240 : vector<8x32xf32>
    %242 = math.tanh %241 : vector<8x32xf32>
    %243 = arith.mulf %238, %242 : vector<8x32xf32>
    %c40_44 = arith.constant 40 : index
    %c0_45 = arith.constant 0 : index
    %244 = vector.load %arg15[%c40_44, %c0_45] : memref<64x64xf32, #tpu.memory_space<vmem>>, vector<8x32xf32>
    tpu.vector_store %arg15[%c40_44, %c0_45], %228 {strides = array<i32>} : memref<64x64xf32, #tpu.memory_space<vmem>>, vector<8x32xf32>,
    %c16_46 = arith.constant 16 : index
    %c32_47 = arith.constant 32 : index
    %245 = vector.load %arg15[%c16_46, %c32_47] : memref<64x64xf32, #tpu.memory_space<vmem>>, vector<8x32xf32>
    tpu.vector_store %arg15[%c16_46, %c32_47], %243 {strides = array<i32>} : memref<64x64xf32, #tpu.memory_space<vmem>>, vector<8x32xf32>,
    %246 = vector.extract_strided_slice %15 {offsets = [48, 0], sizes = [8, 128], strides = [1, 1]} : vector<64x256xf32> to vector<8x128xf32>
    %247 = vector.extract_strided_slice %15 {offsets = [8, 128], sizes = [8, 128], strides = [1, 1]} : vector<64x256xf32> to vector<8x128xf32>
    %248 = arith.truncf %228 : vector<8x32xf32> to vector<8x32xbf16>
    %cst_48 = arith.constant dense<0.000000e+00> : vector<8x128xf32>
    %249 = tpu.matmul %248, %16, %cst_48 {dimension_numbers = #tpu.dot_dimension_numbers<[1], [0], [0], [1], [0, 0, 1, 1], [], []>} : vector<8x32xbf16>, vector<32x128xbf16>, vector<8x128xf32> -> vector<8x128xf32>
    %250 = arith.addf %246, %249 : vector<8x128xf32>
    %251 = arith.truncf %243 : vector<8x32xf32> to vector<8x32xbf16>
    %cst_49 = arith.constant dense<0.000000e+00> : vector<8x128xf32>
    %252 = tpu.matmul %251, %17, %cst_49 {dimension_numbers = #tpu.dot_dimension_numbers<[1], [0], [0], [1], [0, 0, 1, 1], [], []>} : vector<8x32xbf16>, vector<32x128xbf16>, vector<8x128xf32> -> vector<8x128xf32>
    %253 = arith.addf %247, %252 : vector<8x128xf32>
    %254 = arith.negf %250 : vector<8x128xf32>
    %255 = math.exp %254 : vector<8x128xf32>
    %cst_50 = arith.constant 1.000000e+00 : f32
    %256 = vector.broadcast %cst_50 : f32 to vector<8x128xf32>
    %257 = arith.addf %256, %255 : vector<8x128xf32>
    %258 = arith.divf %256, %257 : vector<8x128xf32>
    %259 = math.tanh %250 : vector<8x128xf32>
    %260 = vector.extract_strided_slice %258 {offsets = [0, 0], sizes = [8, 32], strides = [1, 1]} : vector<8x128xf32> to vector<8x32xf32>
    %261 = vector.extract_strided_slice %258 {offsets = [0, 32], sizes = [8, 32], strides = [1, 1]} : vector<8x128xf32> to vector<8x32xf32>
    %262 = vector.extract_strided_slice %259 {offsets = [0, 64], sizes = [8, 32], strides = [1, 1]} : vector<8x128xf32> to vector<8x32xf32>
    %263 = vector.extract_strided_slice %258 {offsets = [0, 96], sizes = [8, 32], strides = [1, 1]} : vector<8x128xf32> to vector<8x32xf32>
    %264 = arith.mulf %261, %226 : vector<8x32xf32>
    %265 = arith.mulf %260, %262 : vector<8x32xf32>
    %266 = arith.addf %264, %265 : vector<8x32xf32>
    %267 = math.tanh %266 : vector<8x32xf32>
    %268 = arith.mulf %263, %267 : vector<8x32xf32>
    %269 = arith.negf %253 : vector<8x128xf32>
    %270 = math.exp %269 : vector<8x128xf32>
    %cst_51 = arith.constant 1.000000e+00 : f32
    %271 = vector.broadcast %cst_51 : f32 to vector<8x128xf32>
    %272 = arith.addf %271, %270 : vector<8x128xf32>
    %273 = arith.divf %271, %272 : vector<8x128xf32>
    %274 = math.tanh %253 : vector<8x128xf32>
    %275 = vector.extract_strided_slice %273 {offsets = [0, 0], sizes = [8, 32], strides = [1, 1]} : vector<8x128xf32> to vector<8x32xf32>
    %276 = vector.extract_strided_slice %273 {offsets = [0, 32], sizes = [8, 32], strides = [1, 1]} : vector<8x128xf32> to vector<8x32xf32>
    %277 = vector.extract_strided_slice %274 {offsets = [0, 64], sizes = [8, 32], strides = [1, 1]} : vector<8x128xf32> to vector<8x32xf32>
    %278 = vector.extract_strided_slice %273 {offsets = [0, 96], sizes = [8, 32], strides = [1, 1]} : vector<8x128xf32> to vector<8x32xf32>
    %279 = arith.mulf %276, %241 : vector<8x32xf32>
    %280 = arith.mulf %275, %277 : vector<8x32xf32>
    %281 = arith.addf %279, %280 : vector<8x32xf32>
    %282 = math.tanh %281 : vector<8x32xf32>
    %283 = arith.mulf %278, %282 : vector<8x32xf32>
    %c48_52 = arith.constant 48 : index
    %c0_53 = arith.constant 0 : index
    %284 = vector.load %arg15[%c48_52, %c0_53] : memref<64x64xf32, #tpu.memory_space<vmem>>, vector<8x32xf32>
    tpu.vector_store %arg15[%c48_52, %c0_53], %268 {strides = array<i32>} : memref<64x64xf32, #tpu.memory_space<vmem>>, vector<8x32xf32>,
    %c8_54 = arith.constant 8 : index
    %c32_55 = arith.constant 32 : index
    %285 = vector.load %arg15[%c8_54, %c32_55] : memref<64x64xf32, #tpu.memory_space<vmem>>, vector<8x32xf32>
    tpu.vector_store %arg15[%c8_54, %c32_55], %283 {strides = array<i32>} : memref<64x64xf32, #tpu.memory_space<vmem>>, vector<8x32xf32>,
    %286 = vector.extract_strided_slice %15 {offsets = [56, 0], sizes = [8, 128], strides = [1, 1]} : vector<64x256xf32> to vector<8x128xf32>
    %287 = vector.extract_strided_slice %15 {offsets = [0, 128], sizes = [8, 128], strides = [1, 1]} : vector<64x256xf32> to vector<8x128xf32>
    %288 = arith.truncf %268 : vector<8x32xf32> to vector<8x32xbf16>
    %cst_56 = arith.constant dense<0.000000e+00> : vector<8x128xf32>
    %289 = tpu.matmul %288, %16, %cst_56 {dimension_numbers = #tpu.dot_dimension_numbers<[1], [0], [0], [1], [0, 0, 1, 1], [], []>} : vector<8x32xbf16>, vector<32x128xbf16>, vector<8x128xf32> -> vector<8x128xf32>
    %290 = arith.addf %286, %289 : vector<8x128xf32>
    %291 = arith.truncf %283 : vector<8x32xf32> to vector<8x32xbf16>
    %cst_57 = arith.constant dense<0.000000e+00> : vector<8x128xf32>
    %292 = tpu.matmul %291, %17, %cst_57 {dimension_numbers = #tpu.dot_dimension_numbers<[1], [0], [0], [1], [0, 0, 1, 1], [], []>} : vector<8x32xbf16>, vector<32x128xbf16>, vector<8x128xf32> -> vector<8x128xf32>
    %293 = arith.addf %287, %292 : vector<8x128xf32>
    %294 = arith.negf %290 : vector<8x128xf32>
    %295 = math.exp %294 : vector<8x128xf32>
    %cst_58 = arith.constant 1.000000e+00 : f32
    %296 = vector.broadcast %cst_58 : f32 to vector<8x128xf32>
    %297 = arith.addf %296, %295 : vector<8x128xf32>
    %298 = arith.divf %296, %297 : vector<8x128xf32>
    %299 = math.tanh %290 : vector<8x128xf32>
    %300 = vector.extract_strided_slice %298 {offsets = [0, 0], sizes = [8, 32], strides = [1, 1]} : vector<8x128xf32> to vector<8x32xf32>
    %301 = vector.extract_strided_slice %298 {offsets = [0, 32], sizes = [8, 32], strides = [1, 1]} : vector<8x128xf32> to vector<8x32xf32>
    %302 = vector.extract_strided_slice %299 {offsets = [0, 64], sizes = [8, 32], strides = [1, 1]} : vector<8x128xf32> to vector<8x32xf32>
    %303 = vector.extract_strided_slice %298 {offsets = [0, 96], sizes = [8, 32], strides = [1, 1]} : vector<8x128xf32> to vector<8x32xf32>
    %304 = arith.mulf %301, %266 : vector<8x32xf32>
    %305 = arith.mulf %300, %302 : vector<8x32xf32>
    %306 = arith.addf %304, %305 : vector<8x32xf32>
    %307 = math.tanh %306 : vector<8x32xf32>
    %308 = arith.mulf %303, %307 : vector<8x32xf32>
    %309 = arith.negf %293 : vector<8x128xf32>
    %310 = math.exp %309 : vector<8x128xf32>
    %cst_59 = arith.constant 1.000000e+00 : f32
    %311 = vector.broadcast %cst_59 : f32 to vector<8x128xf32>
    %312 = arith.addf %311, %310 : vector<8x128xf32>
    %313 = arith.divf %311, %312 : vector<8x128xf32>
    %314 = math.tanh %293 : vector<8x128xf32>
    %315 = vector.extract_strided_slice %313 {offsets = [0, 0], sizes = [8, 32], strides = [1, 1]} : vector<8x128xf32> to vector<8x32xf32>
    %316 = vector.extract_strided_slice %313 {offsets = [0, 32], sizes = [8, 32], strides = [1, 1]} : vector<8x128xf32> to vector<8x32xf32>
    %317 = vector.extract_strided_slice %314 {offsets = [0, 64], sizes = [8, 32], strides = [1, 1]} : vector<8x128xf32> to vector<8x32xf32>
    %318 = vector.extract_strided_slice %313 {offsets = [0, 96], sizes = [8, 32], strides = [1, 1]} : vector<8x128xf32> to vector<8x32xf32>
    %319 = arith.mulf %316, %281 : vector<8x32xf32>
    %320 = arith.mulf %315, %317 : vector<8x32xf32>
    %321 = arith.addf %319, %320 : vector<8x32xf32>
    %322 = math.tanh %321 : vector<8x32xf32>
    %323 = arith.mulf %318, %322 : vector<8x32xf32>
    %c56_60 = arith.constant 56 : index
    %c0_61 = arith.constant 0 : index
    %324 = vector.load %arg15[%c56_60, %c0_61] : memref<64x64xf32, #tpu.memory_space<vmem>>, vector<8x32xf32>
    tpu.vector_store %arg15[%c56_60, %c0_61], %308 {strides = array<i32>} : memref<64x64xf32, #tpu.memory_space<vmem>>, vector<8x32xf32>,
    %c0_62 = arith.constant 0 : index
    %c32_63 = arith.constant 32 : index
    %325 = vector.load %arg15[%c0_62, %c32_63] : memref<64x64xf32, #tpu.memory_space<vmem>>, vector<8x32xf32>
    tpu.vector_store %arg15[%c0_62, %c32_63], %323 {strides = array<i32>} : memref<64x64xf32, #tpu.memory_space<vmem>>, vector<8x32xf32>,
    %c0_i32_64 = arith.constant 0 : i32
    %326 = tpu.memref_slice %arg21[%c0_i32_64] : memref<5x!tpu.dma_semaphore, #tpu.memory_space<semaphore_mem>> -> memref<1x!tpu.dma_semaphore, #tpu.memory_space<semaphore_mem>>
    %327 = tpu.memref_squeeze %326 : memref<1x!tpu.dma_semaphore, #tpu.memory_space<semaphore_mem>> -> memref<!tpu.dma_semaphore, #tpu.memory_space<semaphore_mem>>
    tpu.wait_dma2 semaphore(%327 : memref<!tpu.dma_semaphore, #tpu.memory_space<semaphore_mem>>) src(%arg5 : memref<64x128xbf16, #tpu.memory_space<any>>) dst(%arg16 : memref<64x128xbf16, #tpu.memory_space<vmem>>)
    %c1_i32_65 = arith.constant 1 : i32
    %328 = tpu.memref_slice %arg21[%c1_i32_65] : memref<5x!tpu.dma_semaphore, #tpu.memory_space<semaphore_mem>> -> memref<1x!tpu.dma_semaphore, #tpu.memory_space<semaphore_mem>>
    %329 = tpu.memref_squeeze %328 : memref<1x!tpu.dma_semaphore, #tpu.memory_space<semaphore_mem>> -> memref<!tpu.dma_semaphore, #tpu.memory_space<semaphore_mem>>
    tpu.wait_dma2 semaphore(%329 : memref<!tpu.dma_semaphore, #tpu.memory_space<semaphore_mem>>) src(%arg6 : memref<32x128xbf16, #tpu.memory_space<any>>) dst(%arg17 : memref<32x128xbf16, #tpu.memory_space<vmem>>)
    %c2_i32_66 = arith.constant 2 : i32
    %330 = tpu.memref_slice %arg21[%c2_i32_66] : memref<5x!tpu.dma_semaphore, #tpu.memory_space<semaphore_mem>> -> memref<1x!tpu.dma_semaphore, #tpu.memory_space<semaphore_mem>>
    %331 = tpu.memref_squeeze %330 : memref<1x!tpu.dma_semaphore, #tpu.memory_space<semaphore_mem>> -> memref<!tpu.dma_semaphore, #tpu.memory_space<semaphore_mem>>
    tpu.wait_dma2 semaphore(%331 : memref<!tpu.dma_semaphore, #tpu.memory_space<semaphore_mem>>) src(%arg8 : memref<64x128xbf16, #tpu.memory_space<any>>) dst(%arg18 : memref<64x128xbf16, #tpu.memory_space<vmem>>)
    %c3_i32_67 = arith.constant 3 : i32
    %332 = tpu.memref_slice %arg21[%c3_i32_67] : memref<5x!tpu.dma_semaphore, #tpu.memory_space<semaphore_mem>> -> memref<1x!tpu.dma_semaphore, #tpu.memory_space<semaphore_mem>>
    %333 = tpu.memref_squeeze %332 : memref<1x!tpu.dma_semaphore, #tpu.memory_space<semaphore_mem>> -> memref<!tpu.dma_semaphore, #tpu.memory_space<semaphore_mem>>
    tpu.wait_dma2 semaphore(%333 : memref<!tpu.dma_semaphore, #tpu.memory_space<semaphore_mem>>) src(%arg10 : memref<64x128xbf16, #tpu.memory_space<any>>) dst(%arg19 : memref<64x128xbf16, #tpu.memory_space<vmem>>)
    %c4_i32_68 = arith.constant 4 : i32
    %334 = tpu.memref_slice %arg21[%c4_i32_68] : memref<5x!tpu.dma_semaphore, #tpu.memory_space<semaphore_mem>> -> memref<1x!tpu.dma_semaphore, #tpu.memory_space<semaphore_mem>>
    %335 = tpu.memref_squeeze %334 : memref<1x!tpu.dma_semaphore, #tpu.memory_space<semaphore_mem>> -> memref<!tpu.dma_semaphore, #tpu.memory_space<semaphore_mem>>
    tpu.wait_dma2 semaphore(%335 : memref<!tpu.dma_semaphore, #tpu.memory_space<semaphore_mem>>) src(%arg12 : memref<128x128xbf16, #tpu.memory_space<any>>) dst(%arg20 : memref<128x128xbf16, #tpu.memory_space<vmem>>)
    %c0_69 = arith.constant 0 : index
    %c0_70 = arith.constant 0 : index
    %336 = vector.load %arg15[%c0_69, %c0_70] : memref<64x64xf32, #tpu.memory_space<vmem>>, vector<64x64xf32>
    %337 = arith.truncf %336 : vector<64x64xf32> to vector<64x64xbf16>
    %c0_71 = arith.constant 0 : index
    %c0_72 = arith.constant 0 : index
    %338 = vector.load %arg16[%c0_71, %c0_72] : memref<64x128xbf16, #tpu.memory_space<vmem>>, vector<64x128xbf16>
    %cst_73 = arith.constant dense<0.000000e+00> : vector<64x128xf32>
    %339 = tpu.matmul %337, %338, %cst_73 {dimension_numbers = #tpu.dot_dimension_numbers<[1], [0], [0], [1], [0, 0, 1, 1], [], []>} : vector<64x64xbf16>, vector<64x128xbf16>, vector<64x128xf32> -> vector<64x128xf32>
    %c0_74 = arith.constant 0 : index
    %c0_75 = arith.constant 0 : index
    %340 = vector.load %arg7[%c0_74, %c0_75] : memref<1x128xf32, #tpu.memory_space<vmem>>, vector<1x128xf32>
    %341 = vector.broadcast %340 : vector<1x128xf32> to vector<64x128xf32>
    %342 = arith.addf %339, %341 : vector<64x128xf32>
    %c0_76 = arith.constant 0 : index
    %c0_77 = arith.constant 0 : index
    %343 = vector.load %arg17[%c0_76, %c0_77] : memref<32x128xbf16, #tpu.memory_space<vmem>>, vector<32x128xbf16>
    %344 = vector.extract_strided_slice %342 {offsets = [0, 0], sizes = [8, 128], strides = [1, 1]} : vector<64x128xf32> to vector<8x128xf32>
    %345 = arith.negf %344 : vector<8x128xf32>
    %346 = math.exp %345 : vector<8x128xf32>
    %cst_78 = arith.constant 1.000000e+00 : f32
    %347 = vector.broadcast %cst_78 : f32 to vector<8x128xf32>
    %348 = arith.addf %347, %346 : vector<8x128xf32>
    %349 = arith.divf %347, %348 : vector<8x128xf32>
    %350 = math.tanh %344 : vector<8x128xf32>
    %351 = vector.extract_strided_slice %349 {offsets = [0, 0], sizes = [8, 32], strides = [1, 1]} : vector<8x128xf32> to vector<8x32xf32>
    %352 = vector.extract_strided_slice %350 {offsets = [0, 64], sizes = [8, 32], strides = [1, 1]} : vector<8x128xf32> to vector<8x32xf32>
    %353 = vector.extract_strided_slice %349 {offsets = [0, 96], sizes = [8, 32], strides = [1, 1]} : vector<8x128xf32> to vector<8x32xf32>
    %354 = arith.mulf %351, %352 : vector<8x32xf32>
    %355 = math.tanh %354 : vector<8x32xf32>
    %356 = arith.mulf %353, %355 : vector<8x32xf32>
    %357 = vector.extract_strided_slice %342 {offsets = [8, 0], sizes = [8, 128], strides = [1, 1]} : vector<64x128xf32> to vector<8x128xf32>
    %358 = arith.truncf %356 : vector<8x32xf32> to vector<8x32xbf16>
    %cst_79 = arith.constant dense<0.000000e+00> : vector<8x128xf32>
    %359 = tpu.matmul %358, %343, %cst_79 {dimension_numbers = #tpu.dot_dimension_numbers<[1], [0], [0], [1], [0, 0, 1, 1], [], []>} : vector<8x32xbf16>, vector<32x128xbf16>, vector<8x128xf32> -> vector<8x128xf32>
    %360 = arith.addf %357, %359 : vector<8x128xf32>
    %361 = arith.negf %360 : vector<8x128xf32>
    %362 = math.exp %361 : vector<8x128xf32>
    %cst_80 = arith.constant 1.000000e+00 : f32
    %363 = vector.broadcast %cst_80 : f32 to vector<8x128xf32>
    %364 = arith.addf %363, %362 : vector<8x128xf32>
    %365 = arith.divf %363, %364 : vector<8x128xf32>
    %366 = math.tanh %360 : vector<8x128xf32>
    %367 = vector.extract_strided_slice %365 {offsets = [0, 0], sizes = [8, 32], strides = [1, 1]} : vector<8x128xf32> to vector<8x32xf32>
    %368 = vector.extract_strided_slice %365 {offsets = [0, 32], sizes = [8, 32], strides = [1, 1]} : vector<8x128xf32> to vector<8x32xf32>
    %369 = vector.extract_strided_slice %366 {offsets = [0, 64], sizes = [8, 32], strides = [1, 1]} : vector<8x128xf32> to vector<8x32xf32>
    %370 = vector.extract_strided_slice %365 {offsets = [0, 96], sizes = [8, 32], strides = [1, 1]} : vector<8x128xf32> to vector<8x32xf32>
    %371 = arith.mulf %368, %354 : vector<8x32xf32>
    %372 = arith.mulf %367, %369 : vector<8x32xf32>
    %373 = arith.addf %371, %372 : vector<8x32xf32>
    %374 = math.tanh %373 : vector<8x32xf32>
    %375 = arith.mulf %370, %374 : vector<8x32xf32>
    %376 = vector.extract_strided_slice %342 {offsets = [16, 0], sizes = [8, 128], strides = [1, 1]} : vector<64x128xf32> to vector<8x128xf32>
    %377 = arith.truncf %375 : vector<8x32xf32> to vector<8x32xbf16>
    %cst_81 = arith.constant dense<0.000000e+00> : vector<8x128xf32>
    %378 = tpu.matmul %377, %343, %cst_81 {dimension_numbers = #tpu.dot_dimension_numbers<[1], [0], [0], [1], [0, 0, 1, 1], [], []>} : vector<8x32xbf16>, vector<32x128xbf16>, vector<8x128xf32> -> vector<8x128xf32>
    %379 = arith.addf %376, %378 : vector<8x128xf32>
    %380 = arith.negf %379 : vector<8x128xf32>
    %381 = math.exp %380 : vector<8x128xf32>
    %cst_82 = arith.constant 1.000000e+00 : f32
    %382 = vector.broadcast %cst_82 : f32 to vector<8x128xf32>
    %383 = arith.addf %382, %381 : vector<8x128xf32>
    %384 = arith.divf %382, %383 : vector<8x128xf32>
    %385 = math.tanh %379 : vector<8x128xf32>
    %386 = vector.extract_strided_slice %384 {offsets = [0, 0], sizes = [8, 32], strides = [1, 1]} : vector<8x128xf32> to vector<8x32xf32>
    %387 = vector.extract_strided_slice %384 {offsets = [0, 32], sizes = [8, 32], strides = [1, 1]} : vector<8x128xf32> to vector<8x32xf32>
    %388 = vector.extract_strided_slice %385 {offsets = [0, 64], sizes = [8, 32], strides = [1, 1]} : vector<8x128xf32> to vector<8x32xf32>
    %389 = vector.extract_strided_slice %384 {offsets = [0, 96], sizes = [8, 32], strides = [1, 1]} : vector<8x128xf32> to vector<8x32xf32>
    %390 = arith.mulf %387, %373 : vector<8x32xf32>
    %391 = arith.mulf %386, %388 : vector<8x32xf32>
    %392 = arith.addf %390, %391 : vector<8x32xf32>
    %393 = math.tanh %392 : vector<8x32xf32>
    %394 = arith.mulf %389, %393 : vector<8x32xf32>
    %395 = vector.extract_strided_slice %342 {offsets = [24, 0], sizes = [8, 128], strides = [1, 1]} : vector<64x128xf32> to vector<8x128xf32>
    %396 = arith.truncf %394 : vector<8x32xf32> to vector<8x32xbf16>
    %cst_83 = arith.constant dense<0.000000e+00> : vector<8x128xf32>
    %397 = tpu.matmul %396, %343, %cst_83 {dimension_numbers = #tpu.dot_dimension_numbers<[1], [0], [0], [1], [0, 0, 1, 1], [], []>} : vector<8x32xbf16>, vector<32x128xbf16>, vector<8x128xf32> -> vector<8x128xf32>
    %398 = arith.addf %395, %397 : vector<8x128xf32>
    %399 = arith.negf %398 : vector<8x128xf32>
    %400 = math.exp %399 : vector<8x128xf32>
    %cst_84 = arith.constant 1.000000e+00 : f32
    %401 = vector.broadcast %cst_84 : f32 to vector<8x128xf32>
    %402 = arith.addf %401, %400 : vector<8x128xf32>
    %403 = arith.divf %401, %402 : vector<8x128xf32>
    %404 = math.tanh %398 : vector<8x128xf32>
    %405 = vector.extract_strided_slice %403 {offsets = [0, 0], sizes = [8, 32], strides = [1, 1]} : vector<8x128xf32> to vector<8x32xf32>
    %406 = vector.extract_strided_slice %403 {offsets = [0, 32], sizes = [8, 32], strides = [1, 1]} : vector<8x128xf32> to vector<8x32xf32>
    %407 = vector.extract_strided_slice %404 {offsets = [0, 64], sizes = [8, 32], strides = [1, 1]} : vector<8x128xf32> to vector<8x32xf32>
    %408 = vector.extract_strided_slice %403 {offsets = [0, 96], sizes = [8, 32], strides = [1, 1]} : vector<8x128xf32> to vector<8x32xf32>
    %409 = arith.mulf %406, %392 : vector<8x32xf32>
    %410 = arith.mulf %405, %407 : vector<8x32xf32>
    %411 = arith.addf %409, %410 : vector<8x32xf32>
    %412 = math.tanh %411 : vector<8x32xf32>
    %413 = arith.mulf %408, %412 : vector<8x32xf32>
    %414 = vector.extract_strided_slice %342 {offsets = [32, 0], sizes = [8, 128], strides = [1, 1]} : vector<64x128xf32> to vector<8x128xf32>
    %415 = arith.truncf %413 : vector<8x32xf32> to vector<8x32xbf16>
    %cst_85 = arith.constant dense<0.000000e+00> : vector<8x128xf32>
    %416 = tpu.matmul %415, %343, %cst_85 {dimension_numbers = #tpu.dot_dimension_numbers<[1], [0], [0], [1], [0, 0, 1, 1], [], []>} : vector<8x32xbf16>, vector<32x128xbf16>, vector<8x128xf32> -> vector<8x128xf32>
    %417 = arith.addf %414, %416 : vector<8x128xf32>
    %418 = arith.negf %417 : vector<8x128xf32>
    %419 = math.exp %418 : vector<8x128xf32>
    %cst_86 = arith.constant 1.000000e+00 : f32
    %420 = vector.broadcast %cst_86 : f32 to vector<8x128xf32>
    %421 = arith.addf %420, %419 : vector<8x128xf32>
    %422 = arith.divf %420, %421 : vector<8x128xf32>
    %423 = math.tanh %417 : vector<8x128xf32>
    %424 = vector.extract_strided_slice %422 {offsets = [0, 0], sizes = [8, 32], strides = [1, 1]} : vector<8x128xf32> to vector<8x32xf32>
    %425 = vector.extract_strided_slice %422 {offsets = [0, 32], sizes = [8, 32], strides = [1, 1]} : vector<8x128xf32> to vector<8x32xf32>
    %426 = vector.extract_strided_slice %423 {offsets = [0, 64], sizes = [8, 32], strides = [1, 1]} : vector<8x128xf32> to vector<8x32xf32>
    %427 = vector.extract_strided_slice %422 {offsets = [0, 96], sizes = [8, 32], strides = [1, 1]} : vector<8x128xf32> to vector<8x32xf32>
    %428 = arith.mulf %425, %411 : vector<8x32xf32>
    %429 = arith.mulf %424, %426 : vector<8x32xf32>
    %430 = arith.addf %428, %429 : vector<8x32xf32>
    %431 = math.tanh %430 : vector<8x32xf32>
    %432 = arith.mulf %427, %431 : vector<8x32xf32>
    %433 = vector.extract_strided_slice %342 {offsets = [40, 0], sizes = [8, 128], strides = [1, 1]} : vector<64x128xf32> to vector<8x128xf32>
    %434 = arith.truncf %432 : vector<8x32xf32> to vector<8x32xbf16>
    %cst_87 = arith.constant dense<0.000000e+00> : vector<8x128xf32>
    %435 = tpu.matmul %434, %343, %cst_87 {dimension_numbers = #tpu.dot_dimension_numbers<[1], [0], [0], [1], [0, 0, 1, 1], [], []>} : vector<8x32xbf16>, vector<32x128xbf16>, vector<8x128xf32> -> vector<8x128xf32>
    %436 = arith.addf %433, %435 : vector<8x128xf32>
    %437 = arith.negf %436 : vector<8x128xf32>
    %438 = math.exp %437 : vector<8x128xf32>
    %cst_88 = arith.constant 1.000000e+00 : f32
    %439 = vector.broadcast %cst_88 : f32 to vector<8x128xf32>
    %440 = arith.addf %439, %438 : vector<8x128xf32>
    %441 = arith.divf %439, %440 : vector<8x128xf32>
    %442 = math.tanh %436 : vector<8x128xf32>
    %443 = vector.extract_strided_slice %441 {offsets = [0, 0], sizes = [8, 32], strides = [1, 1]} : vector<8x128xf32> to vector<8x32xf32>
    %444 = vector.extract_strided_slice %441 {offsets = [0, 32], sizes = [8, 32], strides = [1, 1]} : vector<8x128xf32> to vector<8x32xf32>
    %445 = vector.extract_strided_slice %442 {offsets = [0, 64], sizes = [8, 32], strides = [1, 1]} : vector<8x128xf32> to vector<8x32xf32>
    %446 = vector.extract_strided_slice %441 {offsets = [0, 96], sizes = [8, 32], strides = [1, 1]} : vector<8x128xf32> to vector<8x32xf32>
    %447 = arith.mulf %444, %430 : vector<8x32xf32>
    %448 = arith.mulf %443, %445 : vector<8x32xf32>
    %449 = arith.addf %447, %448 : vector<8x32xf32>
    %450 = math.tanh %449 : vector<8x32xf32>
    %451 = arith.mulf %446, %450 : vector<8x32xf32>
    %452 = vector.extract_strided_slice %342 {offsets = [48, 0], sizes = [8, 128], strides = [1, 1]} : vector<64x128xf32> to vector<8x128xf32>
    %453 = arith.truncf %451 : vector<8x32xf32> to vector<8x32xbf16>
    %cst_89 = arith.constant dense<0.000000e+00> : vector<8x128xf32>
    %454 = tpu.matmul %453, %343, %cst_89 {dimension_numbers = #tpu.dot_dimension_numbers<[1], [0], [0], [1], [0, 0, 1, 1], [], []>} : vector<8x32xbf16>, vector<32x128xbf16>, vector<8x128xf32> -> vector<8x128xf32>
    %455 = arith.addf %452, %454 : vector<8x128xf32>
    %456 = arith.negf %455 : vector<8x128xf32>
    %457 = math.exp %456 : vector<8x128xf32>
    %cst_90 = arith.constant 1.000000e+00 : f32
    %458 = vector.broadcast %cst_90 : f32 to vector<8x128xf32>
    %459 = arith.addf %458, %457 : vector<8x128xf32>
    %460 = arith.divf %458, %459 : vector<8x128xf32>
    %461 = math.tanh %455 : vector<8x128xf32>
    %462 = vector.extract_strided_slice %460 {offsets = [0, 0], sizes = [8, 32], strides = [1, 1]} : vector<8x128xf32> to vector<8x32xf32>
    %463 = vector.extract_strided_slice %460 {offsets = [0, 32], sizes = [8, 32], strides = [1, 1]} : vector<8x128xf32> to vector<8x32xf32>
    %464 = vector.extract_strided_slice %461 {offsets = [0, 64], sizes = [8, 32], strides = [1, 1]} : vector<8x128xf32> to vector<8x32xf32>
    %465 = vector.extract_strided_slice %460 {offsets = [0, 96], sizes = [8, 32], strides = [1, 1]} : vector<8x128xf32> to vector<8x32xf32>
    %466 = arith.mulf %463, %449 : vector<8x32xf32>
    %467 = arith.mulf %462, %464 : vector<8x32xf32>
    %468 = arith.addf %466, %467 : vector<8x32xf32>
    %469 = math.tanh %468 : vector<8x32xf32>
    %470 = arith.mulf %465, %469 : vector<8x32xf32>
    %471 = vector.extract_strided_slice %342 {offsets = [56, 0], sizes = [8, 128], strides = [1, 1]} : vector<64x128xf32> to vector<8x128xf32>
    %472 = arith.truncf %470 : vector<8x32xf32> to vector<8x32xbf16>
    %cst_91 = arith.constant dense<0.000000e+00> : vector<8x128xf32>
    %473 = tpu.matmul %472, %343, %cst_91 {dimension_numbers = #tpu.dot_dimension_numbers<[1], [0], [0], [1], [0, 0, 1, 1], [], []>} : vector<8x32xbf16>, vector<32x128xbf16>, vector<8x128xf32> -> vector<8x128xf32>
    %474 = arith.addf %471, %473 : vector<8x128xf32>
    %475 = arith.negf %474 : vector<8x128xf32>
    %476 = math.exp %475 : vector<8x128xf32>
    %cst_92 = arith.constant 1.000000e+00 : f32
    %477 = vector.broadcast %cst_92 : f32 to vector<8x128xf32>
    %478 = arith.addf %477, %476 : vector<8x128xf32>
    %479 = arith.divf %477, %478 : vector<8x128xf32>
    %480 = math.tanh %474 : vector<8x128xf32>
    %481 = vector.extract_strided_slice %479 {offsets = [0, 0], sizes = [8, 32], strides = [1, 1]} : vector<8x128xf32> to vector<8x32xf32>
    %482 = vector.extract_strided_slice %479 {offsets = [0, 32], sizes = [8, 32], strides = [1, 1]} : vector<8x128xf32> to vector<8x32xf32>
    %483 = vector.extract_strided_slice %480 {offsets = [0, 64], sizes = [8, 32], strides = [1, 1]} : vector<8x128xf32> to vector<8x32xf32>
    %484 = vector.extract_strided_slice %479 {offsets = [0, 96], sizes = [8, 32], strides = [1, 1]} : vector<8x128xf32> to vector<8x32xf32>
    %485 = arith.mulf %482, %468 : vector<8x32xf32>
    %486 = arith.mulf %481, %483 : vector<8x32xf32>
    %487 = arith.addf %485, %486 : vector<8x32xf32>
    %488 = math.tanh %487 : vector<8x32xf32>
    %489 = arith.mulf %484, %488 : vector<8x32xf32>
    %490 = vector.extract_strided_slice %336 {offsets = [56, 0], sizes = [8, 64], strides = [1, 1]} : vector<64x64xf32> to vector<8x64xf32>
    %491 = arith.truncf %490 : vector<8x64xf32> to vector<8x64xbf16>
    %c0_93 = arith.constant 0 : index
    %c0_94 = arith.constant 0 : index
    %492 = vector.load %arg18[%c0_93, %c0_94] : memref<64x128xbf16, #tpu.memory_space<vmem>>, vector<64x128xbf16>
    %cst_95 = arith.constant dense<0.000000e+00> : vector<8x128xf32>
    %493 = tpu.matmul %491, %492, %cst_95 {dimension_numbers = #tpu.dot_dimension_numbers<[1], [0], [0], [1], [0, 0, 1, 1], [], []>} : vector<8x64xbf16>, vector<64x128xbf16>, vector<8x128xf32> -> vector<8x128xf32>
    %c0_96 = arith.constant 0 : index
    %c0_97 = arith.constant 0 : index
    %494 = vector.load %arg9[%c0_96, %c0_97] : memref<1x128xf32, #tpu.memory_space<vmem>>, vector<1x128xf32>
    %495 = vector.broadcast %494 : vector<1x128xf32> to vector<8x128xf32>
    %496 = arith.addf %493, %495 : vector<8x128xf32>
    %497 = arith.negf %496 : vector<8x128xf32>
    %498 = math.exp %497 : vector<8x128xf32>
    %cst_98 = arith.constant 1.000000e+00 : f32
    %499 = vector.broadcast %cst_98 : f32 to vector<8x128xf32>
    %500 = arith.addf %499, %498 : vector<8x128xf32>
    %501 = arith.divf %499, %500 : vector<8x128xf32>
    %502 = math.tanh %496 : vector<8x128xf32>
    %503 = vector.extract_strided_slice %501 {offsets = [0, 0], sizes = [8, 32], strides = [1, 1]} : vector<8x128xf32> to vector<8x32xf32>
    %504 = vector.extract_strided_slice %502 {offsets = [0, 64], sizes = [8, 32], strides = [1, 1]} : vector<8x128xf32> to vector<8x32xf32>
    %505 = vector.extract_strided_slice %501 {offsets = [0, 96], sizes = [8, 32], strides = [1, 1]} : vector<8x128xf32> to vector<8x32xf32>
    %506 = arith.mulf %503, %504 : vector<8x32xf32>
    %507 = math.tanh %506 : vector<8x32xf32>
    %508 = arith.mulf %505, %507 : vector<8x32xf32>
    %509 = tpu.concatenate %489, %508 in 1 : vector<8x32xf32>, vector<8x32xf32> -> vector<8x64xf32>
    %510 = arith.truncf %509 : vector<8x64xf32> to vector<8x64xbf16>
    %c0_99 = arith.constant 0 : index
    %c0_100 = arith.constant 0 : index
    %511 = vector.load %arg19[%c0_99, %c0_100] : memref<64x128xbf16, #tpu.memory_space<vmem>>, vector<64x128xbf16>
    %cst_101 = arith.constant dense<0.000000e+00> : vector<8x128xf32>
    %512 = tpu.matmul %510, %511, %cst_101 {dimension_numbers = #tpu.dot_dimension_numbers<[1], [0], [0], [1], [0, 0, 1, 1], [], []>} : vector<8x64xbf16>, vector<64x128xbf16>, vector<8x128xf32> -> vector<8x128xf32>
    %c0_102 = arith.constant 0 : index
    %c0_103 = arith.constant 0 : index
    %513 = vector.load %arg11[%c0_102, %c0_103] : memref<1x128xf32, #tpu.memory_space<vmem>>, vector<1x128xf32>
    %514 = vector.broadcast %513 : vector<1x128xf32> to vector<8x128xf32>
    %515 = arith.addf %512, %514 : vector<8x128xf32>
    %cst_104 = arith.constant 0.000000e+00 : f32
    %516 = vector.broadcast %cst_104 : f32 to vector<8x128xf32>
    %517 = arith.maximumf %515, %516 : vector<8x128xf32>
    %518 = arith.truncf %517 : vector<8x128xf32> to vector<8x128xbf16>
    %c0_105 = arith.constant 0 : index
    %c0_106 = arith.constant 0 : index
    %519 = vector.load %arg20[%c0_105, %c0_106] : memref<128x128xbf16, #tpu.memory_space<vmem>>, vector<128x128xbf16>
    %cst_107 = arith.constant dense<0.000000e+00> : vector<8x128xf32>
    %520 = tpu.matmul %518, %519, %cst_107 {dimension_numbers = #tpu.dot_dimension_numbers<[1], [0], [0], [1], [0, 0, 1, 1], [], []>} : vector<8x128xbf16>, vector<128x128xbf16>, vector<8x128xf32> -> vector<8x128xf32>
    %c0_108 = arith.constant 0 : index
    %c0_109 = arith.constant 0 : index
    %521 = vector.load %arg13[%c0_108, %c0_109] : memref<1x128xf32, #tpu.memory_space<vmem>>, vector<1x128xf32>
    %522 = vector.broadcast %521 : vector<1x128xf32> to vector<8x128xf32>
    %523 = arith.addf %520, %522 : vector<8x128xf32>
    %c0_110 = arith.constant 0 : index
    %c0_111 = arith.constant 0 : index
    %524 = vector.load %arg14[%c0_110, %c0_111] : memref<8x128xf32, #tpu.memory_space<vmem>>, vector<8x128xf32>
    tpu.vector_store %arg14[%c0_110, %c0_111], %523 {strides = array<i32>} : memref<8x128xf32, #tpu.memory_space<vmem>>, vector<8x128xf32>,
    return
  }
}

</mosaic_0001>

<bundles_post_ra>
// kernel: tpu_custom_call.1
= control target key start
LH: loop header
LB: loop body
LE: loop exit
PB: predicated region body
PF: predicated region fallthrough
CT: control target
= control target key end

     0   :  { %19 = vsyncpa [#allocation10], 0  ;;  %s4040_s0 = inlined_call_operand.hbm [shape: bf16[64,64], index: 0, kind: input, shape index: {}]   ;;  %s4041_s1 = inlined_call_operand.hbm [shape: bf16[64,256], index: 1, kind: input, shape index: {}]   ;;  %s4042_s2 = inlined_call_operand.hbm [shape: bf16[32,128], index: 2, kind: input, shape index: {}]   ;;  %s4043_s3 = inlined_call_operand.hbm [shape: bf16[32,128], index: 3, kind: input, shape index: {}]   ;;  %s4044_s4 = inlined_call_operand.vmem [shape: f32[1,256], index: 4, kind: input, shape index: {}]   ;;  %s4045_s5 = inlined_call_operand.hbm [shape: bf16[64,128], index: 5, kind: input, shape index: {}]   ;;  %s4046_s6 = inlined_call_operand.hbm [shape: bf16[32,128], index: 6, kind: input, shape index: {}]   ;;  %s4047_s7 = inlined_call_operand.vmem [shape: f32[1,128], index: 7, kind: input, shape index: {}]   ;;  %s4048_s8 = inlined_call_operand.hbm [shape: bf16[64,128], index: 8, kind: input, shape index: {}]   ;;  %s4049_s9 = inlined_call_operand.vmem [shape: f32[1,128], index: 9, kind: input, shape index: {}]   ;;  %s4050_s10 = inlined_call_operand.vmem [shape: bf16[64,128], index: 10, kind: input, shape index: {}]   ;;  %s4051_s11 = inlined_call_operand.vmem [shape: f32[1,128], index: 11, kind: input, shape index: {}]   ;;  %s4052_s12 = inlined_call_operand.hbm [shape: bf16[128,128], index: 12, kind: input, shape index: {}]   ;;  %s4053_s13 = inlined_call_operand.vmem [shape: f32[1,128], index: 13, kind: input, shape index: {}]   ;;  %s4054_s14 = inlined_call_operand.hbm [shape: f32[8,128], index: 14, kind: output, shape index: {}]  }
   0x1   :  { %20 = vsyncpa [#allocation13], 0 }
   0x2   :  { %21 = vsyncpa [#allocation16], 0 }
   0x3   :  { %22 = vsyncpa [#allocation11], 0  ;;  %s3281_s29 = smov [#allocation12]   ;;  %s3065_s17 = scalar_lea.hbm %s4041_s1, 1024 }
   0x4   :  { %s40_s30 = sshll.u32 %s3281_s29, 4  ;;  %p3066_p0 = scmp.ne.s32.totalorder %s4041_s1, %s3065_s17  ;;  %s41_s30 = int_to_ptr.vmem [resolvable:$true] %s40_s30 }
   0x5   :  { %p3069_p1 = scmp.lt.u32.totalorder %s3065_s17, %s4041_s1 }
   0x7   :  { %p3071_p2 = pnand %p3069_p1, %p3066_p0 }
   0x9   :  { %3074 = shalt.err (!%p3071_p2)
}
   0xa   :  { %s3075_s22 = scalar_lea.vmem %s41_s30, 1024  ;;  %p3080_p4 = scmp.lt.s32.totalorder %s41_s30, %s41_s30 }
   0xb   :  { %p3076_p3 = scmp.ne.s32.totalorder %s41_s30, %s3075_s22  ;;  %p3081_p5 = scmp.lt.s32.totalorder %s3075_s22, %s3075_s22 }
   0xd   :  { %p3082_p6 = por %p3081_p5, %p3080_p4 }
   0xf   :  { %p3083_p7 = pnand %p3082_p6, %p3076_p3 }
  0x11   :  { %3086 = shalt.err (!%p3083_p7)
}
  0x12   :  { %s3282_s23 = smov 128   ;;  %s3283_s24 = smov 8  }
  0x13   :  { %46 = dma.hbm_to_vmem [thread:$0]  %s4041_s1, 1024, %s41_s30, [#allocation13], %s3282_s23, %s3282_s23, %s3283_s24  }
  0x14   :  { %s3284_s27 = smov [#allocation9]   ;;  %s3087_s16 = scalar_lea.hbm %s4040_s0, 512 }
  0x15   :  { %s28_s28 = sshll.u32 %s3284_s27, 4  ;;  %p3088_p8 = scmp.ne.s32.totalorder %s4040_s0, %s3087_s16  ;;  %s29_s28 = int_to_ptr.vmem [resolvable:$true] %s28_s28 }
  0x16   :  { %p3091_p9 = scmp.lt.u32.totalorder %s3087_s16, %s4040_s0 }
  0x18   :  { %p3093_p10 = pnand %p3091_p9, %p3088_p8 }
  0x1a   :  { %3096 = shalt.err (!%p3093_p10)
}
  0x1b   :  { %s3097_s21 = scalar_lea.vmem %s29_s28, 512  ;;  %p3102_p12 = scmp.lt.s32.totalorder %s29_s28, %s29_s28 }
  0x1c   :  { %p3098_p11 = scmp.ne.s32.totalorder %s29_s28, %s3097_s21  ;;  %p3103_p13 = scmp.lt.s32.totalorder %s3097_s21, %s3097_s21 }
  0x1e   :  { %p3104_p0 = por %p3103_p13, %p3102_p12 }
  0x20   :  { %p3105_p1 = pnand %p3104_p0, %p3098_p11 }
  0x22   :  { %3108 = shalt.err (!%p3105_p1)
}
  0x23   :  { %s3285_s1 = smov 64   ;;  %s3286_s30 = smov 4  }
  0x24   :  { %34 = dma.hbm_to_vmem [thread:$0]  %s4040_s0, 512, %s29_s28, [#allocation10], %s3285_s1, %s3285_s1, %s3286_s30  }
  0x25   :  { %s3287_s24 = smov [#allocation14]   ;;  %s3288_s26 = smov [#allocation15]  }
  0x26   :  { %s52_s25 = sshll.u32 %s3287_s24, 4  ;;  %s64_s27 = sshll.u32 %s3288_s26, 4  ;;  %s53_s25 = int_to_ptr.vmem [resolvable:$true] %s52_s25  ;;  %s3401_s27 = int_to_ptr.vmem [resolvable:$true] %s64_s27 }
  0x27   :  { %s3109_s16 = scalar_lea.hbm %s4042_s2, 256 }
  0x28   :  { %p3110_p2 = scmp.ne.s32.totalorder %s4042_s2, %s3109_s16  ;;  %p3113_p3 = scmp.lt.u32.totalorder %s3109_s16, %s4042_s2 }
  0x2a   :  { %p3115_p4 = pnand %p3113_p3, %p3110_p2 }
  0x2c   :  { %3118 = shalt.err (!%p3115_p4)
}
  0x2d   :  { %s3119_s0 = scalar_lea.vmem %s53_s25, 256  ;;  %p3124_p6 = scmp.lt.s32.totalorder %s53_s25, %s53_s25 }
  0x2e   :  { %p3120_p5 = scmp.ne.s32.totalorder %s53_s25, %s3119_s0  ;;  %p3125_p7 = scmp.lt.s32.totalorder %s3119_s0, %s3119_s0 }
  0x30   :  { %p3126_p8 = por %p3125_p7, %p3124_p6 }
  0x32   :  { %p3127_p9 = pnand %p3126_p8, %p3120_p5 }
  0x34   :  { %3130 = shalt.err (!%p3127_p9)
}
  0x35   :  { %58 = dma.hbm_to_vmem [thread:$0]  %s4042_s2, 256, %s53_s25, [#allocation13], %s3285_s1, %s3285_s1, %s3286_s30  }
  0x36   :  { %s3131_s24 = scalar_lea.hbm %s4043_s3, 256 }
  0x37   :  { %p3132_p10 = scmp.ne.s32.totalorder %s4043_s3, %s3131_s24  ;;  %p3135_p11 = scmp.lt.u32.totalorder %s3131_s24, %s4043_s3 }
  0x39   :  { %p3137_p12 = pnand %p3135_p11, %p3132_p10 }
  0x3b   :  { %3140 = shalt.err (!%p3137_p12)
}
  0x3c   :  { %s3141_s17 = scalar_lea.vmem %s3401_s27, 256  ;;  %p3146_p0 = scmp.lt.s32.totalorder %s3401_s27, %s3401_s27 }
  0x3d   :  { %p3142_p13 = scmp.ne.s32.totalorder %s3401_s27, %s3141_s17  ;;  %p3147_p1 = scmp.lt.s32.totalorder %s3141_s17, %s3141_s17 }
  0x3f   :  { %p3148_p2 = por %p3147_p1, %p3146_p0 }
  0x41   :  { %p3149_p3 = pnand %p3148_p2, %p3142_p13 }
  0x43   :  { %3152 = shalt.err (!%p3149_p3)
}
  0x44   :  { %70 = dma.hbm_to_vmem [thread:$0]  %s4043_s3, 256, %s3401_s27, [#allocation16], %s3285_s1, %s3285_s1, %s3286_s30  }
  0x45   :  { %3263 = dma.done.wait [#allocation10], 512  }
  0x46   :  { %3264 = vsyncadd [#allocation10], 4294966784 }
  0x47   :  { %3265 = dma.done.wait [#allocation13], 1280  }
  0x48   :  { %3266 = vsyncadd [#allocation13], 4294966016 }
  0x49   :  { %3267 = dma.done.wait [#allocation16], 256  }
  0x4a   :  { %3268 = vsyncadd [#allocation16], 4294967040  ;;  %s3289_s18 = smov [#allocation3]   ;;  %s3290_s20 = smov [#allocation4]  }
  0x4b   :  { %s101_s19 = sshll.u32 %s3289_s18, 4  ;;  %s113_s0 = sshll.u32 %s3290_s20, 4  ;;  %s102_s19 = int_to_ptr.vmem [resolvable:$true] %s101_s19  ;;  %s114_s0 = int_to_ptr.vmem [resolvable:$true] %s113_s0 }
  0x4c   :  { %s3153_s22 = scalar_lea.hbm %s4045_s5, 512 }
  0x4d   :  { %p3154_p4 = scmp.ne.s32.totalorder %s4045_s5, %s3153_s22  ;;  %p3157_p5 = scmp.lt.u32.totalorder %s3153_s22, %s4045_s5 }
  0x4f   :  { %p3159_p6 = pnand %p3157_p5, %p3154_p4 }
  0x51   :  { %3162 = shalt.err (!%p3159_p6)  }
  0x52   :  { %s3163_s27 = scalar_lea.vmem %s102_s19, 512  ;;  %p3168_p8 = scmp.lt.s32.totalorder %s102_s19, %s102_s19 }
  0x53   :  { %p3164_p7 = scmp.ne.s32.totalorder %s102_s19, %s3163_s27  ;;  %p3169_p9 = scmp.lt.s32.totalorder %s3163_s27, %s3163_s27 }
  0x55   :  { %p3170_p10 = por %p3169_p9, %p3168_p8 }
  0x57   :  { %p3171_p11 = pnand %p3170_p10, %p3164_p7 }
  0x59   :  { %3174 = shalt.err (!%p3171_p11)  }
  0x5a   :  { %104 = dma.hbm_to_vmem [thread:$0]  %s4045_s5, 512, %s102_s19, [#allocation8] }
  0x5b   :  { %s3175_s17 = scalar_lea.hbm %s4046_s6, 256 }
  0x5c   :  { %p3176_p12 = scmp.ne.s32.totalorder %s4046_s6, %s3175_s17  ;;  %p3179_p13 = scmp.lt.u32.totalorder %s3175_s17, %s4046_s6 }
  0x5e   :  { %p3181_p0 = pnand %p3179_p13, %p3176_p12 }
  0x60   :  { %3184 = shalt.err (!%p3181_p0)  }
  0x61   :  { %s3185_s28 = scalar_lea.vmem %s114_s0, 256  ;;  %p3190_p2 = scmp.lt.s32.totalorder %s114_s0, %s114_s0 }
  0x62   :  { %p3186_p1 = scmp.ne.s32.totalorder %s114_s0, %s3185_s28  ;;  %p3191_p3 = scmp.lt.s32.totalorder %s3185_s28, %s3185_s28 }
  0x64   :  { %p3192_p4 = por %p3191_p3, %p3190_p2 }
  0x66   :  { %p3193_p5 = pnand %p3192_p4, %p3186_p1 }
  0x68   :  { %3196 = shalt.err (!%p3193_p5)  }
  0x69   :  { %116 = dma.hbm_to_vmem [thread:$0]  %s4046_s6, 256, %s114_s0, [#allocation8 + $0x1]  ;;  %v3465_v0 = vld [vmem:[%s4050_s10] sm:$0xff]  ;;  %v3470_v1 = vld [vmem:[%s4050_s10 + $0x8] sm:$0xff]  ;;  %v3475_v2 = vld [vmem:[%s4050_s10 + $0x10] sm:$0xff] }
  0x6a   :  { %s3291_s21 = smov [#allocation5]   ;;  %v3480_v3 = vld [vmem:[%s4050_s10 + $0x18] sm:$0xff]  ;;  %s3197_s16 = scalar_lea.hbm %s4048_s8, 512 }
  0x6b   :  { %s125_s22 = sshll.u32 %s3291_s21, 4  ;;  %p3198_p6 = scmp.ne.s32.totalorder %s4048_s8, %s3197_s16  ;;  %s126_s22 = int_to_ptr.vmem [resolvable:$true] %s125_s22 }
  0x6c   :  { %p3201_p7 = scmp.lt.u32.totalorder %s3197_s16, %s4048_s8 }
  0x6e   :  { %p3203_p8 = pnand %p3201_p7, %p3198_p6 }
  0x70   :  { %3206 = shalt.err (!%p3203_p8)  }
  0x71   :  { %s3207_s20 = scalar_lea.vmem %s126_s22, 512  ;;  %p3212_p10 = scmp.lt.s32.totalorder %s126_s22, %s126_s22 }
  0x72   :  { %p3208_p9 = scmp.ne.s32.totalorder %s126_s22, %s3207_s20  ;;  %p3213_p11 = scmp.lt.s32.totalorder %s3207_s20, %s3207_s20 }
  0x74   :  { %p3214_p12 = por %p3213_p11, %p3212_p10 }
  0x76   :  { %p3215_p13 = pnand %p3214_p12, %p3208_p9 }
  0x78   :  { %3218 = shalt.err (!%p3215_p13)  }
  0x79   :  { %128 = dma.hbm_to_vmem [thread:$0]  %s4048_s8, 512, %s126_s22, [#allocation8 + $0x2]  ;;  %v2845_v4 = vld [vmem:[#allocation12 + $0x4] ss:$8 sps:$4 sm:$0xff]   ;;  %v2847_v5 = vld [vmem:[#allocation12] ss:$8 sps:$4 sm:$0xff]  }
  0x7a   :  { %v3292_v6 = vmov 0   ;;  %291 = vmatprep.subr.bf16.mxu0 %v2845_v4  ;;  %v2848_v7 = vld [vmem:[#allocation12 + $0x14] ss:$8 sps:$4 sm:$0xff]   ;;  %v2850_v8 = vld [vmem:[#allocation12 + $0x10] ss:$8 sps:$4 sm:$0xff]  }
  0x7b   :  { %323 = vmatprep.mubr.bf16.mxu0 %v3292_v6  ;;  %292 = vmatpush1.bf16.msra.mxu0 %v2847_v5  ;;  %v2851_v9 = vld [vmem:[#allocation12 + $0x24] ss:$8 sps:$4 sm:$0xff]   ;;  %v2853_v10 = vld [vmem:[#allocation12 + $0x20] ss:$8 sps:$4 sm:$0xff]   ;;  %v2854_v11 = vld [vmem:[#allocation12 + $0x34] ss:$8 sps:$4 sm:$0xff]  }
  0x7c   :  { %293 = vmatprep.subr.bf16.mxu0 %v2848_v7  ;;  %v2856_v12 = vld [vmem:[#allocation12 + $0x30] ss:$8 sps:$4 sm:$0xff]  }
  0x7f   :  { %294 = vmatpush1.bf16.msra.mxu0 %v2850_v8 }
  0x80   :  { %295 = vmatprep.subr.bf16.mxu0 %v2851_v9 }
  0x83   :  { %296 = vmatpush1.bf16.msra.mxu0 %v2853_v10 }
  0x84   :  { %297 = vmatprep.subr.bf16.mxu0 %v2854_v11 }
  0x85   :  { %177 = vsyncadd [#allocation8 + $0x3], 512  ;;  %v2857_v13 = vld [vmem:[#allocation9] sm:$0xff]   ;;  %vm278_vm0 = vcmask 523264   ;;  %v2858_v14 = vld [vmem:[#allocation9 + $0x8] sm:$0xff]   ;;  %v208_v17 = vlaneseq  ;;  %vm3295_vm1 = vmmov 0  }
  0x86   :  { %v2859_v15 = vld [vmem:[#allocation9 + $0x10] sm:$0xff]   ;;  %v2860_v16 = vld [vmem:[#allocation9 + $0x18] sm:$0xff]   ;;  %v3535_v11 = vld [vmem:[#allocation14] sm:$0xff]   ;;  %s3296_s19 = smov 32   ;;  %vm412_vm2 = vcmask 261120   ;;  %s3297_s21 = smov [#allocation7]  }
  0x87   :  { %298 = vmatpush1.bf16.msra.mxu0 %v2856_v12  ;;  %v209_v18 = vshrl.u32 %v208_v17, 7  ;;  %v206_v20 = vld [vmem:[%s4044_s4] sm:$0x3]  ;;  %s3293_s4 = smov 96   ;;  %v3294_v12 = vmov 0.0   ;;  %s186_s22 = sshll.u32 %s3297_s21, 4  ;;  %s187_s22 = int_to_ptr.vmem [resolvable:$true] %s186_s22 }
  0x88   :  { %2599 = vmatprep.subr.bf16.mxu0 %v3294_v12  ;;  %2607 = vmatprep.subr.bf16.mxu1 %v3294_v12  ;;  %s3219_s3 = scalar_lea.hbm %s4052_s12, 1024 }
  0x89   :  { %v210_v19 = vsub.s32 0, %v209_v18  ;;  %v214_v21 = vsub.s32 1, %v209_v18  ;;  %2611 = vmatprep.mubr.msk.bf16.mxu1 %vm3295_vm1, %v3294_v12  ;;  %p3220_p0 = scmp.ne.s32.totalorder %s4052_s12, %s3219_s3  ;;  %p3223_p1 = scmp.lt.u32.totalorder %s3219_s3, %s4052_s12 }
  0x8a   :  { %2440 = vmatmul.mubr.msk.bf16.vlgmr.msra.gmra.mrb[0].mxu0 %vm278_vm0, %v2857_v13  ;;  %v3541_v13 = vld [vmem:[#allocation14 + $0x8] sm:$0xff]  }
  0x8b   :  { %333 = vmatprep.mubr.bf16.mxu0 %v3292_v6  ;;  %v211_v22 = vrot.slane %v206_v20, %v210_v19  ;;  %v215_v23 = vrot.slane %v206_v20, %v214_v21  ;;  %2600 = vmatpush3.bf16.msra.mxu0 %v3535_v11  ;;  %p3225_p2 = pnand %p3223_p1, %p3220_p0 }
  0x8c   :  { %2601 = vmatprep.subr.bf16.mxu0 %v3294_v12 }
  0x8f   :  { %2602 = vmatpush3.bf16.msra.mxu0 %v3541_v13 }
  0x90   :  { %2639 = vmatprep.subr.bf16.mxu0 %v3294_v12 }
  0x92   :  { %2441 = vmatmul.mubr.msk.bf16.gmra.mrb[4].mxu0 %vm278_vm0, %v2858_v14 }
  0x93   :  { %343 = vmatprep.mubr.bf16.mxu0 %v3292_v6 }
  0x9a   :  { %2442 = vmatmul.mubr.msk.bf16.gmra.mrb[8].mxu0 %vm278_vm0, %v2859_v15  ;;  %v3550_v15 = vld [vmem:[#allocation15] sm:$0xff]  }
  0x9b   :  { %353 = vmatprep.mubr.bf16.mxu0 %v3292_v6  ;;  %2608 = vmatpush3.bf16.msra.mxu1 %v3550_v15 }
  0x9c   :  { %2609 = vmatprep.subr.bf16.mxu1 %v3294_v12 }
  0xa2   :  { %2443 = vmatmul.mubr.msk.bf16.gmra.mrb[12].mxu0 %vm278_vm0, %v2860_v16  ;;  %v3553_v16 = vld [vmem:[#allocation15 + $0x8] sm:$0xff]  }
  0xa3   :  { %2603 = vmatprep.mubr.msk.bf16.mxu0 %vm3295_vm1, %v3294_v12  ;;  %2610 = vmatpush3.bf16.msra.mxu1 %v3553_v16 }
  0xa4   :  { %2615 = vmatprep.subr.bf16.mxu1 %v3294_v12 }
 0x15d   :  { %v325_v24 = vpop.f32.mrb[0].mxu0 }
 0x15e   :  { %v326_v25 = vadd.f32 %v325_v24, %v211_v22  ;;  %v327_v26 = vpop.f32.mrb[1].mxu0 }
 0x15f   :  { %v3501_v27 = vadd.f32 %v327_v26, %v215_v23  ;;  %v329_v28 = vpop.f32.mrb[2].mxu0 }
 0x160   :  { %v3503_v29 = vadd.f32 %v329_v28, %v211_v22  ;;  %v331_v30 = vpop.f32.mrb[3].mxu0  ;;  %2865 = vtanh.f32 %v326_v25  ;;  %v2444_v58 = vmul.f32 -1.442695, %v326_v25 }
 0x161   :  { %v3505_v31 = vadd.f32 %v331_v30, %v215_v23 }
 0x165   :  { %v335_v32 = vpop.f32.mrb[4].mxu0 }
 0x166   :  { %v3507_v33 = vadd.f32 %v335_v32, %v211_v22  ;;  %v337_v34 = vpop.f32.mrb[5].mxu0 }
 0x167   :  { %v3509_v35 = vadd.f32 %v337_v34, %v215_v23  ;;  %v339_v36 = vpop.f32.mrb[6].mxu0 }
 0x168   :  { %v3511_v37 = vadd.f32 %v339_v36, %v211_v22  ;;  %v341_v38 = vpop.f32.mrb[7].mxu0 }
 0x169   :  { %v3513_v39 = vadd.f32 %v341_v38, %v215_v23 }
 0x16a   :  { %v2866_v40 = vpop.eup %2865 }
 0x16b   :  { %380 = vrot.lane.b32.xlu0 %v2866_v40, %s3285_s1 }
 0x16d   :  { %v345_v41 = vpop.f32.mrb[8].mxu0 }
 0x16e   :  { %v3516_v42 = vadd.f32 %v345_v41, %v211_v22  ;;  %v347_v43 = vpop.f32.mrb[9].mxu0 }
 0x16f   :  { %v3518_v44 = vadd.f32 %v347_v43, %v215_v23  ;;  %v349_v45 = vpop.f32.mrb[10].mxu0 }
 0x170   :  { %v3520_v46 = vadd.f32 %v349_v45, %v211_v22  ;;  %v351_v47 = vpop.f32.mrb[11].mxu0 }
 0x171   :  { %v3522_v48 = vadd.f32 %v351_v47, %v215_v23 }
 0x175   :  { %v355_v49 = vpop.f32.mrb[12].mxu0 }
 0x176   :  { %v3524_v50 = vadd.f32 %v355_v49, %v211_v22  ;;  %v357_v51 = vpop.f32.mrb[13].mxu0 }
 0x177   :  { %v3526_v52 = vadd.f32 %v357_v51, %v215_v23  ;;  %v359_v53 = vpop.f32.mrb[14].mxu0 }
 0x178   :  { %v3528_v54 = vadd.f32 %v359_v53, %v211_v22  ;;  %v361_v55 = vpop.f32.mrb[15].mxu0 }
 0x179   :  { %v362_v56 = vadd.f32 %v361_v55, %v215_v23 }
 0x17b   :  { %2867 = vtanh.f32 %v362_v56  ;;  %v2445_v61 = vmul.f32 -1.442695, %v362_v56 }
 0x17c   :  { %2869 = vpow2.f32 %v2444_v58 }
 0x185   :  { %v2868_v57 = vpop.eup %2867 }
 0x186   :  { %398 = vrot.lane.b32.xlu0 %v2868_v57, %s3285_s1  ;;  %v2870_v59 = vpop.eup %2869 }
 0x187   :  { %v375_v60 = vadd.f32 1.0, %v2870_v59 }
 0x189   :  { %2871 = vrcp.f32 %v375_v60 }
 0x18a   :  { %2873 = vpow2.f32 %v2445_v61 }
 0x193   :  { %v2872_v62 = vpop.eup %2871 }
 0x194   :  { %v2874_v5 = vpop.eup %2873 }
 0x195   :  { %v393_v7 = vadd.f32 1.0, %v2874_v5 }
 0x1dd   :  { %v381_v63 = vpop.permute.xlu0 %380 }
 0x1de   :  { %v3531_v4 = vmul.f32 %v2872_v62, %v381_v63 }
 0x1e0   :  { %2875 = vtanh.f32 %v3531_v4 }
 0x1e1   :  { %2877 = vrcp.f32 %v393_v7 }
 0x1ea   :  { %v2876_v6 = vpop.eup %2875 }
 0x1eb   :  { %386 = vrot.lane.b32.xlu1 %v2876_v6, %s3293_s4  ;;  %v2878_v8 = vpop.eup %2877 }
 0x1f8   :  { %v399_v9 = vpop.permute.xlu0 %398 }
 0x1f9   :  { %v401_v10 = vmul.f32 %v2878_v8, %v399_v9 }
 0x1fb   :  { %2879 = vtanh.f32 %v401_v10 }
 0x205   :  { %v2880_v14 = vpop.eup %2879 }
 0x206   :  { %404 = vrot.lane.b32.xlu1 %v2880_v14, %s3293_s4 }
 0x25d   :  { %v387_v17 = vpop.permute.xlu1 %386 }
 0x25e   :  { %v3558_v18 = vmul.f32 %v2872_v62, %v387_v17 }
 0x260   :  { %v420_v19 = vpack.c.bf16 %v3558_v18, %v3558_v18 }
 0x262   :  { %422 = vrot.lane.b32.xlu0 %v420_v19, %s3296_s19 }
 0x278   :  { %v405_v20 = vpop.permute.xlu1 %404 }
 0x279   :  { %v3563_v21 = vmul.f32 %v2878_v8, %v405_v20 }
 0x27b   :  { %v480_v22 = vpack.c.bf16 %v3563_v21, %v3563_v21 }
 0x27d   :  { %482 = vrot.lane.b32.xlu1 %v480_v22, %s3296_s19 }
 0x2d4   :  { %v423_v23 = vpop.permute.xlu0 %422 }
 0x2d5   :  { %2604 = vmatmul.mubr.msk.bf16.vlgmr.msra.gmra.mrb[16].mxu0 %vm412_vm2, %v423_v23 }
 0x2d6   :  { %2640 = vmatpush3.bf16.msra.mxu0 %v3550_v15  ;;  %2643 = vmatprep.mubr.msk.bf16.mxu0 %vm3295_vm1, %v3294_v12 }
 0x2d7   :  { %2641 = vmatprep.subr.bf16.mxu0 %v3294_v12 }
 0x2da   :  { %2642 = vmatpush3.bf16.msra.mxu0 %v3553_v16 }
 0x2db   :  { %2655 = vmatprep.subr.bf16.mxu0 %v3294_v12 }
 0x2ef   :  { %v483_v24 = vpop.permute.xlu1 %482 }
 0x2f0   :  { %2612 = vmatmul.mubr.msk.bf16.vlgmr.msra.gmra.mrb[0].mxu1 %vm412_vm2, %v483_v24 }
 0x2f1   :  { %2616 = vmatpush3.bf16.msra.mxu1 %v3535_v11  ;;  %2619 = vmatprep.mubr.msk.bf16.mxu1 %vm3295_vm1, %v3294_v12 }
 0x2f2   :  { %2617 = vmatprep.subr.bf16.mxu1 %v3294_v12 }
 0x2f5   :  { %2618 = vmatpush3.bf16.msra.mxu1 %v3541_v13 }
 0x2f6   :  { %2623 = vmatprep.subr.bf16.mxu1 %v3294_v12 }
 0x3a8   :  { %v473_v25 = vpop.f32.mrb[16].mxu0 }
 0x3a9   :  { %v479_v26 = vadd.f32 %v473_v25, %v3503_v29  ;;  %v2605_v28 = vpop.f32.mrb[17].mxu0 }
 0x3aa   :  { %v476_v30 = vpop.f32.mrb[18].mxu0 }
 0x3ab   :  { %2881 = vtanh.f32 %v479_v26  ;;  %v2606_v32 = vpop.f32.mrb[19].mxu0  ;;  %v2452_v45 = vmul.f32 -1.442695, %v479_v26 }
 0x3b5   :  { %v2882_v34 = vpop.eup %2881 }
 0x3b6   :  { %553 = vrot.lane.b32.xlu0 %v2882_v34, %s3285_s1 }
 0x3ba   :  { %548 = vrot.lane.b32.xlu0 %v3531_v4, %s3296_s19 }
 0x3be   :  { %576 = vrot.lane.b32.xlu0 %v401_v10, %s3296_s19 }
 0x3c3   :  { %v533_v36 = vpop.f32.mrb[0].mxu1 }
 0x3c4   :  { %v539_v38 = vadd.f32 %v533_v36, %v3526_v52  ;;  %v2613_v40 = vpop.f32.mrb[1].mxu1 }
 0x3c5   :  { %v536_v41 = vpop.f32.mrb[2].mxu1 }
 0x3c6   :  { %2883 = vtanh.f32 %v539_v38  ;;  %v2614_v43 = vpop.f32.mrb[3].mxu1  ;;  %v2453_v51 = vmul.f32 -1.442695, %v539_v38 }
 0x3c7   :  { %2885 = vpow2.f32 %v2452_v45 }
 0x3d0   :  { %v2884_v29 = vpop.eup %2883 }
 0x3d1   :  { %581 = vrot.lane.b32.xlu1 %v2884_v29, %s3285_s1  ;;  %v2886_v47 = vpop.eup %2885 }
 0x3d2   :  { %v543_v49 = vadd.f32 1.0, %v2886_v47 }
 0x3d4   :  { %2887 = vrcp.f32 %v543_v49 }
 0x3d5   :  { %2889 = vpow2.f32 %v2453_v51 }
 0x3de   :  { %v2888_v53 = vpop.eup %2887 }
 0x3df   :  { %v2890_v52 = vpop.eup %2889 }
 0x3e0   :  { %v571_v57 = vadd.f32 1.0, %v2890_v52 }
 0x3e2   :  { %2891 = vrcp.f32 %v571_v57 }
 0x3ec   :  { %v2892_v58 = vpop.eup %2891 }
 0x428   :  { %v554_v55 = vpop.permute.xlu0 %553 }
 0x429   :  { %v556_v56 = vmul.f32 %v2888_v53, %v554_v55 }
 0x42b   :  { %558 = vrot.lane.b32.xlu1 %v556_v56, %s3296_s19 }
 0x42c   :  { %v549_v61 = vpop.permute.xlu0 %548 }
 0x42d   :  { %v551_v62 = vmul.f32 %v2888_v53, %v549_v61 }
 0x430   :  { %v577_v6 = vpop.permute.xlu0 %576 }
 0x431   :  { %v579_v7 = vmul.f32 %v2892_v58, %v577_v6 }
 0x443   :  { %v582_v59 = vpop.permute.xlu1 %581 }
 0x444   :  { %v584_v60 = vmul.f32 %v2892_v58, %v582_v59 }
 0x446   :  { %586 = vrot.lane.b32.xlu1 %v584_v60, %s3296_s19 }
 0x49d   :  { %v559_v63 = vpop.permute.xlu1 %558 }
 0x49e   :  { %v3591_v4 = vadd.f32 %v559_v63, %v551_v62 }
 0x4a0   :  { %2893 = vtanh.f32 %v3591_v4 }
 0x4aa   :  { %v2894_v5 = vpop.eup %2893 }
 0x4ab   :  { %564 = vrot.lane.b32.xlu0 %v2894_v5, %s3285_s1 }
 0x4b8   :  { %v587_v8 = vpop.permute.xlu1 %586 }
 0x4b9   :  { %v3595_v9 = vadd.f32 %v587_v8, %v579_v7 }
 0x4bb   :  { %2895 = vtanh.f32 %v3595_v9 }
 0x4c5   :  { %v2896_v10 = vpop.eup %2895 }
 0x4c6   :  { %592 = vrot.lane.b32.xlu1 %v2896_v10, %s3285_s1 }
 0x51d   :  { %v565_v14 = vpop.permute.xlu0 %564 }
 0x51e   :  { %v3599_v17 = vmul.f32 %v2888_v53, %v565_v14 }
 0x520   :  { %v606_v19 = vpack.c.bf16 %v3599_v17, %v3599_v17 }
 0x522   :  { %608 = vrot.lane.b32.xlu0 %v606_v19, %s3296_s19 }
 0x538   :  { %v593_v20 = vpop.permute.xlu1 %592 }
 0x539   :  { %v3604_v22 = vmul.f32 %v2892_v58, %v593_v20 }
 0x53b   :  { %v654_v23 = vpack.c.bf16 %v3604_v22, %v3604_v22 }
 0x53d   :  { %656 = vrot.lane.b32.xlu1 %v654_v23, %s3296_s19 }
 0x594   :  { %v609_v24 = vpop.permute.xlu0 %608 }
 0x595   :  { %2620 = vmatmul.mubr.msk.bf16.vlgmr.msra.gmra.mrb[4].mxu1 %vm412_vm2, %v609_v24 }
 0x596   :  { %2624 = vmatpush3.bf16.msra.mxu1 %v3550_v15  ;;  %2627 = vmatprep.mubr.msk.bf16.mxu1 %vm3295_vm1, %v3294_v12 }
 0x597   :  { %2625 = vmatprep.subr.bf16.mxu1 %v3294_v12 }
 0x59a   :  { %2626 = vmatpush3.bf16.msra.mxu1 %v3553_v16 }
 0x59b   :  { %2631 = vmatprep.subr.bf16.mxu1 %v3294_v12 }
 0x5af   :  { %v657_v25 = vpop.permute.xlu1 %656 }
 0x5b0   :  { %2628 = vmatmul.mubr.msk.bf16.vlgmr.msra.gmra.mrb[8].mxu1 %vm412_vm2, %v657_v25 }
 0x5b1   :  { %2632 = vmatpush3.bf16.msra.mxu1 %v3535_v11  ;;  %2635 = vmatprep.mubr.msk.bf16.mxu1 %vm3295_vm1, %v3294_v12 }
 0x5b2   :  { %2633 = vmatprep.subr.bf16.mxu1 %v3294_v12 }
 0x5b5   :  { %2634 = vmatpush3.bf16.msra.mxu1 %v3541_v13 }
 0x5b6   :  { %2647 = vmatprep.subr.bf16.mxu1 %v3294_v12 }
 0x668   :  { %v647_v26 = vpop.f32.mrb[4].mxu1 }
 0x669   :  { %v653_v28 = vadd.f32 %v647_v26, %v3507_v33  ;;  %v2621_v30 = vpop.f32.mrb[5].mxu1 }
 0x66a   :  { %v650_v32 = vpop.f32.mrb[6].mxu1 }
 0x66b   :  { %2897 = vtanh.f32 %v653_v28  ;;  %v2622_v34 = vpop.f32.mrb[7].mxu1  ;;  %v2456_v47 = vmul.f32 -1.442695, %v653_v28 }
 0x675   :  { %v2898_v36 = vpop.eup %2897 }
 0x676   :  { %711 = vrot.lane.b32.xlu0 %v2898_v36, %s3285_s1 }
 0x683   :  { %v695_v38 = vpop.f32.mrb[8].mxu1 }
 0x684   :  { %v701_v40 = vadd.f32 %v695_v38, %v3522_v48  ;;  %v2629_v41 = vpop.f32.mrb[9].mxu1 }
 0x685   :  { %v698_v43 = vpop.f32.mrb[10].mxu1 }
 0x686   :  { %2899 = vtanh.f32 %v701_v40  ;;  %v2630_v29 = vpop.f32.mrb[11].mxu1  ;;  %v2457_v51 = vmul.f32 -1.442695, %v701_v40 }
 0x687   :  { %2901 = vpow2.f32 %v2456_v47 }
 0x690   :  { %v2900_v45 = vpop.eup %2899 }
 0x691   :  { %735 = vrot.lane.b32.xlu1 %v2900_v45, %s3285_s1  ;;  %v2902_v33 = vpop.eup %2901 }
 0x692   :  { %v705_v49 = vadd.f32 1.0, %v2902_v33 }
 0x694   :  { %2903 = vrcp.f32 %v705_v49 }
 0x695   :  { %2905 = vpow2.f32 %v2457_v51 }
 0x69e   :  { %v2904_v53 = vpop.eup %2903 }
 0x69f   :  { %v2906_v48 = vpop.eup %2905  ;;  %v709_v60 = vmul.f32 %v2904_v53, %v3591_v4 }
 0x6a0   :  { %v729_v52 = vadd.f32 1.0, %v2906_v48 }
 0x6a2   :  { %2907 = vrcp.f32 %v729_v52 }
 0x6ac   :  { %v2908_v57 = vpop.eup %2907 }
 0x6ad   :  { %v733_v5 = vmul.f32 %v2908_v57, %v3595_v9 }
 0x6e8   :  { %v712_v55 = vpop.permute.xlu0 %711 }
 0x6e9   :  { %v714_v56 = vmul.f32 %v2904_v53, %v712_v55 }
 0x6eb   :  { %716 = vrot.lane.b32.xlu0 %v714_v56, %s3296_s19 }
 0x703   :  { %v736_v58 = vpop.permute.xlu1 %735 }
 0x704   :  { %v738_v59 = vmul.f32 %v2908_v57, %v736_v58 }
 0x706   :  { %740 = vrot.lane.b32.xlu1 %v738_v59, %s3296_s19 }
 0x75d   :  { %v717_v61 = vpop.permute.xlu0 %716 }
 0x75e   :  { %v3630_v62 = vadd.f32 %v717_v61, %v709_v60 }
 0x760   :  { %2909 = vtanh.f32 %v3630_v62 }
 0x76a   :  { %v2910_v63 = vpop.eup %2909 }
 0x76b   :  { %722 = vrot.lane.b32.xlu0 %v2910_v63, %s3285_s1 }
 0x778   :  { %v741_v6 = vpop.permute.xlu1 %740 }
 0x779   :  { %v3635_v7 = vadd.f32 %v741_v6, %v733_v5 }
 0x77b   :  { %2911 = vtanh.f32 %v3635_v7 }
 0x785   :  { %v2912_v8 = vpop.eup %2911 }
 0x786   :  { %746 = vrot.lane.b32.xlu1 %v2912_v8, %s3285_s1 }
 0x7dd   :  { %v723_v10 = vpop.permute.xlu0 %722 }
 0x7de   :  { %v3639_v4 = vmul.f32 %v2904_v53, %v723_v10 }
 0x7e0   :  { %v760_v14 = vpack.c.bf16 %v3639_v4, %v3639_v4 }
 0x7e2   :  { %762 = vrot.lane.b32.xlu0 %v760_v14, %s3296_s19 }
 0x7f8   :  { %v747_v19 = vpop.permute.xlu1 %746 }
 0x7f9   :  { %v3644_v20 = vmul.f32 %v2908_v57, %v747_v19 }
 0x7fb   :  { %v808_v9 = vpack.c.bf16 %v3644_v20, %v3644_v20 }
 0x7fd   :  { %810 = vrot.lane.b32.xlu1 %v808_v9, %s3296_s19 }
 0x854   :  { %v763_v23 = vpop.permute.xlu0 %762 }
 0x855   :  { %2636 = vmatmul.mubr.msk.bf16.vlgmr.msra.gmra.mrb[12].mxu1 %vm412_vm2, %v763_v23 }
 0x856   :  { %2648 = vmatpush3.bf16.msra.mxu1 %v3535_v11  ;;  %2651 = vmatprep.mubr.msk.bf16.mxu1 %vm3295_vm1, %v3294_v12 }
 0x857   :  { %2649 = vmatprep.subr.bf16.mxu1 %v3294_v12 }
 0x85a   :  { %2650 = vmatpush3.bf16.msra.mxu1 %v3541_v13 }
 0x85b   :  { %2663 = vmatprep.subr.bf16.mxu1 %v3294_v12 }
 0x86f   :  { %v811_v24 = vpop.permute.xlu1 %810 }
 0x870   :  { %2644 = vmatmul.mubr.msk.bf16.vlgmr.msra.gmra.mrb[20].mxu0 %vm412_vm2, %v811_v24 }
 0x871   :  { %2656 = vmatpush3.bf16.msra.mxu0 %v3550_v15  ;;  %2659 = vmatprep.mubr.msk.bf16.mxu0 %vm3295_vm1, %v3294_v12 }
 0x872   :  { %2657 = vmatprep.subr.bf16.mxu0 %v3294_v12 }
 0x875   :  { %2658 = vmatpush3.bf16.msra.mxu0 %v3553_v16 }
 0x876   :  { %2671 = vmatprep.subr.bf16.mxu0 %v3294_v12 }
 0x928   :  { %v801_v25 = vpop.f32.mrb[12].mxu1 }
 0x929   :  { %v807_v26 = vadd.f32 %v801_v25, %v3511_v37  ;;  %v2637_v28 = vpop.f32.mrb[13].mxu1 }
 0x92a   :  { %v804_v30 = vpop.f32.mrb[14].mxu1 }
 0x92b   :  { %2913 = vtanh.f32 %v807_v26  ;;  %v2638_v32 = vpop.f32.mrb[15].mxu1  ;;  %v2460_v45 = vmul.f32 -1.442695, %v807_v26 }
 0x935   :  { %v2914_v34 = vpop.eup %2913 }
 0x936   :  { %865 = vrot.lane.b32.xlu0 %v2914_v34, %s3285_s1 }
 0x943   :  { %v849_v36 = vpop.f32.mrb[20].mxu0 }
 0x944   :  { %v855_v38 = vadd.f32 %v849_v36, %v3518_v44  ;;  %v2645_v40 = vpop.f32.mrb[21].mxu0 }
 0x945   :  { %v852_v41 = vpop.f32.mrb[22].mxu0 }
 0x946   :  { %2915 = vtanh.f32 %v855_v38  ;;  %v2646_v43 = vpop.f32.mrb[23].mxu0  ;;  %v2461_v33 = vmul.f32 -1.442695, %v855_v38 }
 0x947   :  { %2917 = vpow2.f32 %v2460_v45 }
 0x950   :  { %v2916_v29 = vpop.eup %2915 }
 0x951   :  { %889 = vrot.lane.b32.xlu1 %v2916_v29, %s3285_s1  ;;  %v2918_v37 = vpop.eup %2917 }
 0x952   :  { %v859_v47 = vadd.f32 1.0, %v2918_v37 }
 0x954   :  { %2919 = vrcp.f32 %v859_v47 }
 0x955   :  { %2921 = vpow2.f32 %v2461_v33 }
 0x95e   :  { %v2920_v49 = vpop.eup %2919 }
 0x95f   :  { %v2922_v44 = vpop.eup %2921  ;;  %v863_v57 = vmul.f32 %v2920_v49, %v3630_v62 }
 0x960   :  { %v883_v55 = vadd.f32 1.0, %v2922_v44 }
 0x962   :  { %2923 = vrcp.f32 %v883_v55 }
 0x96c   :  { %v2924_v56 = vpop.eup %2923 }
 0x96d   :  { %v887_v61 = vmul.f32 %v2924_v56, %v3635_v7 }
 0x9a8   :  { %v866_v51 = vpop.permute.xlu0 %865 }
 0x9a9   :  { %v868_v53 = vmul.f32 %v2920_v49, %v866_v51 }
 0x9ab   :  { %870 = vrot.lane.b32.xlu0 %v868_v53, %s3296_s19 }
 0x9c3   :  { %v890_v48 = vpop.permute.xlu1 %889 }
 0x9c4   :  { %v892_v52 = vmul.f32 %v2924_v56, %v890_v48 }
 0x9c6   :  { %894 = vrot.lane.b32.xlu1 %v892_v52, %s3296_s19 }
 0xa1d   :  { %v871_v58 = vpop.permute.xlu0 %870 }
 0xa1e   :  { %v3670_v59 = vadd.f32 %v871_v58, %v863_v57 }
 0xa20   :  { %2925 = vtanh.f32 %v3670_v59 }
 0xa2a   :  { %v2926_v60 = vpop.eup %2925 }
 0xa2b   :  { %876 = vrot.lane.b32.xlu0 %v2926_v60, %s3285_s1 }
 0xa38   :  { %v895_v63 = vpop.permute.xlu1 %894 }
 0xa39   :  { %v3675_v5 = vadd.f32 %v895_v63, %v887_v61 }
 0xa3b   :  { %2927 = vtanh.f32 %v3675_v5 }
 0xa45   :  { %v2928_v6 = vpop.eup %2927 }
 0xa46   :  { %900 = vrot.lane.b32.xlu1 %v2928_v6, %s3285_s1 }
 0xa9d   :  { %v877_v8 = vpop.permute.xlu0 %876 }
 0xa9e   :  { %v3679_v62 = vmul.f32 %v2920_v49, %v877_v8 }
 0xaa0   :  { %v914_v10 = vpack.c.bf16 %v3679_v62, %v3679_v62 }
 0xaa2   :  { %916 = vrot.lane.b32.xlu0 %v914_v10, %s3296_s19 }
 0xab8   :  { %v901_v14 = vpop.permute.xlu1 %900 }
 0xab9   :  { %v3684_v19 = vmul.f32 %v2924_v56, %v901_v14 }
 0xabb   :  { %v962_v7 = vpack.c.bf16 %v3684_v19, %v3684_v19 }
 0xabd   :  { %964 = vrot.lane.b32.xlu1 %v962_v7, %s3296_s19 }
 0xb14   :  { %v917_v9 = vpop.permute.xlu0 %916 }
 0xb15   :  { %2652 = vmatmul.mubr.msk.bf16.vlgmr.msra.gmra.mrb[16].mxu1 %vm412_vm2, %v917_v9 }
 0xb16   :  { %2664 = vmatpush3.bf16.msra.mxu1 %v3535_v11  ;;  %2667 = vmatprep.mubr.msk.bf16.mxu1 %vm3295_vm1, %v3294_v12 }
 0xb17   :  { %2665 = vmatprep.subr.bf16.mxu1 %v3294_v12 }
 0xb1a   :  { %2666 = vmatpush3.bf16.msra.mxu1 %v3541_v13 }
 0xb1b   :  { %2679 = vmatprep.subr.bf16.mxu1 %v3294_v12 }
 0xb2f   :  { %v965_v23 = vpop.permute.xlu1 %964 }
 0xb30   :  { %2660 = vmatmul.mubr.msk.bf16.vlgmr.msra.gmra.mrb[24].mxu0 %vm412_vm2, %v965_v23 }
 0xb31   :  { %2672 = vmatpush3.bf16.msra.mxu0 %v3550_v15  ;;  %2675 = vmatprep.mubr.msk.bf16.mxu0 %vm3295_vm1, %v3294_v12 }
 0xb32   :  { %2673 = vmatprep.subr.bf16.mxu0 %v3294_v12 }
 0xb35   :  { %2674 = vmatpush3.bf16.msra.mxu0 %v3553_v16 }
 0xb36   :  { %2687 = vmatprep.subr.bf16.mxu0 %v3294_v12 }
 0xbe8   :  { %v955_v24 = vpop.f32.mrb[16].mxu1 }
 0xbe9   :  { %v961_v25 = vadd.f32 %v955_v24, %v3516_v42  ;;  %v2653_v26 = vpop.f32.mrb[17].mxu1 }
 0xbea   :  { %v958_v28 = vpop.f32.mrb[18].mxu1 }
 0xbeb   :  { %2929 = vtanh.f32 %v961_v25  ;;  %v2654_v30 = vpop.f32.mrb[19].mxu1  ;;  %v2464_v29 = vmul.f32 -1.442695, %v961_v25 }
 0xbf5   :  { %v2930_v32 = vpop.eup %2929 }
 0xbf6   :  { %1019 = vrot.lane.b32.xlu0 %v2930_v32, %s3285_s1 }
 0xc03   :  { %v1003_v34 = vpop.f32.mrb[24].mxu0 }
 0xc04   :  { %v1009_v36 = vadd.f32 %v1003_v34, %v3513_v39  ;;  %v2661_v38 = vpop.f32.mrb[25].mxu0 }
 0xc05   :  { %v1006_v40 = vpop.f32.mrb[26].mxu0 }
 0xc06   :  { %2931 = vtanh.f32 %v1009_v36  ;;  %v2662_v41 = vpop.f32.mrb[27].mxu0  ;;  %v2465_v37 = vmul.f32 -1.442695, %v1009_v36 }
 0xc07   :  { %2933 = vpow2.f32 %v2464_v29 }
 0xc10   :  { %v2932_v43 = vpop.eup %2931 }
 0xc11   :  { %1043 = vrot.lane.b32.xlu1 %v2932_v43, %s3285_s1  ;;  %v2934_v42 = vpop.eup %2933 }
 0xc12   :  { %v1013_v45 = vadd.f32 1.0, %v2934_v42 }
 0xc14   :  { %2935 = vrcp.f32 %v1013_v45 }
 0xc15   :  { %2937 = vpow2.f32 %v2465_v37 }
 0xc1e   :  { %v2936_v47 = vpop.eup %2935 }
 0xc1f   :  { %v2938_v39 = vpop.eup %2937  ;;  %v1017_v56 = vmul.f32 %v2936_v47, %v3670_v59 }
 0xc20   :  { %v1037_v51 = vadd.f32 1.0, %v2938_v39 }
 0xc22   :  { %2939 = vrcp.f32 %v1037_v51 }
 0xc2c   :  { %v2940_v53 = vpop.eup %2939 }
 0xc2d   :  { %v1041_v58 = vmul.f32 %v2940_v53, %v3675_v5 }
 0xc68   :  { %v1020_v33 = vpop.permute.xlu0 %1019 }
 0xc69   :  { %v1022_v49 = vmul.f32 %v2936_v47, %v1020_v33 }
 0xc6b   :  { %1024 = vrot.lane.b32.xlu0 %v1022_v49, %s3296_s19 }
 0xc83   :  { %v1044_v44 = vpop.permute.xlu1 %1043 }
 0xc84   :  { %v1046_v55 = vmul.f32 %v2940_v53, %v1044_v44 }
 0xc86   :  { %1048 = vrot.lane.b32.xlu1 %v1046_v55, %s3296_s19 }
 0xcdd   :  { %v1025_v48 = vpop.permute.xlu0 %1024 }
 0xcde   :  { %v3710_v52 = vadd.f32 %v1025_v48, %v1017_v56 }
 0xce0   :  { %2941 = vtanh.f32 %v3710_v52 }
 0xcea   :  { %v2942_v57 = vpop.eup %2941 }
 0xceb   :  { %1030 = vrot.lane.b32.xlu0 %v2942_v57, %s3285_s1 }
 0xcf8   :  { %v1049_v60 = vpop.permute.xlu1 %1048 }
 0xcf9   :  { %v3715_v61 = vadd.f32 %v1049_v60, %v1041_v58 }
 0xcfb   :  { %2943 = vtanh.f32 %v3715_v61 }
 0xd05   :  { %v2944_v63 = vpop.eup %2943 }
 0xd06   :  { %1054 = vrot.lane.b32.xlu1 %v2944_v63, %s3285_s1 }
 0xd5d   :  { %v1031_v6 = vpop.permute.xlu0 %1030 }
 0xd5e   :  { %v3719_v59 = vmul.f32 %v2936_v47, %v1031_v6 }
 0xd60   :  { %v1068_v8 = vpack.c.bf16 %v3719_v59, %v3719_v59 }
 0xd62   :  { %1070 = vrot.lane.b32.xlu0 %v1068_v8, %s3296_s19 }
 0xd78   :  { %v1055_v10 = vpop.permute.xlu1 %1054 }
 0xd79   :  { %v3724_v14 = vmul.f32 %v2940_v53, %v1055_v10 }
 0xd7b   :  { %v1116_v5 = vpack.c.bf16 %v3724_v14, %v3724_v14 }
 0xd7d   :  { %1118 = vrot.lane.b32.xlu1 %v1116_v5, %s3296_s19 }
 0xdd4   :  { %v1071_v7 = vpop.permute.xlu0 %1070 }
 0xdd5   :  { %2668 = vmatmul.mubr.msk.bf16.vlgmr.msra.gmra.mrb[20].mxu1 %vm412_vm2, %v1071_v7 }
 0xdd6   :  { %2680 = vmatpush3.bf16.msra.mxu1 %v3535_v11  ;;  %2683 = vmatprep.mubr.msk.bf16.mxu1 %vm3295_vm1, %v3294_v12 }
 0xdd7   :  { %2681 = vmatprep.subr.bf16.mxu1 %v3294_v12 }
 0xdda   :  { %2682 = vmatpush3.bf16.msra.mxu1 %v3541_v13 }
 0xddb   :  { %2695 = vmatprep.subr.bf16.mxu1 %v3294_v12 }
 0xdef   :  { %v1119_v9 = vpop.permute.xlu1 %1118 }
 0xdf0   :  { %2676 = vmatmul.mubr.msk.bf16.vlgmr.msra.gmra.mrb[28].mxu0 %vm412_vm2, %v1119_v9 }
 0xdf1   :  { %2688 = vmatpush3.bf16.msra.mxu0 %v3550_v15  ;;  %2691 = vmatprep.mubr.msk.bf16.mxu0 %vm3295_vm1, %v3294_v12 }
 0xdf2   :  { %2689 = vmatprep.subr.bf16.mxu0 %v3294_v12 }
 0xdf5   :  { %2690 = vmatpush3.bf16.msra.mxu0 %v3553_v16 }
 0xdf6   :  { %2703 = vmatprep.subr.bf16.mxu0 %v3294_v12 }
 0xea8   :  { %v1109_v23 = vpop.f32.mrb[20].mxu1 }
 0xea9   :  { %v1115_v24 = vadd.f32 %v1109_v23, %v3520_v46  ;;  %v2669_v25 = vpop.f32.mrb[21].mxu1 }
 0xeaa   :  { %v1112_v26 = vpop.f32.mrb[22].mxu1 }
 0xeab   :  { %2945 = vtanh.f32 %v1115_v24  ;;  %v2670_v28 = vpop.f32.mrb[23].mxu1  ;;  %v2468_v43 = vmul.f32 -1.442695, %v1115_v24 }
 0xeb5   :  { %v2946_v30 = vpop.eup %2945 }
 0xeb6   :  { %1173 = vrot.lane.b32.xlu0 %v2946_v30, %s3285_s1 }
 0xec3   :  { %v1157_v32 = vpop.f32.mrb[28].mxu0 }
 0xec4   :  { %v1163_v34 = vadd.f32 %v1157_v32, %v3509_v35  ;;  %v2677_v36 = vpop.f32.mrb[29].mxu0 }
 0xec5   :  { %v1160_v38 = vpop.f32.mrb[30].mxu0 }
 0xec6   :  { %2947 = vtanh.f32 %v1163_v34  ;;  %v2678_v40 = vpop.f32.mrb[31].mxu0  ;;  %v2469_v42 = vmul.f32 -1.442695, %v1163_v34 }
 0xec7   :  { %2949 = vpow2.f32 %v2468_v43 }
 0xed0   :  { %v2948_v41 = vpop.eup %2947 }
 0xed1   :  { %1197 = vrot.lane.b32.xlu1 %v2948_v41, %s3285_s1  ;;  %v2950_v46 = vpop.eup %2949 }
 0xed2   :  { %v1167_v29 = vadd.f32 1.0, %v2950_v46 }
 0xed4   :  { %2951 = vrcp.f32 %v1167_v29 }
 0xed5   :  { %2953 = vpow2.f32 %v2469_v42 }
 0xede   :  { %v2952_v45 = vpop.eup %2951 }
 0xedf   :  { %v2954_v35 = vpop.eup %2953  ;;  %v1171_v53 = vmul.f32 %v2952_v45, %v3710_v52 }
 0xee0   :  { %v1191_v33 = vadd.f32 1.0, %v2954_v35 }
 0xee2   :  { %2955 = vrcp.f32 %v1191_v33 }
 0xeec   :  { %v2956_v49 = vpop.eup %2955 }
 0xeed   :  { %v1195_v48 = vmul.f32 %v2956_v49, %v3715_v61 }
 0xf28   :  { %v1174_v37 = vpop.permute.xlu0 %1173 }
 0xf29   :  { %v1176_v47 = vmul.f32 %v2952_v45, %v1174_v37 }
 0xf2b   :  { %1178 = vrot.lane.b32.xlu0 %v1176_v47, %s3296_s19 }
 0xf43   :  { %v1198_v39 = vpop.permute.xlu1 %1197 }
 0xf44   :  { %v1200_v51 = vmul.f32 %v2956_v49, %v1198_v39 }
 0xf46   :  { %1202 = vrot.lane.b32.xlu1 %v1200_v51, %s3296_s19 }
 0xf9d   :  { %v1179_v44 = vpop.permute.xlu0 %1178 }
 0xf9e   :  { %v3750_v55 = vadd.f32 %v1179_v44, %v1171_v53 }
 0xfa0   :  { %2957 = vtanh.f32 %v3750_v55 }
 0xfaa   :  { %v2958_v56 = vpop.eup %2957 }
 0xfab   :  { %1184 = vrot.lane.b32.xlu0 %v2958_v56, %s3285_s1 }
 0xfb8   :  { %v1203_v57 = vpop.permute.xlu1 %1202 }
 0xfb9   :  { %v3755_v58 = vadd.f32 %v1203_v57, %v1195_v48 }
 0xfbb   :  { %2959 = vtanh.f32 %v3755_v58 }
 0xfc5   :  { %v2960_v60 = vpop.eup %2959 }
 0xfc6   :  { %1208 = vrot.lane.b32.xlu1 %v2960_v60, %s3285_s1 }
0x101d   :  { %v1185_v63 = vpop.permute.xlu0 %1184 }
0x101e   :  { %v3759_v52 = vmul.f32 %v2952_v45, %v1185_v63 }
0x1020   :  { %v1222_v6 = vpack.c.bf16 %v3759_v52, %v3759_v52 }
0x1022   :  { %1224 = vrot.lane.b32.xlu0 %v1222_v6, %s3296_s19 }
0x1038   :  { %v1209_v8 = vpop.permute.xlu1 %1208 }
0x1039   :  { %v3764_v10 = vmul.f32 %v2956_v49, %v1209_v8 }
0x103b   :  { %v1270_v61 = vpack.c.bf16 %v3764_v10, %v3764_v10 }
0x103d   :  { %1272 = vrot.lane.b32.xlu1 %v1270_v61, %s3296_s19 }
0x1094   :  { %v1225_v5 = vpop.permute.xlu0 %1224 }
0x1095   :  { %2684 = vmatmul.mubr.msk.bf16.vlgmr.msra.gmra.mrb[24].mxu1 %vm412_vm2, %v1225_v5 }
0x1096   :  { %2696 = vmatpush3.bf16.msra.mxu1 %v3535_v11  ;;  %2699 = vmatprep.mubr.msk.bf16.mxu1 %vm3295_vm1, %v3294_v12 }
0x1097   :  { %2697 = vmatprep.subr.bf16.mxu1 %v3294_v12 }
0x109a   :  { %2698 = vmatpush3.bf16.msra.mxu1 %v3541_v13 }
0x10af   :  { %v1273_v7 = vpop.permute.xlu1 %1272 }
0x10b0   :  { %2692 = vmatmul.mubr.msk.bf16.vlgmr.msra.gmra.mrb[32].mxu0 %vm412_vm2, %v1273_v7 }
0x10b1   :  { %2704 = vmatpush3.bf16.msra.mxu0 %v3550_v15  ;;  %2707 = vmatprep.mubr.msk.bf16.mxu0 %vm3295_vm1, %v3294_v12 }
0x10b2   :  { %2705 = vmatprep.subr.bf16.mxu0 %v3294_v12 }
0x10b5   :  { %2706 = vmatpush3.bf16.msra.mxu0 %v3553_v16 }
0x1168   :  { %v1263_v11 = vpop.f32.mrb[24].mxu1 }
0x1169   :  { %v1269_v9 = vadd.f32 %v1263_v11, %v3524_v50  ;;  %v2685_v23 = vpop.f32.mrb[25].mxu1 }
0x116a   :  { %v1266_v24 = vpop.f32.mrb[26].mxu1 }
0x116b   :  { %2961 = vtanh.f32 %v1269_v9  ;;  %v2686_v25 = vpop.f32.mrb[27].mxu1  ;;  %v2472_v16 = vmul.f32 -1.442695, %v1269_v9 }
0x1175   :  { %v2962_v13 = vpop.eup %2961 }
0x1176   :  { %1327 = vrot.lane.b32.xlu0 %v2962_v13, %s3285_s1 }
0x1183   :  { %v1311_v26 = vpop.f32.mrb[32].mxu0 }
0x1184   :  { %v1317_v15 = vadd.f32 %v1311_v26, %v3505_v31  ;;  %v2693_v28 = vpop.f32.mrb[33].mxu0 }
0x1185   :  { %v1314_v30 = vpop.f32.mrb[34].mxu0 }
0x1186   :  { %2963 = vtanh.f32 %v1317_v15  ;;  %v2694_v32 = vpop.f32.mrb[35].mxu0  ;;  %v2473_v38 = vmul.f32 -1.442695, %v1317_v15 }
0x1187   :  { %2965 = vpow2.f32 %v2472_v16 }
0x1190   :  { %v2964_v34 = vpop.eup %2963 }
0x1191   :  { %1351 = vrot.lane.b32.xlu1 %v2964_v34, %s3285_s1  ;;  %v2966_v50 = vpop.eup %2965 }
0x1192   :  { %v1321_v36 = vadd.f32 1.0, %v2966_v50 }
0x1194   :  { %2967 = vrcp.f32 %v1321_v36 }
0x1195   :  { %2969 = vpow2.f32 %v2473_v38 }
0x119e   :  { %v2968_v40 = vpop.eup %2967 }
0x119f   :  { %v2970_v31 = vpop.eup %2969  ;;  %v1325_v37 = vmul.f32 %v2968_v40, %v3750_v55 }
0x11a0   :  { %v1345_v46 = vadd.f32 1.0, %v2970_v31 }
0x11a2   :  { %2971 = vrcp.f32 %v1345_v46 }
0x11ac   :  { %v2972_v29 = vpop.eup %2971 }
0x11ad   :  { %v1349_v49 = vmul.f32 %v2972_v29, %v3755_v58 }
0x11e8   :  { %v1328_v41 = vpop.permute.xlu0 %1327 }
0x11e9   :  { %v1330_v43 = vmul.f32 %v2968_v40, %v1328_v41 }
0x11eb   :  { %1332 = vrot.lane.b32.xlu0 %v1330_v43, %s3296_s19 }
0x1203   :  { %v1352_v42 = vpop.permute.xlu1 %1351 }
0x1204   :  { %v1354_v45 = vmul.f32 %v2972_v29, %v1352_v42 }
0x1206   :  { %1356 = vrot.lane.b32.xlu1 %v1354_v45, %s3296_s19 }
0x125d   :  { %v1333_v47 = vpop.permute.xlu0 %1332 }
0x125e   :  { %v1335_v35 = vadd.f32 %v1333_v47, %v1325_v37 }
0x1260   :  { %2973 = vtanh.f32 %v1335_v35 }
0x126a   :  { %v2974_v33 = vpop.eup %2973 }
0x126b   :  { %1338 = vrot.lane.b32.xlu0 %v2974_v33, %s3285_s1 }
0x1278   :  { %v1357_v39 = vpop.permute.xlu1 %1356 }
0x1279   :  { %v1359_v51 = vadd.f32 %v1357_v39, %v1349_v49 }
0x127b   :  { %2975 = vtanh.f32 %v1359_v51 }
0x1285   :  { %v2976_v53 = vpop.eup %2975 }
0x1286   :  { %1362 = vrot.lane.b32.xlu1 %v2976_v53, %s3285_s1 }
0x12dd   :  { %v1339_v44 = vpop.permute.xlu0 %1338 }
0x12de   :  { %v1341_v56 = vmul.f32 %v2968_v40, %v1339_v44 }
0x12e0   :  { %v1376_v48 = vpack.c.bf16 %v1341_v56, %v1341_v56 }
0x12e2   :  { %1378 = vrot.lane.b32.xlu0 %v1376_v48, %s3296_s19 }
0x12f8   :  { %v1363_v55 = vpop.permute.xlu1 %1362 }
0x12f9   :  { %v3792_v57 = vmul.f32 %v2972_v29, %v1363_v55 }
0x12fb   :  { %v1424_v60 = vpack.c.bf16 %v3792_v57, %v3792_v57 }
0x12fd   :  { %1426 = vrot.lane.b32.xlu1 %v1424_v60, %s3296_s19 }
0x1354   :  { %v1379_v58 = vpop.permute.xlu0 %1378 }
0x1355   :  { %2700 = vmatmul.mubr.msk.bf16.vlgmr.msra.gmra.mrb[28].mxu1 %vm412_vm2, %v1379_v58 }
0x136f   :  { %v1427_v63 = vpop.permute.xlu1 %1426 }
0x1370   :  { %2708 = vmatmul.mubr.msk.bf16.vlgmr.msra.gmra.mrb[36].mxu0 %vm412_vm2, %v1427_v63 }
0x1428   :  { %v1417_v6 = vpop.f32.mrb[28].mxu1 }
0x1429   :  { %v1423_v8 = vadd.f32 %v1417_v6, %v3528_v54  ;;  %v2701_v61 = vpop.f32.mrb[29].mxu1 }
0x142a   :  { %v1420_v5 = vpop.f32.mrb[30].mxu1 }
0x142b   :  { %2977 = vtanh.f32 %v1423_v8  ;;  %v2702_v7 = vpop.f32.mrb[31].mxu1  ;;  %v2476_v15 = vmul.f32 -1.442695, %v1423_v8 }
0x1435   :  { %v2978_v11 = vpop.eup %2977 }
0x1436   :  { %1481 = vrot.lane.b32.xlu0 %v2978_v11, %s3285_s1 }
0x1443   :  { %v1465_v9 = vpop.f32.mrb[36].mxu0 }
0x1444   :  { %v1471_v23 = vadd.f32 %v1465_v9, %v3501_v27  ;;  %v2709_v24 = vpop.f32.mrb[37].mxu0 }
0x1445   :  { %v1468_v25 = vpop.f32.mrb[38].mxu0 }
0x1446   :  { %2979 = vtanh.f32 %v1471_v23  ;;  %v2710_v13 = vpop.f32.mrb[39].mxu0  ;;  %v2477_v30 = vmul.f32 -1.442695, %v1471_v23 }
0x1447   :  { %2981 = vpow2.f32 %v2476_v15 }
0x1450   :  { %v2980_v26 = vpop.eup %2979 }
0x1451   :  { %1505 = vrot.lane.b32.xlu1 %v2980_v26, %s3285_s1  ;;  %v2982_v54 = vpop.eup %2981 }
0x1452   :  { %v1475_v28 = vadd.f32 1.0, %v2982_v54 }
0x1454   :  { %2983 = vrcp.f32 %v1475_v28 }
0x1455   :  { %2985 = vpow2.f32 %v2477_v30 }
0x145e   :  { %v2984_v32 = vpop.eup %2983 }
0x145f   :  { %v2986_v27 = vpop.eup %2985  ;;  %v1479_v41 = vmul.f32 %v2984_v32, %v1335_v35 }
0x1460   :  { %v1499_v50 = vadd.f32 1.0, %v2986_v27 }
0x1462   :  { %2987 = vrcp.f32 %v1499_v50 }
0x146c   :  { %v2988_v36 = vpop.eup %2987 }
0x146d   :  { %v1503_v29 = vmul.f32 %v2988_v36, %v1359_v51 }
0x14a8   :  { %v1482_v34 = vpop.permute.xlu0 %1481 }
0x14a9   :  { %v1484_v16 = vmul.f32 %v2984_v32, %v1482_v34 }
0x14ab   :  { %1486 = vrot.lane.b32.xlu0 %v1484_v16, %s3296_s19 }
0x14c3   :  { %v1506_v38 = vpop.permute.xlu1 %1505 }
0x14c4   :  { %v1508_v40 = vmul.f32 %v2988_v36, %v1506_v38 }
0x14c6   :  { %1510 = vrot.lane.b32.xlu1 %v1508_v40, %s3296_s19 }
0x151d   :  { %v1487_v43 = vpop.permute.xlu0 %1486 }
0x151e   :  { %v1489_v31 = vadd.f32 %v1487_v43, %v1479_v41 }
0x1520   :  { %2989 = vtanh.f32 %v1489_v31 }
0x152a   :  { %v2990_v46 = vpop.eup %2989 }
0x152b   :  { %1492 = vrot.lane.b32.xlu0 %v2990_v46, %s3285_s1 }
0x152f   :  { %409 = vrot.lane.b32.xlu0 %v3558_v18, %s3296_s19 }
0x1533   :  { %597 = vrot.lane.b32.xlu0 %v3599_v17, %s3296_s19 }
0x1537   :  { %751 = vrot.lane.b32.xlu0 %v3639_v4, %s3296_s19 }
0x1538   :  { %v1511_v42 = vpop.permute.xlu1 %1510 }
0x1539   :  { %v1513_v45 = vadd.f32 %v1511_v42, %v1503_v29 }
0x153b   :  { %2991 = vtanh.f32 %v1513_v45  ;;  %905 = vrot.lane.b32.xlu0 %v3679_v62, %s3296_s19 }
0x153f   :  { %1059 = vrot.lane.b32.xlu0 %v3719_v59, %s3296_s19 }
0x1543   :  { %1213 = vrot.lane.b32.xlu0 %v3759_v52, %s3296_s19 }
0x1545   :  { %v2992_v18 = vpop.eup %2991 }
0x1546   :  { %1516 = vrot.lane.b32.xlu1 %v2992_v18, %s3285_s1 }
0x1547   :  { %1367 = vrot.lane.b32.xlu0 %v1341_v56, %s3296_s19 }
0x154a   :  { %415 = vrot.lane.b32.xlu1 %v3563_v21, %s3285_s1 }
0x154e   :  { %602 = vrot.lane.b32.xlu1 %v3604_v22, %s3285_s1 }
0x1552   :  { %756 = vrot.lane.b32.xlu1 %v3644_v20, %s3285_s1 }
0x1556   :  { %910 = vrot.lane.b32.xlu1 %v3684_v19, %s3285_s1 }
0x155a   :  { %1064 = vrot.lane.b32.xlu1 %v3724_v14, %s3285_s1 }
0x155e   :  { %1218 = vrot.lane.b32.xlu1 %v3764_v10, %s3285_s1 }
0x1562   :  { %1372 = vrot.lane.b32.xlu1 %v3792_v57, %s3285_s1 }
0x159d   :  { %v1493_v17 = vpop.permute.xlu0 %1492 }
0x159e   :  { %v1495_v21 = vmul.f32 %v2984_v32, %v1493_v17 }
0x15a0   :  { %1521 = vrot.lane.b32.xlu0 %v1495_v21, %s3296_s19 }
0x15a1   :  { %v410_v22 = vpop.permute.xlu0 %409 }
0x15a2   :  { %413 = vst.msk [vmem:[#allocation2] sm:$0xff] %vm412_vm2, %v410_v22 }
0x15a5   :  { %v598_v4 = vpop.permute.xlu0 %597 }
0x15a6   :  { %600 = vst.msk [vmem:[#allocation2 + $0x8] sm:$0xff] %vm412_vm2, %v598_v4 }
0x15a9   :  { %v752_v20 = vpop.permute.xlu0 %751 }
0x15aa   :  { %754 = vst.msk [vmem:[#allocation2 + $0x10] sm:$0xff] %vm412_vm2, %v752_v20 }
0x15ad   :  { %v906_v62 = vpop.permute.xlu0 %905 }
0x15ae   :  { %908 = vst.msk [vmem:[#allocation2 + $0x18] sm:$0xff] %vm412_vm2, %v906_v62 }
0x15af   :  { %3228 = shalt.err (!%p3225_p2)  }
0x15b0   :  { %s3229_s6 = scalar_lea.vmem %s187_s22, 1024  ;;  %p3234_p4 = scmp.lt.s32.totalorder %s187_s22, %s187_s22 }
0x15b1   :  { %p3230_p3 = scmp.ne.s32.totalorder %s187_s22, %s3229_s6  ;;  %p3235_p5 = scmp.lt.s32.totalorder %s3229_s6, %s3229_s6 }
0x15b3   :  { %p3236_p6 = por %p3235_p5, %p3234_p4 }
0x15b5   :  { %p3237_p7 = pnand %p3236_p6, %p3230_p3 }
0x15b7   :  { %3240 = shalt.err (!%p3237_p7)  }
0x15b8   :  { %189 = dma.hbm_to_vmem [thread:$0]  %s4052_s12, 1024, %s187_s22, [#allocation8 + $0x4]  ;;  %v1060_v19 = vpop.permute.xlu0 %1059  ;;  %v1517_v59 = vpop.permute.xlu1 %1516  ;;  %vm418_vm3 = vcmask 523520  }
0x15b9   :  { %v1519_v14 = vmul.f32 %v2988_v36, %v1517_v59 }
0x15bb   :  { %1526 = vrot.lane.b32.xlu1 %v1519_v14, %s3285_s1 }
0x15bc   :  { %v1214_v52 = vpop.permute.xlu0 %1213  ;;  %v416_v10 = vpop.permute.xlu1 %415 }
0x15bd   :  { %419 = vst.msk [vmem:[#allocation2 + $0x38] sm:$0xff] %vm418_vm3, %v416_v10 }
0x15c0   :  { %v603_v37 = vpop.permute.xlu1 %602  ;;  %v1368_v47 = vpop.permute.xlu0 %1367 }
0x15c1   :  { %605 = vst.msk [vmem:[#allocation2 + $0x30] sm:$0xff] %vm418_vm3, %v603_v37 }
0x15c2   :  { %1370 = vst.msk [vmem:[#allocation2 + $0x30] sm:$0xff] %vm412_vm2, %v1368_v47 }
0x15c4   :  { %v757_v35 = vpop.permute.xlu1 %756 }
0x15c5   :  { %759 = vst.msk [vmem:[#allocation2 + $0x28] sm:$0xff] %vm418_vm3, %v757_v35 }
0x15c6   :  { %1216 = vst.msk [vmem:[#allocation2 + $0x28] sm:$0xff] %vm412_vm2, %v1214_v52 }
0x15c8   :  { %v911_v33 = vpop.permute.xlu1 %910 }
0x15c9   :  { %913 = vst.msk [vmem:[#allocation2 + $0x20] sm:$0xff] %vm418_vm3, %v911_v33 }
0x15ca   :  { %1062 = vst.msk [vmem:[#allocation2 + $0x20] sm:$0xff] %vm412_vm2, %v1060_v19 }
0x15cc   :  { %v1065_v49 = vpop.permute.xlu1 %1064 }
0x15cd   :  { %1067 = vst.msk [vmem:[#allocation2 + $0x18] sm:$0xff] %vm418_vm3, %v1065_v49 }
0x15d0   :  { %v1219_v39 = vpop.permute.xlu1 %1218 }
0x15d1   :  { %1221 = vst.msk [vmem:[#allocation2 + $0x10] sm:$0xff] %vm418_vm3, %v1219_v39 }
0x15d4   :  { %v1373_v51 = vpop.permute.xlu1 %1372 }
0x15d5   :  { %1375 = vst.msk [vmem:[#allocation2 + $0x8] sm:$0xff] %vm418_vm3, %v1373_v51 }
0x1612   :  { %v1522_v53 = vpop.permute.xlu0 %1521 }
0x1613   :  { %1524 = vst.msk [vmem:[#allocation2 + $0x38] sm:$0xff] %vm412_vm2, %v1522_v53 }
0x162d   :  { %v1527_v44 = vpop.permute.xlu1 %1526 }
0x162e   :  { %1529 = vst.msk [vmem:[#allocation2] sm:$0xff] %vm418_vm3, %v1527_v44 }
0x162f   :  { %3269 = dma.done.wait [#allocation8], 512 }
0x1630   :  { %3270 = vsyncadd [#allocation8], 4294966784 }
0x1631   :  { %3271 = dma.done.wait [#allocation8 + $0x1], 256 }
0x1632   :  { %3272 = vsyncadd [#allocation8 + $0x1], 4294967040 }
0x1633   :  { %3273 = dma.done.wait [#allocation8 + $0x2], 512 }
0x1634   :  { %3274 = vsyncadd [#allocation8 + $0x2], 4294966784 }
0x1635   :  { %3275 = dma.done.wait [#allocation8 + $0x3], 512 }
0x1636   :  { %3276 = vsyncadd [#allocation8 + $0x3], 4294966784 }
0x1637   :  { %3277 = dma.done.wait [#allocation8 + $0x4], 1024 }
0x1638   :  { %3278 = vsyncadd [#allocation8 + $0x4], 4294966272  ;;  %2727 = vmatprep.subr.bf16.mxu0 %v3294_v12  ;;  %2731 = vmatprep.mubr.msk.bf16.mxu0 %vm3295_vm1, %v3294_v12  ;;  %v1558_v56 = vld [vmem:[#allocation3] sm:$0xff]  ;;  %v1559_v48 = vld [vmem:[#allocation3 + $0x8] sm:$0xff]  ;;  %s3298_s18 = smov [#allocation17]  }
0x1639   :  { %2711 = vmatprep.subr.bf16.mxu1 %v1558_v56  ;;  %v1546_v55 = vld [vmem:[#allocation2] sm:$0xff]  ;;  %v1547_v57 = vld [vmem:[#allocation2 + $0x8] sm:$0xff]  ;;  %v1560_v58 = vld [vmem:[#allocation3 + $0x10] sm:$0xff]  ;;  %s2375_s20 = sshll.u32 %s3298_s18, 4  ;;  %s2376_s20 = int_to_ptr.vmem [resolvable:$true] %s2375_s20 }
0x163a   :  { %2712 = vmatpush3.bf16.msra.mxu1 %v1558_v56  ;;  %v1554_v60 = vpack.c.bf16 %v1547_v57, %v1546_v55  ;;  %v1561_v63 = vld [vmem:[#allocation3 + $0x18] sm:$0xff]  ;;  %v1548_v6 = vld [vmem:[#allocation2 + $0x10] sm:$0xff]  ;;  %v3873_v5 = vld [vmem:[%s4047_s7] ss:$0 sm:$0xff]  ;;  %p3246_p9 = scmp.lt.s32.totalorder %s2376_s20, %s2376_s20 }
0x163b   :  { %2713 = vmatprep.subr.bf16.mxu1 %v1559_v48  ;;  %v1549_v8 = vld [vmem:[#allocation2 + $0x18] sm:$0xff]  ;;  %v3881_v32 = vld [vmem:[#allocation4] sm:$0xff]  ;;  %v3886_v34 = vld [vmem:[#allocation4 + $0x8] sm:$0xff] }
0x163c   :  { %2719 = vmatprep.mubr.msk.bf16.mxu1 %vm278_vm0, %v1554_v60  ;;  %v1555_v61 = vpack.c.bf16 %v1549_v8, %v1548_v6  ;;  %2728 = vmatpush3.bf16.msra.mxu0 %v3881_v32 }
0x163d   :  { %2729 = vmatprep.subr.bf16.mxu0 %v3294_v12 }
0x163e   :  { %2714 = vmatpush3.bf16.msra.mxu1 %v1559_v48 }
0x163f   :  { %2715 = vmatprep.subr.bf16.mxu1 %v1560_v58 }
0x1640   :  { %2730 = vmatpush3.bf16.msra.mxu0 %v3886_v34 }
0x1641   :  { %2735 = vmatprep.subr.bf16.mxu0 %v3294_v12 }
0x1642   :  { %2716 = vmatpush3.bf16.msra.mxu1 %v1560_v58 }
0x1643   :  { %2717 = vmatprep.subr.bf16.mxu1 %v1561_v63 }
0x1646   :  { %2718 = vmatpush3.bf16.msra.mxu1 %v1561_v63 }
0x1647   :  { %2751 = vmatprep.subr.bf16.mxu1 %v3294_v12 }
0x1649   :  { %2720 = vmatmul.mubr.msk.bf16.vlgmr.msra.gmra.mrb[32].mxu1 %vm278_vm0, %v1555_v61 }
0x164a   :  { %2752 = vmatpush3.bf16.msra.mxu1 %v3881_v32 }
0x164b   :  { %2753 = vmatprep.subr.bf16.mxu1 %v3294_v12 }
0x164e   :  { %2754 = vmatpush3.bf16.msra.mxu1 %v3886_v34 }
0x164f   :  { %2767 = vmatprep.subr.bf16.mxu1 %v3294_v12 }
0x171c   :  { %v3875_v7 = vpop.f32.mrb[32].mxu1 }
0x171d   :  { %v1615_v11 = vpop.f32.mrb[33].mxu1  ;;  %v1624_v35 = vadd.f32 %v3875_v7, %v3873_v5 }
0x171e   :  { %v1616_v9 = vadd.f32 %v3873_v5, %v1615_v11  ;;  %v3878_v23 = vpop.f32.mrb[34].mxu1 }
0x171f   :  { %v1618_v24 = vpop.f32.mrb[35].mxu1 }
0x1720   :  { %2993 = vtanh.f32 %v1616_v9  ;;  %v2483_v13 = vmul.f32 -1.442695, %v1616_v9  ;;  %v1619_v40 = vadd.f32 %v3873_v5, %v1618_v24 }
0x1722   :  { %2995 = vpow2.f32 %v2483_v13 }
0x172a   :  { %v2994_v25 = vpop.eup %2993 }
0x172b   :  { %1656 = vrot.lane.b32.xlu0 %v2994_v25, %s3285_s1  ;;  %v1627_v25 = vadd.f32 %v3878_v23, %v3873_v5 }
0x172c   :  { %v2996_v26 = vpop.eup %2995 }
0x172d   :  { %v1651_v15 = vadd.f32 1.0, %v2996_v26 }
0x172f   :  { %2997 = vrcp.f32 %v1651_v15 }
0x1739   :  { %v2998_v54 = vpop.eup %2997 }
0x179d   :  { %v1657_v28 = vpop.permute.xlu0 %1656 }
0x179e   :  { %v1659_v30 = vmul.f32 %v2998_v54, %v1657_v28 }
0x17a0   :  { %2999 = vtanh.f32 %v1659_v30 }
0x17aa   :  { %v3000_v16 = vpop.eup %2999 }
0x17ab   :  { %1662 = vrot.lane.b32.xlu0 %v3000_v16, %s3293_s4 }
0x17af   :  { %1722 = vrot.lane.b32.xlu0 %v1659_v30, %s3296_s19 }
0x181d   :  { %v1663_v27 = vpop.permute.xlu0 %1662 }
0x181e   :  { %v1665_v50 = vmul.f32 %v2998_v54, %v1663_v27 }
0x1820   :  { %v1666_v36 = vpack.c.bf16 %v1665_v50, %v1665_v50 }
0x1821   :  { %v1723_v20 = vpop.permute.xlu0 %1722 }
0x1822   :  { %1668 = vrot.lane.b32.xlu1 %v1666_v36, %s3296_s19 }
0x1894   :  { %v1669_v38 = vpop.permute.xlu1 %1668 }
0x1895   :  { %2732 = vmatmul.mubr.msk.bf16.vlgmr.msra.gmra.mrb[40].mxu0 %vm412_vm2, %v1669_v38 }
0x1896   :  { %2736 = vmatpush3.bf16.msra.mxu0 %v3881_v32  ;;  %2739 = vmatprep.mubr.msk.bf16.mxu0 %vm3295_vm1, %v3294_v12 }
0x1897   :  { %2737 = vmatprep.subr.bf16.mxu0 %v3294_v12 }
0x189a   :  { %2738 = vmatpush3.bf16.msra.mxu0 %v3886_v34 }
0x189b   :  { %2743 = vmatprep.subr.bf16.mxu0 %v3294_v12 }
0x1968   :  { %v1707_v41 = vpop.f32.mrb[40].mxu0 }
0x1969   :  { %v1713_v43 = vadd.f32 %v1707_v41, %v1619_v40  ;;  %v2733_v31 = vpop.f32.mrb[41].mxu0 }
0x196a   :  { %v1710_v46 = vpop.f32.mrb[42].mxu0  ;;  %v1550_v31 = vld [vmem:[#allocation2 + $0x20] sm:$0xff] }
0x196b   :  { %3001 = vtanh.f32 %v1713_v43  ;;  %v2734_v29 = vpop.f32.mrb[43].mxu0  ;;  %v2485_v45 = vmul.f32 -1.442695, %v1713_v43  ;;  %v1551_v46 = vld [vmem:[#allocation2 + $0x28] sm:$0xff] }
0x196c   :  { %v1552_v29 = vld [vmem:[#allocation2 + $0x30] sm:$0xff] }
0x196d   :  { %3003 = vpow2.f32 %v2485_v45  ;;  %v3932_v45 = vld [vmem:[#allocation2 + $0x38] sm:$0xff] }
0x1975   :  { %v3002_v42 = vpop.eup %3001 }
0x1976   :  { %1727 = vrot.lane.b32.xlu1 %v3002_v42, %s3285_s1  ;;  %v1556_v42 = vpack.c.bf16 %v1551_v46, %v1550_v31 }
0x1977   :  { %v3004_v18 = vpop.eup %3003 }
0x1978   :  { %v1717_v17 = vadd.f32 1.0, %v3004_v18  ;;  %v1557_v18 = vpack.c.bf16 %v3932_v45, %v1552_v29  ;;  %2723 = vmatprep.mubr.msk.bf16.mxu1 %vm278_vm0, %v1556_v42 }
0x197a   :  { %3005 = vrcp.f32 %v1717_v17  ;;  %2724 = vmatmul.mubr.msk.bf16.gmra.mrb[36].mxu1 %vm278_vm0, %v1557_v18 }
0x197b   :  { %2755 = vmatprep.mubr.msk.bf16.mxu1 %vm3295_vm1, %v3294_v12 }
0x1984   :  { %v3006_v21 = vpop.eup %3005 }
0x1985   :  { %v1725_v62 = vmul.f32 %v3006_v21, %v1723_v20 }
0x19e8   :  { %v1728_v22 = vpop.permute.xlu1 %1727 }
0x19e9   :  { %v1730_v4 = vmul.f32 %v3006_v21, %v1728_v22 }
0x19eb   :  { %1732 = vrot.lane.b32.xlu1 %v1730_v4, %s3296_s19 }
0x1a4d   :  { %v3941_v20 = vpop.f32.mrb[36].mxu1 }
0x1a5d   :  { %v1733_v19 = vpop.permute.xlu1 %1732 }
0x1a5e   :  { %v1735_v59 = vadd.f32 %v1733_v19, %v1725_v62  ;;  %v1631_v62 = vpop.f32.mrb[37].mxu1 }
0x1a5f   :  { %v3943_v19 = vpop.f32.mrb[38].mxu1 }
0x1a60   :  { %3007 = vtanh.f32 %v1735_v59 }
0x1a6a   :  { %v3008_v14 = vpop.eup %3007 }
0x1a6b   :  { %1738 = vrot.lane.b32.xlu0 %v3008_v14, %s3285_s1 }
0x1add   :  { %v1739_v52 = vpop.permute.xlu0 %1738 }
0x1ade   :  { %v1741_v10 = vmul.f32 %v3006_v21, %v1739_v52  ;;  %v1632_v52 = vadd.f32 %v3873_v5, %v1631_v62 }
0x1ae0   :  { %v1742_v37 = vpack.c.bf16 %v1741_v10, %v1741_v10 }
0x1ae2   :  { %1744 = vrot.lane.b32.xlu1 %v1742_v37, %s3296_s19 }
0x1b54   :  { %v1745_v47 = vpop.permute.xlu1 %1744 }
0x1b55   :  { %2740 = vmatmul.mubr.msk.bf16.vlgmr.msra.gmra.mrb[44].mxu0 %vm412_vm2, %v1745_v47 }
0x1b56   :  { %2744 = vmatpush3.bf16.msra.mxu0 %v3881_v32  ;;  %2747 = vmatprep.mubr.msk.bf16.mxu0 %vm3295_vm1, %v3294_v12 }
0x1b57   :  { %2745 = vmatprep.subr.bf16.mxu0 %v3294_v12 }
0x1b5a   :  { %2746 = vmatpush3.bf16.msra.mxu0 %v3886_v34 }
0x1b5b   :  { %2759 = vmatprep.subr.bf16.mxu0 %v3294_v12 }
0x1c28   :  { %v1783_v33 = vpop.f32.mrb[44].mxu0 }
0x1c29   :  { %v1789_v49 = vadd.f32 %v1783_v33, %v1624_v35  ;;  %v2741_v39 = vpop.f32.mrb[45].mxu0 }
0x1c2a   :  { %v1786_v51 = vpop.f32.mrb[46].mxu0 }
0x1c2b   :  { %3009 = vtanh.f32 %v1789_v49  ;;  %v2742_v53 = vpop.f32.mrb[47].mxu0  ;;  %v2487_v56 = vmul.f32 -1.442695, %v1789_v49 }
0x1c2d   :  { %3011 = vpow2.f32 %v2487_v56 }
0x1c35   :  { %v3010_v44 = vpop.eup %3009 }
0x1c36   :  { %1799 = vrot.lane.b32.xlu0 %v3010_v44, %s3285_s1 }
0x1c37   :  { %v3012_v48 = vpop.eup %3011 }
0x1c38   :  { %v1793_v55 = vadd.f32 1.0, %v3012_v48 }
0x1c3a   :  { %3013 = vrcp.f32 %v1793_v55 }
0x1c44   :  { %v3014_v57 = vpop.eup %3013 }
0x1c45   :  { %v1797_v63 = vmul.f32 %v3014_v57, %v1735_v59  ;;  %v1634_v59 = vpop.f32.mrb[39].mxu1 }
0x1ca8   :  { %v1800_v60 = vpop.permute.xlu0 %1799 }
0x1ca9   :  { %v1802_v58 = vmul.f32 %v3014_v57, %v1800_v60 }
0x1cab   :  { %1804 = vrot.lane.b32.xlu1 %v1802_v58, %s3296_s19 }
0x1d1d   :  { %v1805_v6 = vpop.permute.xlu1 %1804 }
0x1d1e   :  { %v1807_v8 = vadd.f32 %v1805_v6, %v1797_v63 }
0x1d20   :  { %3015 = vtanh.f32 %v1807_v8 }
0x1d2a   :  { %v3016_v61 = vpop.eup %3015 }
0x1d2b   :  { %1810 = vrot.lane.b32.xlu0 %v3016_v61, %s3285_s1 }
0x1d9d   :  { %v1811_v7 = vpop.permute.xlu0 %1810 }
0x1d9e   :  { %v1813_v11 = vmul.f32 %v3014_v57, %v1811_v7  ;;  %v1635_v7 = vadd.f32 %v3873_v5, %v1634_v59 }
0x1da0   :  { %v1814_v9 = vpack.c.bf16 %v1813_v11, %v1813_v11 }
0x1da2   :  { %1816 = vrot.lane.b32.xlu1 %v1814_v9, %s3296_s19 }
0x1e14   :  { %v1817_v24 = vpop.permute.xlu1 %1816 }
0x1e15   :  { %2748 = vmatmul.mubr.msk.bf16.vlgmr.msra.gmra.mrb[48].mxu0 %vm412_vm2, %v1817_v24 }
0x1e16   :  { %2760 = vmatpush3.bf16.msra.mxu0 %v3881_v32  ;;  %2763 = vmatprep.mubr.msk.bf16.mxu0 %vm3295_vm1, %v3294_v12 }
0x1e17   :  { %2761 = vmatprep.subr.bf16.mxu0 %v3294_v12 }
0x1e1a   :  { %2762 = vmatpush3.bf16.msra.mxu0 %v3886_v34 }
0x1e1b   :  { %2775 = vmatprep.subr.bf16.mxu0 %v3294_v12 }
0x1ee8   :  { %v1855_v13 = vpop.f32.mrb[48].mxu0 }
0x1ee9   :  { %v1861_v26 = vadd.f32 %v1855_v13, %v1627_v25  ;;  %v2749_v15 = vpop.f32.mrb[49].mxu0 }
0x1eea   :  { %v1858_v54 = vpop.f32.mrb[50].mxu0 }
0x1eeb   :  { %3017 = vtanh.f32 %v1861_v26  ;;  %v2750_v28 = vpop.f32.mrb[51].mxu0  ;;  %v2489_v16 = vmul.f32 -1.442695, %v1861_v26 }
0x1eed   :  { %3019 = vpow2.f32 %v2489_v16 }
0x1ef5   :  { %v3018_v30 = vpop.eup %3017 }
0x1ef6   :  { %1871 = vrot.lane.b32.xlu0 %v3018_v30, %s3285_s1 }
0x1ef7   :  { %v3020_v27 = vpop.eup %3019 }
0x1ef8   :  { %v1865_v50 = vadd.f32 1.0, %v3020_v27 }
0x1efa   :  { %3021 = vrcp.f32 %v1865_v50 }
0x1f04   :  { %v3022_v36 = vpop.eup %3021 }
0x1f05   :  { %v1869_v23 = vmul.f32 %v3022_v36, %v1807_v8 }
0x1f68   :  { %v1872_v38 = vpop.permute.xlu0 %1871 }
0x1f69   :  { %v1874_v40 = vmul.f32 %v3022_v36, %v1872_v38 }
0x1f6b   :  { %1876 = vrot.lane.b32.xlu1 %v1874_v40, %s3296_s19 }
0x1fdd   :  { %v1877_v41 = vpop.permute.xlu1 %1876 }
0x1fde   :  { %v1879_v43 = vadd.f32 %v1877_v41, %v1869_v23 }
0x1fe0   :  { %3023 = vtanh.f32 %v1879_v43 }
0x1fea   :  { %v3024_v17 = vpop.eup %3023 }
0x1feb   :  { %1882 = vrot.lane.b32.xlu0 %v3024_v17, %s3285_s1 }
0x205d   :  { %v1883_v21 = vpop.permute.xlu0 %1882 }
0x205e   :  { %v1885_v22 = vmul.f32 %v3022_v36, %v1883_v21 }
0x2060   :  { %v1886_v4 = vpack.c.bf16 %v1885_v22, %v1885_v22 }
0x2062   :  { %1888 = vrot.lane.b32.xlu1 %v1886_v4, %s3296_s19 }
0x20d4   :  { %v1889_v14 = vpop.permute.xlu1 %1888 }
0x20d5   :  { %2756 = vmatmul.mubr.msk.bf16.vlgmr.msra.gmra.mrb[40].mxu1 %vm412_vm2, %v1889_v14 }
0x20d6   :  { %2768 = vmatpush3.bf16.msra.mxu1 %v3881_v32  ;;  %2771 = vmatprep.mubr.msk.bf16.mxu1 %vm3295_vm1, %v3294_v12 }
0x20d7   :  { %2769 = vmatprep.subr.bf16.mxu1 %v3294_v12 }
0x20da   :  { %2770 = vmatpush3.bf16.msra.mxu1 %v3886_v34 }
0x20db   :  { %2783 = vmatprep.subr.bf16.mxu1 %v3294_v12 }
0x21a8   :  { %v1927_v10 = vpop.f32.mrb[40].mxu1 }
0x21a9   :  { %v1933_v37 = vadd.f32 %v1927_v10, %v1632_v52  ;;  %v2757_v47 = vpop.f32.mrb[41].mxu1 }
0x21aa   :  { %v1930_v35 = vpop.f32.mrb[42].mxu1  ;;  %v2176_v47 = vld [vmem:[#allocation5 + $0x8] sm:$0xff] }
0x21ab   :  { %3025 = vtanh.f32 %v1933_v37  ;;  %v2758_v33 = vpop.f32.mrb[43].mxu1  ;;  %v2491_v39 = vmul.f32 -1.442695, %v1933_v37  ;;  %v2175_v37 = vld [vmem:[#allocation5] sm:$0xff]  ;;  %v2177_v35 = vld [vmem:[#allocation5 + $0x10] sm:$0xff] }
0x21ad   :  { %3027 = vpow2.f32 %v2491_v39  ;;  %v2178_v39 = vld [vmem:[#allocation5 + $0x18] sm:$0xff] }
0x21b5   :  { %v3026_v49 = vpop.eup %3025 }
0x21b6   :  { %1943 = vrot.lane.b32.xlu0 %v3026_v49, %s3285_s1  ;;  %v2174_v49 = vpack.c.bf16 %v3932_v45, %v3932_v45 }
0x21b7   :  { %v3028_v51 = vpop.eup %3027 }
0x21b8   :  { %v1937_v53 = vadd.f32 1.0, %v3028_v51 }
0x21ba   :  { %3029 = vrcp.f32 %v1937_v53 }
0x21c4   :  { %v3030_v44 = vpop.eup %3029 }
0x21c5   :  { %v1941_v55 = vmul.f32 %v3030_v44, %v1879_v43  ;;  %v1640_v43 = vadd.f32 %v3941_v20, %v3873_v5 }
0x2228   :  { %v1944_v56 = vpop.permute.xlu0 %1943 }
0x2229   :  { %v1946_v48 = vmul.f32 %v3030_v44, %v1944_v56 }
0x222b   :  { %1948 = vrot.lane.b32.xlu1 %v1946_v48, %s3296_s19 }
0x229d   :  { %v1949_v57 = vpop.permute.xlu1 %1948 }
0x229e   :  { %v1951_v60 = vadd.f32 %v1949_v57, %v1941_v55 }
0x22a0   :  { %3031 = vtanh.f32 %v1951_v60 }
0x22aa   :  { %v3032_v58 = vpop.eup %3031 }
0x22ab   :  { %1954 = vrot.lane.b32.xlu0 %v3032_v58, %s3285_s1 }
0x231d   :  { %v1955_v63 = vpop.permute.xlu0 %1954 }
0x231e   :  { %v1957_v6 = vmul.f32 %v3030_v44, %v1955_v63 }
0x2320   :  { %v1958_v8 = vpack.c.bf16 %v1957_v6, %v1957_v6 }
0x2322   :  { %1960 = vrot.lane.b32.xlu1 %v1958_v8, %s3296_s19 }
0x2394   :  { %v1961_v61 = vpop.permute.xlu1 %1960 }
0x2395   :  { %2764 = vmatmul.mubr.msk.bf16.vlgmr.msra.gmra.mrb[52].mxu0 %vm412_vm2, %v1961_v61 }
0x2396   :  { %2776 = vmatpush3.bf16.msra.mxu0 %v3881_v32  ;;  %2779 = vmatprep.mubr.msk.bf16.mxu0 %vm3295_vm1, %v3294_v12 }
0x2397   :  { %2777 = vmatprep.subr.bf16.mxu0 %v3294_v12 }
0x239a   :  { %2778 = vmatpush3.bf16.msra.mxu0 %v3886_v34 }
0x239b   :  { %2795 = vmatprep.subr.bf16.mxu0 %v3294_v12 }
0x2468   :  { %v1999_v11 = vpop.f32.mrb[52].mxu0 }
0x2469   :  { %v2005_v9 = vadd.f32 %v1999_v11, %v1635_v7  ;;  %v2765_v24 = vpop.f32.mrb[53].mxu0 }
0x246a   :  { %v2002_v25 = vpop.f32.mrb[54].mxu0 }
0x246b   :  { %3033 = vtanh.f32 %v2005_v9  ;;  %v2766_v13 = vpop.f32.mrb[55].mxu0  ;;  %v2493_v32 = vmul.f32 -1.442695, %v2005_v9 }
0x246d   :  { %3035 = vpow2.f32 %v2493_v32 }
0x2475   :  { %v3034_v26 = vpop.eup %3033 }
0x2476   :  { %2015 = vrot.lane.b32.xlu0 %v3034_v26, %s3285_s1 }
0x2477   :  { %v3036_v15 = vpop.eup %3035 }
0x2478   :  { %v2009_v54 = vadd.f32 1.0, %v3036_v15 }
0x247a   :  { %3037 = vrcp.f32 %v2009_v54 }
0x2484   :  { %v3038_v28 = vpop.eup %3037 }
0x2485   :  { %v2013_v16 = vmul.f32 %v3038_v28, %v1951_v60  ;;  %v1643_v60 = vadd.f32 %v3943_v19, %v3873_v5 }
0x24e8   :  { %v2016_v34 = vpop.permute.xlu0 %2015 }
0x24e9   :  { %v2018_v30 = vmul.f32 %v3038_v28, %v2016_v34 }
0x24eb   :  { %2020 = vrot.lane.b32.xlu1 %v2018_v30, %s3296_s19 }
0x255d   :  { %v2021_v27 = vpop.permute.xlu1 %2020 }
0x255e   :  { %v2023_v50 = vadd.f32 %v2021_v27, %v2013_v16 }
0x2560   :  { %3039 = vtanh.f32 %v2023_v50 }
0x256a   :  { %v3040_v36 = vpop.eup %3039 }
0x256b   :  { %2026 = vrot.lane.b32.xlu0 %v3040_v36, %s3285_s1 }
0x25dd   :  { %v2027_v38 = vpop.permute.xlu0 %2026 }
0x25de   :  { %v2029_v40 = vmul.f32 %v3038_v28, %v2027_v38  ;;  %v2313_v38 = vld [vmem:[#allocation7] sm:$0xff] }
0x25e0   :  { %v2030_v23 = vpack.c.bf16 %v2029_v40, %v2029_v40  ;;  %v2314_v40 = vld [vmem:[#allocation7 + $0x8] sm:$0xff] }
0x25e2   :  { %2032 = vrot.lane.b32.xlu1 %v2030_v23, %s3296_s19  ;;  %v2315_v23 = vld [vmem:[#allocation7 + $0x10] sm:$0xff] }
0x2654   :  { %v2033_v41 = vpop.permute.xlu1 %2032 }
0x2655   :  { %2772 = vmatmul.mubr.msk.bf16.vlgmr.msra.gmra.mrb[44].mxu1 %vm412_vm2, %v2033_v41 }
0x2656   :  { %2791 = vmatprep.mubr.msk.bf16.mxu1 %vm3295_vm1, %v3294_v12  ;;  %2784 = vmatpush3.bf16.msra.mxu1 %v2175_v37 }
0x2657   :  { %2785 = vmatprep.subr.bf16.mxu1 %v3294_v12 }
0x265a   :  { %2786 = vmatpush3.bf16.msra.mxu1 %v2176_v47 }
0x265b   :  { %2787 = vmatprep.subr.bf16.mxu1 %v3294_v12 }
0x265e   :  { %2788 = vmatpush3.bf16.msra.mxu1 %v2177_v35  ;;  %v2503_v35 = vld [vmem:[%s4053_s13] ss:$0 sm:$0xff] }
0x265f   :  { %2789 = vmatprep.subr.bf16.mxu1 %v3294_v12 }
0x2662   :  { %2790 = vmatpush3.bf16.msra.mxu1 %v2178_v39 }
0x2663   :  { %2807 = vmatprep.subr.bf16.mxu1 %v3294_v12 }
0x2665   :  { %2792 = vmatmul.mubr.msk.bf16.vlgmr.msra.gmra.mrb[48].mxu1 %vm278_vm0, %v2174_v49 }
0x2666   :  { %2823 = vmatprep.mubr.msk.bf16.mxu1 %vm3295_vm1, %v3294_v12  ;;  %2808 = vmatpush3.bf16.msra.mxu1 %v2313_v38 }
0x2667   :  { %2809 = vmatprep.subr.bf16.mxu1 %v3294_v12 }
0x266a   :  { %2810 = vmatpush3.bf16.msra.mxu1 %v2314_v40 }
0x266b   :  { %2811 = vmatprep.subr.bf16.mxu1 %v3294_v12 }
0x266e   :  { %2812 = vmatpush3.bf16.msra.mxu1 %v2315_v23 }
0x266f   :  { %2813 = vmatprep.subr.bf16.mxu1 %v3294_v12 }
0x2728   :  { %v2071_v31 = vpop.f32.mrb[44].mxu1 }
0x2729   :  { %v2077_v46 = vadd.f32 %v2071_v31, %v1640_v43  ;;  %v2773_v29 = vpop.f32.mrb[45].mxu1  ;;  %v2316_v31 = vld [vmem:[#allocation7 + $0x18] sm:$0xff] }
0x272a   :  { %v2074_v42 = vpop.f32.mrb[46].mxu1  ;;  %2814 = vmatpush3.bf16.msra.mxu1 %v2316_v31  ;;  %v2318_v29 = vld [vmem:[#allocation7 + $0x28] sm:$0xff] }
0x272b   :  { %3041 = vtanh.f32 %v2077_v46  ;;  %v2774_v18 = vpop.f32.mrb[47].mxu1  ;;  %v2495_v21 = vmul.f32 -1.442695, %v2077_v46  ;;  %2815 = vmatprep.subr.bf16.mxu1 %v3294_v12  ;;  %v2317_v46 = vld [vmem:[#allocation7 + $0x20] sm:$0xff] }
0x272d   :  { %3043 = vpow2.f32 %v2495_v21 }
0x272e   :  { %2816 = vmatpush3.bf16.msra.mxu1 %v2317_v46 }
0x272f   :  { %2817 = vmatprep.subr.bf16.mxu1 %v3294_v12 }
0x2732   :  { %2818 = vmatpush3.bf16.msra.mxu1 %v2318_v29 }
0x2733   :  { %2819 = vmatprep.subr.bf16.mxu1 %v3294_v12 }
0x2735   :  { %v3042_v17 = vpop.eup %3041 }
0x2736   :  { %2087 = vrot.lane.b32.xlu0 %v3042_v17, %s3285_s1 }
0x2737   :  { %v3044_v22 = vpop.eup %3043 }
0x2738   :  { %v2081_v4 = vadd.f32 1.0, %v3044_v22  ;;  %v2223_v45 = vpop.f32.mrb[48].mxu1  ;;  %v2319_v22 = vld [vmem:[#allocation7 + $0x30] sm:$0xff] }
0x2739   :  { %v2793_v48 = vpop.f32.mrb[49].mxu1  ;;  %2820 = vmatpush3.bf16.msra.mxu1 %v2319_v22 }
0x273a   :  { %3045 = vrcp.f32 %v2081_v4  ;;  %v2226_v55 = vpop.f32.mrb[50].mxu1  ;;  %2821 = vmatprep.subr.bf16.mxu1 %v3294_v12  ;;  %v2320_v4 = vld [vmem:[#allocation7 + $0x38] sm:$0xff] }
0x273b   :  { %v2794_v57 = vpop.f32.mrb[51].mxu1 }
0x273d   :  { %2822 = vmatpush3.bf16.msra.mxu1 %v2320_v4 }
0x2744   :  { %v3046_v62 = vpop.eup %3045 }
0x2745   :  { %v2085_v20 = vmul.f32 %v3046_v62, %v2023_v50 }
0x27a8   :  { %v2088_v59 = vpop.permute.xlu0 %2087 }
0x27a9   :  { %v2090_v14 = vmul.f32 %v3046_v62, %v2088_v59 }
0x27ab   :  { %2092 = vrot.lane.b32.xlu1 %v2090_v14, %s3296_s19 }
0x281d   :  { %v2093_v52 = vpop.permute.xlu1 %2092 }
0x281e   :  { %v3976_v10 = vadd.f32 %v2093_v52, %v2085_v20 }
0x2820   :  { %3047 = vtanh.f32 %v3976_v10 }
0x282a   :  { %v3048_v33 = vpop.eup %3047 }
0x282b   :  { %2098 = vrot.lane.b32.xlu0 %v3048_v33, %s3285_s1 }
0x289d   :  { %v2099_v51 = vpop.permute.xlu0 %2098 }
0x289e   :  { %v2101_v53 = vmul.f32 %v3046_v62, %v2099_v51  ;;  %v2501_v62 = vld [vmem:[%s4051_s11] ss:$0 sm:$0xff]  ;;  %s3241_s11 = scalar_lea.vmem %s2376_s20, 128 }
0x289f   :  { %p3242_p8 = scmp.ne.s32.totalorder %s2376_s20, %s3241_s11  ;;  %p3247_p10 = scmp.lt.s32.totalorder %s3241_s11, %s3241_s11 }
0x28a0   :  { %v2102_v44 = vpack.c.bf16 %v2101_v53, %v2101_v53 }
0x28a1   :  { %p3248_p11 = por %p3247_p10, %p3246_p9 }
0x28a2   :  { %2104 = vrot.lane.b32.xlu1 %v2102_v44, %s3296_s19 }
0x28a3   :  { %p3249_p12 = pnand %p3248_p11, %p3242_p8 }
0x2914   :  { %v2105_v56 = vpop.permute.xlu1 %2104 }
0x2915   :  { %2780 = vmatmul.mubr.msk.bf16.vlgmr.msra.gmra.mrb[56].mxu0 %vm412_vm2, %v2105_v56 }
0x2916   :  { %2796 = vmatpush3.bf16.msra.mxu0 %v3465_v0  ;;  %2803 = vmatprep.mubr.msk.bf16.mxu0 %vm3295_vm1, %v3294_v12  ;;  %v2498_v0 = vld [vmem:[%s4049_s9] ss:$0 sm:$0xff] }
0x2917   :  { %2797 = vmatprep.subr.bf16.mxu0 %v3294_v12  ;;  %v2224_v6 = vadd.f32 %v2498_v0, %v2223_v45 }
0x2919   :  { %v2500_v11 = vmul.f32 -1.442695, %v2224_v6 }
0x291a   :  { %2798 = vmatpush3.bf16.msra.mxu0 %v3470_v1 }
0x291b   :  { %2799 = vmatprep.subr.bf16.mxu0 %v3294_v12 }
0x291e   :  { %2800 = vmatpush3.bf16.msra.mxu0 %v3475_v2 }
0x291f   :  { %2801 = vmatprep.subr.bf16.mxu0 %v3294_v12 }
0x2922   :  { %2802 = vmatpush3.bf16.msra.mxu0 %v3480_v3 }
0x29e8   :  { %v2143_v1 = vpop.f32.mrb[56].mxu0 }
0x29e9   :  { %v2149_v58 = vadd.f32 %v2143_v1, %v1643_v60  ;;  %v2781_v63 = vpop.f32.mrb[57].mxu0 }
0x29ea   :  { %v2146_v2 = vpop.f32.mrb[58].mxu0 }
0x29eb   :  { %3049 = vtanh.f32 %v2149_v58  ;;  %v2782_v8 = vpop.f32.mrb[59].mxu0  ;;  %v2497_v7 = vmul.f32 -1.442695, %v2149_v58 }
0x29ec   :  { %3051 = vtanh.f32 %v2224_v6 }
0x29ed   :  { %3053 = vpow2.f32 %v2497_v7 }
0x29ee   :  { %3055 = vpow2.f32 %v2500_v11 }
0x29f5   :  { %v3050_v3 = vpop.eup %3049 }
0x29f6   :  { %2159 = vrot.lane.b32.xlu0 %v3050_v3, %s3285_s1  ;;  %v3052_v61 = vpop.eup %3051 }
0x29f7   :  { %v3054_v9 = vpop.eup %3053 }
0x29f8   :  { %v3056_v5 = vpop.eup %3055  ;;  %v2153_v19 = vadd.f32 1.0, %v3054_v9 }
0x29f9   :  { %v2232_v24 = vadd.f32 1.0, %v3056_v5 }
0x29fa   :  { %2237 = vrot.lane.b32.xlu0 %v3052_v61, %s3285_s1  ;;  %3057 = vrcp.f32 %v2153_v19 }
0x29fb   :  { %3059 = vrcp.f32 %v2232_v24 }
0x2a04   :  { %v3058_v25 = vpop.eup %3057 }
0x2a05   :  { %v3060_v32 = vpop.eup %3059  ;;  %v2157_v34 = vmul.f32 %v3058_v25, %v3976_v10 }
0x2a68   :  { %v2160_v13 = vpop.permute.xlu0 %2159 }
0x2a69   :  { %v2162_v26 = vmul.f32 %v3058_v25, %v2160_v13 }
0x2a6b   :  { %2164 = vrot.lane.b32.xlu1 %v2162_v26, %s3296_s19 }
0x2a6c   :  { %v2238_v15 = vpop.permute.xlu0 %2237 }
0x2a6d   :  { %v2240_v54 = vmul.f32 %v3060_v32, %v2238_v15 }
0x2a6f   :  { %3061 = vtanh.f32 %v2240_v54 }
0x2a79   :  { %v3062_v28 = vpop.eup %3061 }
0x2a7a   :  { %2243 = vrot.lane.b32.xlu0 %v3062_v28, %s3293_s4 }
0x2add   :  { %v2165_v30 = vpop.permute.xlu1 %2164 }
0x2ade   :  { %v2167_v16 = vadd.f32 %v2165_v30, %v2157_v34 }
0x2ae0   :  { %3063 = vtanh.f32 %v2167_v16 }
0x2aea   :  { %v3064_v27 = vpop.eup %3063 }
0x2aeb   :  { %2170 = vrot.lane.b32.xlu1 %v3064_v27, %s3285_s1 }
0x2aec   :  { %v2244_v50 = vpop.permute.xlu0 %2243 }
0x2aed   :  { %v2246_v36 = vmul.f32 %v3060_v32, %v2244_v50 }
0x2aef   :  { %2252 = vrot.lane.b32.xlu0 %v2246_v36, %s3285_s1 }
0x2b5d   :  { %v2171_v41 = vpop.permute.xlu1 %2170 }
0x2b5e   :  { %v2173_v43 = vmul.f32 %v3058_v25, %v2171_v41 }
0x2b60   :  { %2248 = vrot.lane.b32.xlu1 %v2173_v43, %s3296_s19 }
0x2b61   :  { %v2253_v42 = vpop.permute.xlu0 %2252 }
0x2bd2   :  { %v2249_v18 = vpop.permute.xlu1 %2248 }
0x2bd3   :  { %v2255_v17 = vsel %vm412_vm2, %v2249_v18, %v2253_v42 }
0x2bd4   :  { %v2256_v21 = vpack.c.bf16 %v2255_v17, %v2255_v17 }
0x2bd6   :  { %2804 = vmatmul.mubr.msk.bf16.vlgmr.msra.gmra.mrb[60].mxu0 %vm278_vm0, %v2256_v21 }
0x2ca9   :  { %v2305_v59 = vpop.f32.mrb[60].mxu0 }
0x2caa   :  { %v2306_v14 = vadd.f32 %v2501_v62, %v2305_v59  ;;  %v2805_v20 = vpop.f32.mrb[61].mxu0 }
0x2cab   :  { %v2308_v52 = vpop.f32.mrb[62].mxu0 }
0x2cac   :  { %v2311_v10 = vmax.f32 %v2306_v14, 0.0  ;;  %v2806_v37 = vpop.f32.mrb[63].mxu0 }
0x2cae   :  { %v2312_v47 = vpack.c.bf16 %v2311_v10, %v2311_v10 }
0x2cb0   :  { %2824 = vmatmul.mubr.bf16.vlgmr.msra.gmra.mrb[52].mxu1 %v2312_v47 }
0x2d83   :  { %v2362_v12 = vpop.f32.mrb[52].mxu1 }
0x2d84   :  { %v2363_v33 = vadd.f32 %v2503_v35, %v2362_v12  ;;  %v2825_v49 = vpop.f32.mrb[53].mxu1 }
0x2d85   :  { %v2365_v39 = vpop.f32.mrb[54].mxu1 }
0x2d86   :  { %2368 = vst [vmem:[#allocation17] sm:$0xff] %v2363_v33  ;;  %v2826_v51 = vpop.f32.mrb[55].mxu1 }
0x2d87   :  { %3252 = shalt.err (!%p3249_p12)
}
0x2d88   :  { %s3253_s13 = scalar_lea.hbm %s4054_s14, 128 }
0x2d89   :  { %p3254_p13 = scmp.ne.s32.totalorder %s4054_s14, %s3253_s13  ;;  %p3257_p0 = scmp.lt.u32.totalorder %s3253_s13, %s4054_s14 }
0x2d8b   :  { %p3259_p1 = pnand %p3257_p0, %p3254_p13 }
0x2d8d   :  { %3262 = shalt.err (!%p3259_p1)
}
0x2d8e   :  { %2378 = dma.vmem_to_hbm [thread:$0]  %s2376_s20, 128, %s4054_s14, [#allocation11]  }
0x2d8f   :  { %3279 = dma.done.wait [#allocation11], 128  }
0x2d90   :  { %3280 = vsyncadd [#allocation11], 4294967168 }
0x2d91   :  { %2382 = vsyncpa [#allocation10], 1 }
0x2d92   :  { %2383 = vsyncpa [#allocation13], 1 }
0x2d93   :  { %2384 = vsyncpa [#allocation16], 1 }
0x2d94   :  { %2385 = vsyncpa [#allocation11], 1 }
0x2d95   :  { %2386 = vsyncmov [#allocation8] }
0x2d98   :  { %s2387_s23 = vpop.sfrf %2386 }
0x2d99   :  { %p2504_p2 = scmp.ne.s32.totalorder %s2387_s23, 0 }
0x2d9b   :  { %2391 = shalt.err (%p2504_p2)  }
0x2d9c   :  { %2393 = vsyncmov [#allocation8 + $0x1] }
0x2d9f   :  { %s2394_s24 = vpop.sfrf %2393 }
0x2da0   :  { %p2505_p3 = scmp.ne.s32.totalorder %s2394_s24, 0 }
0x2da2   :  { %2398 = shalt.err (%p2505_p3)  }
0x2da3   :  { %2400 = vsyncmov [#allocation8 + $0x2] }
0x2da6   :  { %s2401_s3 = vpop.sfrf %2400 }
0x2da7   :  { %p2506_p4 = scmp.ne.s32.totalorder %s2401_s3, 0 }
0x2da9   :  { %2405 = shalt.err (%p2506_p4)  }
0x2daa   :  { %2407 = vsyncmov [#allocation8 + $0x3] }
0x2dad   :  { %s2408_s14 = vpop.sfrf %2407 }
0x2dae   :  { %p2507_p5 = scmp.ne.s32.totalorder %s2408_s14, 0 }
0x2db0   :  { %2412 = shalt.err (%p2507_p5)  }
0x2db1   :  { %2414 = vsyncmov [#allocation8 + $0x4] }
0x2db4   :  { %s2415_s30 = vpop.sfrf %2414 }
0x2db5   :  { %p2508_p6 = scmp.ne.s32.totalorder %s2415_s30, 0 }
0x2db7   :  { %2419 = shalt.err (%p2508_p6)  }

</bundles_post_ra>
